<compile_context>
chip_gen: v5e
topology: v5e:2x2
jax: 0.10.0
libtpu: 0.0.40
codegen_flags: <defaults>
</compile_context>

<pallas_src>
import functools

import jax
import jax.numpy as jnp
from jax.experimental import pallas as pl
from jax.experimental.pallas import tpu as pltpu


def _round_up(x, m):
    return ((x + m - 1) // m) * m


def _attention_kernel(xq_ref, xkt_ref, wq_ref, wk_ref, o_ref, kt_scratch, *,
                      n_valid, head_block, head_dim_p, use_relu,
                      scale_attn_weights):
    """One (batch b, head-group g, query-block qi) grid step.

    xq_ref:     (1, TQ, dim)               bf16 query-side activations
    xkt_ref:    (1, dim, Np)               bf16 key-side activations (pre-transposed)
    wq_ref:     (1, dim, Hb*hdp)           bf16 query weights (scale & gain folded)
    wk_ref:     (1, Hb*hdp, dim)           bf16 key weights (gain folded)
    o_ref:      (1, Hb, TQ, Np)            attention probabilities for (b, g, qi)
    kt_scratch: (Hb*hdp, Np)               bf16 K^T for this (b, g); written at qi == 0
    """
    # Hoist the key projection out of the query-block loop: compute K^T once
    # per (batch, head-group) and reuse it for every query block.  qi is the
    # innermost, sequentially-ordered ("arbitrary") grid axis.
    @pl.when(pl.program_id(2) == 0)
    def _():
        kt = jnp.dot(wk_ref[0], xkt_ref[0],
                     preferred_element_type=jnp.float32)        # (Hb*hdp, Np)
        kt_scratch[...] = kt.astype(jnp.bfloat16)

    # Q projection for all heads of this group (attention scale pre-folded);
    # bf16 operands -> native MXU, f32 accumulation.
    q = jnp.dot(xq_ref[0], wq_ref[0],
                preferred_element_type=jnp.float32)             # (TQ, Hb*hdp)
    q = q.astype(jnp.bfloat16)

    tq, n_pad = o_ref.shape[2], o_ref.shape[3]
    need_mask = n_valid < n_pad                                 # static Python bool
    if need_mask:
        col = jax.lax.broadcasted_iota(jnp.int32, (tq, n_pad), 1)
        valid = col < n_valid

    for h in range(head_block):                                  # static unroll
        lo, hi = h * head_dim_p, (h + 1) * head_dim_p
        # Scores: native MXU matmul (Q lane-contraction x K^T sublane), depth 128.
        s = jnp.dot(q[:, lo:hi], kt_scratch[lo:hi, :],
                    preferred_element_type=jnp.float32)         # (TQ, Np)

        if use_relu:
            p = jnp.maximum(s, 0.0) * scale_attn_weights
            if need_mask:
                p = jnp.where(valid, p, 0.0)
        else:
            if need_mask:
                s = jnp.where(valid, s, -1e30)                  # mask padded keys
            # softmax along the last axis (matches torch.nn.Softmax(dim=-1));
            # exact divide so rows sum to 1 (approx reciprocal was ~1e-3 off).
            s = s - jnp.max(s, axis=-1, keepdims=True)
            e = jnp.exp(s)
            p = e / jnp.sum(e, axis=-1, keepdims=True)
            if scale_attn_weights != 1.0:
                p = p * scale_attn_weights

        o_ref[0, h] = p.astype(o_ref.dtype)


def attention_forward(hidden_states, wq, wk, *, heads,
                      standparam=False, use_relu=False, num_patches=None,
                      q_gain=1.0, k_gain=1.0,
                      block_q=None, head_block=None,
                      compute_dtype=jnp.bfloat16, out_dtype=jnp.float32,
                      vmem_limit_bytes=48 * 1024 * 1024):
    """Pallas TPU implementation of Attention.forward.

    hidden_states: (B, N, dim)
    wq, wk:        (all_head_size, dim)  -- PyTorch nn.Linear weight layout
    returns:       (B, heads, N, N) attention probabilities (out_dtype)
    """
    B, N, dim = hidden_states.shape
    all_head_size = wq.shape[0]
    head_dim = all_head_size // heads
    assert all_head_size == heads * head_dim
    assert wq.shape == (all_head_size, dim) and wk.shape == (all_head_size, dim)
    if num_patches is None:
        num_patches = N

    attn_scale = float(head_dim) ** (-0.5) if standparam else float(head_dim) ** (-1)
    scale_attn_weights = (1.0 / num_patches) if use_relu else 1.0

    # ---- padding / tiling ----------------------------------------------------
    n_pad = _round_up(N, 128)          # lane-dense key / output dim (unmasked vst)
    hdp = _round_up(head_dim, 128)     # lane-dense per-head slices, full MXU depth
    if head_block is None:
        head_block = heads // 2 if heads % 2 == 0 else heads   # 2 groups when possible
    assert heads % head_block == 0
    n_groups = heads // head_block
    if block_q is None:
        block_q = 256 if n_pad % 256 == 0 else 128             # amortize per-step cost
    block_q = min(block_q, n_pad)
    assert n_pad % block_q == 0
    nq = n_pad // block_q

    # ---- activations: pad sequence, bf16 MXU operands, pre-transposed key side
    x = hidden_states
    if n_pad != N:
        x = jnp.pad(x, ((0, 0), (0, n_pad - N), (0, 0)))
    xq = x.astype(compute_dtype)                                # (B, Np, dim)
    xkt = jnp.swapaxes(x, 1, 2).astype(compute_dtype)           # (B, dim, Np)

    # ---- weights: fold scale / ScaledLayer gains, pad head_dim, group heads --
    def _prep(w, gain):
        w = (jnp.asarray(w) * gain).reshape(heads, head_dim, dim)
        if hdp != head_dim:
            w = jnp.pad(w, ((0, 0), (0, hdp - head_dim), (0, 0)))   # zero pad -> q.k unchanged
        return w.reshape(n_groups, head_block * hdp, dim)

    wk_g = _prep(wk, k_gain).astype(compute_dtype)                       # (G, Hb*hdp, dim)
    wq_g = jnp.swapaxes(_prep(wq, q_gain * attn_scale), 1, 2).astype(compute_dtype)  # (G, dim, Hb*hdp)

    kernel = functools.partial(
        _attention_kernel,
        n_valid=int(N),
        head_block=int(head_block),
        head_dim_p=int(hdp),
        use_relu=bool(use_relu),
        scale_attn_weights=float(scale_attn_weights),
    )

    out = pl.pallas_call(
        kernel,
        out_shape=jax.ShapeDtypeStruct((B, heads, n_pad, n_pad), out_dtype),
        grid_spec=pltpu.PrefetchScalarGridSpec(
            num_scalar_prefetch=0,
            grid=(B, n_groups, nq),
            in_specs=[
                # query-side activations: one (TQ, dim) block per step
                pl.BlockSpec((1, block_q, dim), lambda b, g, qi: (b, qi, 0)),
                # key-side activations (pre-transposed): resident per batch
                pl.BlockSpec((1, dim, n_pad), lambda b, g, qi: (b, 0, 0)),
                # per-head-group weights, selected by the group grid axis
                pl.BlockSpec((1, dim, head_block * hdp), lambda b, g, qi: (g, 0, 0)),
                pl.BlockSpec((1, head_block * hdp, dim), lambda b, g, qi: (g, 0, 0)),
            ],
            out_specs=pl.BlockSpec((1, head_block, block_q, n_pad),
                                   lambda b, g, qi: (b, g, qi, 0)),
            scratch_shapes=[pltpu.VMEM((head_block * hdp, n_pad), jnp.bfloat16)],
        ),
        compiler_params=pltpu.CompilerParams(
            # batch & head-group shard across TensorCores (v7x megacore); the
            # query-block axis is ordered so the K^T hoist at qi == 0 is valid.
            dimension_semantics=("parallel", "parallel", "arbitrary"),
            # Sized for v7x (64 MiB physical); raise toward ~96 MiB on v5e/v6e
            # together with block_q=512 for even fewer grid steps.
            vmem_limit_bytes=vmem_limit_bytes,
        ),
    )(xq, xkt, wq_g, wk_g)

    if n_pad != N:
        out = out[:, :, :N, :N]
    return out


# ----------------------------- references ------------------------------------
def _reference_f32(x, wq, wk, *, heads, standparam=False):
    """Plain f32 JAX reference mirroring the PyTorch forward (default config)."""
    B, N, dim = x.shape
    head_dim = wq.shape[0] // heads
    scale = float(head_dim) ** (-0.5) if standparam else float(head_dim) ** (-1)
    q = x @ wq.T
    k = x @ wk.T
    q = q.reshape(B, N, heads, head_dim).transpose(0, 2, 1, 3)
    k = k.reshape(B, N, heads, head_dim).transpose(0, 2, 1, 3)
    s = jnp.einsum("bhqd,bhkd->bhqk", q, k) * scale
    return jax.nn.softmax(s, axis=-1)


def _reference_bf16(x, wq, wk, *, heads, standparam=False):
    """Reference matching the kernel's numerics: bf16 MXU operands (scale folded
    into the query weights), f32 accumulation, f32 softmax."""
    B, N, dim = x.shape
    head_dim = wq.shape[0] // heads
    scale = float(head_dim) ** (-0.5) if standparam else float(head_dim) ** (-1)
    xb = x.astype(jnp.bfloat16)
    wqb = (wq * scale).astype(jnp.bfloat16)
    wkb = wk.astype(jnp.bfloat16)
    q = jnp.dot(xb, wqb.T, preferred_element_type=jnp.float32)
    k = jnp.dot(xb, wkb.T, preferred_element_type=jnp.float32)
    q = q.reshape(B, N, heads, head_dim).transpose(0, 2, 1, 3).astype(jnp.bfloat16)
    k = k.reshape(B, N, heads, head_dim).transpose(0, 2, 1, 3).astype(jnp.bfloat16)
    s = jnp.einsum("bhqd,bhkd->bhqk", q, k, preferred_element_type=jnp.float32)
    return jax.nn.softmax(s, axis=-1)


if __name__ == "__main__":
    # Small deterministic shapes consistent with the module:
    # dim=32, heads=8 (head_dim=4), seq/patches N=8, batch B=2.
    B, N, dim, heads = 2, 8, 32, 8
    all_head_size = dim  # heads * head_dim

    key = jax.random.PRNGKey(0)
    kx, kq, kk = jax.random.split(key, 3)
    hidden_states = jax.random.normal(kx, (B, N, dim), dtype=jnp.float32)
    # Deterministic weight init (PyTorch layout: (out_features, in_features)).
    wq = 0.2 * jax.random.normal(kq, (all_head_size, dim), dtype=jnp.float32)
    wk = 0.2 * jax.random.normal(kk, (all_head_size, dim), dtype=jnp.float32)

    out = attention_forward(hidden_states, wq, wk, heads=heads)
    out = jax.block_until_ready(out)
    assert out.shape == (B, heads, N, N)

    ref_bf = _reference_bf16(hidden_states, wq, wk, heads=heads)
    ref_f32 = _reference_f32(hidden_states, wq, wk, heads=heads)

    err_bf = float(jnp.max(jnp.abs(out - ref_bf)))
    err_f32 = float(jnp.max(jnp.abs(out - ref_f32)))
    row_sum_err = float(jnp.max(jnp.abs(jnp.sum(out, axis=-1) - 1.0)))

    # Primary check: kernel matches a numerics-equivalent (bf16 MXU operand,
    # f32 accumulation, exact softmax) reference to accumulation-order level.
    assert err_bf < 1e-3, f"mismatch vs bf16-matched reference: {err_bf}"
    # Secondary check: bf16 operand rounding stays small vs a pure-f32 reference.
    assert err_f32 < 5e-2, f"mismatch vs f32 reference: {err_f32}"
    # Softmax rows must sum to 1 (exact divide, no approx reciprocal).
    assert row_sum_err < 1e-3, f"softmax rows do not sum to 1: {row_sum_err}"

    print("KERNEL_OK")
</pallas_src>

<mosaic_0001>
module attributes {stable_mosaic.version = 11 : i64} {
  func.func @_attention_kernel(%arg0: i32, %arg1: i32, %arg2: i32, %arg3: memref<1x128x32xbf16, #tpu.memory_space<vmem>>, %arg4: memref<1x32x128xbf16, #tpu.memory_space<vmem>>, %arg5: memref<1x32x512xbf16, #tpu.memory_space<vmem>>, %arg6: memref<1x512x32xbf16, #tpu.memory_space<vmem>>, %arg7: memref<1x4x128x128xf32, #tpu.memory_space<vmem>>, %arg8: memref<512x128xbf16, #tpu.memory_space<vmem>>) attributes {dimension_semantics = [#tpu.dimension_semantics<parallel>, #tpu.dimension_semantics<parallel>, #tpu.dimension_semantics<arbitrary>], iteration_bounds = array<i64: 2, 2, 1>, scalar_prefetch = 0 : i64, scratch_operands = 1 : i64, tpu.core_type = #tpu.core_type<tc>, window_params = [{transform_indices = @transform_0, window_bounds = array<i64: 1, 128, 32>}, {transform_indices = @transform_1, window_bounds = array<i64: 1, 32, 128>}, {transform_indices = @transform_2, window_bounds = array<i64: 1, 32, 512>}, {transform_indices = @transform_3, window_bounds = array<i64: 1, 512, 32>}, {transform_indices = @transform_4, window_bounds = array<i64: 1, 4, 128, 128>}]} {
    %c0_i32 = arith.constant 0 : i32
    %0 = arith.cmpi eq, %arg2, %c0_i32 : i32
    %1 = arith.extui %0 : i1 to i32
    %c0_i32_0 = arith.constant 0 : i32
    %2 = arith.cmpi ne, %1, %c0_i32_0 : i32
    scf.if %2 {
      %c0_40 = arith.constant 0 : index
      %c0_41 = arith.constant 0 : index
      %c0_42 = arith.constant 0 : index
      %80 = vector.load %arg6[%c0_40, %c0_41, %c0_42] : memref<1x512x32xbf16, #tpu.memory_space<vmem>>, vector<1x512x32xbf16>
      %81 = vector.shape_cast %80 : vector<1x512x32xbf16> to vector<512x32xbf16>
      %c0_43 = arith.constant 0 : index
      %c0_44 = arith.constant 0 : index
      %c0_45 = arith.constant 0 : index
      %82 = vector.load %arg4[%c0_43, %c0_44, %c0_45] : memref<1x32x128xbf16, #tpu.memory_space<vmem>>, vector<1x32x128xbf16>
      %83 = vector.shape_cast %82 : vector<1x32x128xbf16> to vector<32x128xbf16>
      %cst_46 = arith.constant dense<0.000000e+00> : vector<512x128xf32>
      %84 = tpu.matmul %81, %83, %cst_46 {dimension_numbers = #tpu.dot_dimension_numbers<[1], [0], [0], [1], [0, 0, 1, 1], [], []>} : vector<512x32xbf16>, vector<32x128xbf16>, vector<512x128xf32> -> vector<512x128xf32>
      %85 = arith.truncf %84 : vector<512x128xf32> to vector<512x128xbf16>
      %c0_47 = arith.constant 0 : index
      %c0_48 = arith.constant 0 : index
      %86 = vector.load %arg8[%c0_47, %c0_48] : memref<512x128xbf16, #tpu.memory_space<vmem>>, vector<512x128xbf16>
      tpu.vector_store %arg8[%c0_47, %c0_48], %85 {strides = array<i32>} : memref<512x128xbf16, #tpu.memory_space<vmem>>, vector<512x128xbf16>,
    } else {
    }
    %c0 = arith.constant 0 : index
    %c0_1 = arith.constant 0 : index
    %c0_2 = arith.constant 0 : index
    %3 = vector.load %arg3[%c0, %c0_1, %c0_2] : memref<1x128x32xbf16, #tpu.memory_space<vmem>>, vector<1x128x32xbf16>
    %4 = vector.shape_cast %3 : vector<1x128x32xbf16> to vector<128x32xbf16>
    %c0_3 = arith.constant 0 : index
    %c0_4 = arith.constant 0 : index
    %c0_5 = arith.constant 0 : index
    %5 = vector.load %arg5[%c0_3, %c0_4, %c0_5] : memref<1x32x512xbf16, #tpu.memory_space<vmem>>, vector<1x32x512xbf16>
    %6 = vector.shape_cast %5 : vector<1x32x512xbf16> to vector<32x512xbf16>
    %cst = arith.constant dense<0.000000e+00> : vector<128x512xf32>
    %7 = tpu.matmul %4, %6, %cst {dimension_numbers = #tpu.dot_dimension_numbers<[1], [0], [0], [1], [0, 0, 1, 1], [], []>} : vector<128x32xbf16>, vector<32x512xbf16>, vector<128x512xf32> -> vector<128x512xf32>
    %8 = arith.truncf %7 : vector<128x512xf32> to vector<128x512xbf16>
    %9 = tpu.iota {dimensions = array<i32: 1>} : vector<128x128xi32>
    %c8_i32 = arith.constant 8 : i32
    %10 = vector.broadcast %c8_i32 : i32 to vector<128x128xi32>
    %11 = arith.cmpi slt, %9, %10 : vector<128x128xi32>
    %12 = vector.extract_strided_slice %8 {offsets = [0, 0], sizes = [128, 128], strides = [1, 1]} : vector<128x512xbf16> to vector<128x128xbf16>
    %c0_6 = arith.constant 0 : index
    %c0_7 = arith.constant 0 : index
    %13 = vector.load %arg8[%c0_6, %c0_7] : memref<512x128xbf16, #tpu.memory_space<vmem>>, vector<128x128xbf16>
    %cst_8 = arith.constant dense<0.000000e+00> : vector<128x128xf32>
    %14 = tpu.matmul %12, %13, %cst_8 {dimension_numbers = #tpu.dot_dimension_numbers<[1], [0], [0], [1], [0, 0, 1, 1], [], []>} : vector<128x128xbf16>, vector<128x128xbf16>, vector<128x128xf32> -> vector<128x128xf32>
    %cst_9 = arith.constant -1.000000e+30 : f32
    %15 = vector.broadcast %cst_9 : f32 to vector<128x128xf32>
    %16 = arith.select %11, %14, %15 : vector<128x128xi1>, vector<128x128xf32>
    %cst_10 = arith.constant dense<0xFF800000> : vector<128xf32>
    %17 = vector.multi_reduction <maximumf>, %16, %cst_10 [1] : vector<128x128xf32> to vector<128xf32>
    %18 = vector.shape_cast %17 : vector<128xf32> to vector<128x1xf32>
    %19 = vector.broadcast %18 : vector<128x1xf32> to vector<128x128xf32>
    %20 = arith.subf %16, %19 : vector<128x128xf32>
    %21 = math.exp %20 : vector<128x128xf32>
    %cst_11 = arith.constant dense<0.000000e+00> : vector<128xf32>
    %22 = vector.multi_reduction <add>, %21, %cst_11 [1] : vector<128x128xf32> to vector<128xf32>
    %23 = vector.shape_cast %22 : vector<128xf32> to vector<128x1xf32>
    %24 = vector.broadcast %23 : vector<128x1xf32> to vector<128x128xf32>
    %25 = arith.divf %21, %24 : vector<128x128xf32>
    %c0_12 = arith.constant 0 : index
    %c0_13 = arith.constant 0 : index
    %c0_14 = arith.constant 0 : index
    %c0_15 = arith.constant 0 : index
    %26 = vector.load %arg7[%c0_12, %c0_13, %c0_14, %c0_15] : memref<1x4x128x128xf32, #tpu.memory_space<vmem>>, vector<1x1x128x128xf32>
    %27 = vector.shape_cast %26 : vector<1x1x128x128xf32> to vector<128x128xf32>
    %28 = vector.shape_cast %25 : vector<128x128xf32> to vector<1x1x128x128xf32>
    tpu.vector_store %arg7[%c0_12, %c0_13, %c0_14, %c0_15], %28 {strides = array<i32>} : memref<1x4x128x128xf32, #tpu.memory_space<vmem>>, vector<1x1x128x128xf32>,
    %29 = vector.extract_strided_slice %8 {offsets = [0, 128], sizes = [128, 128], strides = [1, 1]} : vector<128x512xbf16> to vector<128x128xbf16>
    %c128 = arith.constant 128 : index
    %c0_16 = arith.constant 0 : index
    %30 = vector.load %arg8[%c128, %c0_16] : memref<512x128xbf16, #tpu.memory_space<vmem>>, vector<128x128xbf16>
    %cst_17 = arith.constant dense<0.000000e+00> : vector<128x128xf32>
    %31 = tpu.matmul %29, %30, %cst_17 {dimension_numbers = #tpu.dot_dimension_numbers<[1], [0], [0], [1], [0, 0, 1, 1], [], []>} : vector<128x128xbf16>, vector<128x128xbf16>, vector<128x128xf32> -> vector<128x128xf32>
    %cst_18 = arith.constant -1.000000e+30 : f32
    %32 = vector.broadcast %cst_18 : f32 to vector<128x128xf32>
    %33 = arith.select %11, %31, %32 : vector<128x128xi1>, vector<128x128xf32>
    %cst_19 = arith.constant dense<0xFF800000> : vector<128xf32>
    %34 = vector.multi_reduction <maximumf>, %33, %cst_19 [1] : vector<128x128xf32> to vector<128xf32>
    %35 = vector.shape_cast %34 : vector<128xf32> to vector<128x1xf32>
    %36 = vector.broadcast %35 : vector<128x1xf32> to vector<128x128xf32>
    %37 = arith.subf %33, %36 : vector<128x128xf32>
    %38 = math.exp %37 : vector<128x128xf32>
    %cst_20 = arith.constant dense<0.000000e+00> : vector<128xf32>
    %39 = vector.multi_reduction <add>, %38, %cst_20 [1] : vector<128x128xf32> to vector<128xf32>
    %40 = vector.shape_cast %39 : vector<128xf32> to vector<128x1xf32>
    %41 = vector.broadcast %40 : vector<128x1xf32> to vector<128x128xf32>
    %42 = arith.divf %38, %41 : vector<128x128xf32>
    %c0_21 = arith.constant 0 : index
    %c1 = arith.constant 1 : index
    %c0_22 = arith.constant 0 : index
    %c0_23 = arith.constant 0 : index
    %43 = vector.load %arg7[%c0_21, %c1, %c0_22, %c0_23] : memref<1x4x128x128xf32, #tpu.memory_space<vmem>>, vector<1x1x128x128xf32>
    %44 = vector.shape_cast %43 : vector<1x1x128x128xf32> to vector<128x128xf32>
    %45 = vector.shape_cast %42 : vector<128x128xf32> to vector<1x1x128x128xf32>
    tpu.vector_store %arg7[%c0_21, %c1, %c0_22, %c0_23], %45 {strides = array<i32>} : memref<1x4x128x128xf32, #tpu.memory_space<vmem>>, vector<1x1x128x128xf32>,
    %46 = vector.extract_strided_slice %8 {offsets = [0, 256], sizes = [128, 128], strides = [1, 1]} : vector<128x512xbf16> to vector<128x128xbf16>
    %c256 = arith.constant 256 : index
    %c0_24 = arith.constant 0 : index
    %47 = vector.load %arg8[%c256, %c0_24] : memref<512x128xbf16, #tpu.memory_space<vmem>>, vector<128x128xbf16>
    %cst_25 = arith.constant dense<0.000000e+00> : vector<128x128xf32>
    %48 = tpu.matmul %46, %47, %cst_25 {dimension_numbers = #tpu.dot_dimension_numbers<[1], [0], [0], [1], [0, 0, 1, 1], [], []>} : vector<128x128xbf16>, vector<128x128xbf16>, vector<128x128xf32> -> vector<128x128xf32>
    %cst_26 = arith.constant -1.000000e+30 : f32
    %49 = vector.broadcast %cst_26 : f32 to vector<128x128xf32>
    %50 = arith.select %11, %48, %49 : vector<128x128xi1>, vector<128x128xf32>
    %cst_27 = arith.constant dense<0xFF800000> : vector<128xf32>
    %51 = vector.multi_reduction <maximumf>, %50, %cst_27 [1] : vector<128x128xf32> to vector<128xf32>
    %52 = vector.shape_cast %51 : vector<128xf32> to vector<128x1xf32>
    %53 = vector.broadcast %52 : vector<128x1xf32> to vector<128x128xf32>
    %54 = arith.subf %50, %53 : vector<128x128xf32>
    %55 = math.exp %54 : vector<128x128xf32>
    %cst_28 = arith.constant dense<0.000000e+00> : vector<128xf32>
    %56 = vector.multi_reduction <add>, %55, %cst_28 [1] : vector<128x128xf32> to vector<128xf32>
    %57 = vector.shape_cast %56 : vector<128xf32> to vector<128x1xf32>
    %58 = vector.broadcast %57 : vector<128x1xf32> to vector<128x128xf32>
    %59 = arith.divf %55, %58 : vector<128x128xf32>
    %c0_29 = arith.constant 0 : index
    %c2 = arith.constant 2 : index
    %c0_30 = arith.constant 0 : index
    %c0_31 = arith.constant 0 : index
    %60 = vector.load %arg7[%c0_29, %c2, %c0_30, %c0_31] : memref<1x4x128x128xf32, #tpu.memory_space<vmem>>, vector<1x1x128x128xf32>
    %61 = vector.shape_cast %60 : vector<1x1x128x128xf32> to vector<128x128xf32>
    %62 = vector.shape_cast %59 : vector<128x128xf32> to vector<1x1x128x128xf32>
    tpu.vector_store %arg7[%c0_29, %c2, %c0_30, %c0_31], %62 {strides = array<i32>} : memref<1x4x128x128xf32, #tpu.memory_space<vmem>>, vector<1x1x128x128xf32>,
    %63 = vector.extract_strided_slice %8 {offsets = [0, 384], sizes = [128, 128], strides = [1, 1]} : vector<128x512xbf16> to vector<128x128xbf16>
    %c384 = arith.constant 384 : index
    %c0_32 = arith.constant 0 : index
    %64 = vector.load %arg8[%c384, %c0_32] : memref<512x128xbf16, #tpu.memory_space<vmem>>, vector<128x128xbf16>
    %cst_33 = arith.constant dense<0.000000e+00> : vector<128x128xf32>
    %65 = tpu.matmul %63, %64, %cst_33 {dimension_numbers = #tpu.dot_dimension_numbers<[1], [0], [0], [1], [0, 0, 1, 1], [], []>} : vector<128x128xbf16>, vector<128x128xbf16>, vector<128x128xf32> -> vector<128x128xf32>
    %cst_34 = arith.constant -1.000000e+30 : f32
    %66 = vector.broadcast %cst_34 : f32 to vector<128x128xf32>
    %67 = arith.select %11, %65, %66 : vector<128x128xi1>, vector<128x128xf32>
    %cst_35 = arith.constant dense<0xFF800000> : vector<128xf32>
    %68 = vector.multi_reduction <maximumf>, %67, %cst_35 [1] : vector<128x128xf32> to vector<128xf32>
    %69 = vector.shape_cast %68 : vector<128xf32> to vector<128x1xf32>
    %70 = vector.broadcast %69 : vector<128x1xf32> to vector<128x128xf32>
    %71 = arith.subf %67, %70 : vector<128x128xf32>
    %72 = math.exp %71 : vector<128x128xf32>
    %cst_36 = arith.constant dense<0.000000e+00> : vector<128xf32>
    %73 = vector.multi_reduction <add>, %72, %cst_36 [1] : vector<128x128xf32> to vector<128xf32>
    %74 = vector.shape_cast %73 : vector<128xf32> to vector<128x1xf32>
    %75 = vector.broadcast %74 : vector<128x1xf32> to vector<128x128xf32>
    %76 = arith.divf %72, %75 : vector<128x128xf32>
    %c0_37 = arith.constant 0 : index
    %c3 = arith.constant 3 : index
    %c0_38 = arith.constant 0 : index
    %c0_39 = arith.constant 0 : index
    %77 = vector.load %arg7[%c0_37, %c3, %c0_38, %c0_39] : memref<1x4x128x128xf32, #tpu.memory_space<vmem>>, vector<1x1x128x128xf32>
    %78 = vector.shape_cast %77 : vector<1x1x128x128xf32> to vector<128x128xf32>
    %79 = vector.shape_cast %76 : vector<128x128xf32> to vector<1x1x128x128xf32>
    tpu.vector_store %arg7[%c0_37, %c3, %c0_38, %c0_39], %79 {strides = array<i32>} : memref<1x4x128x128xf32, #tpu.memory_space<vmem>>, vector<1x1x128x128xf32>,
    return
  }
  func.func @transform_0(%arg0: i32, %arg1: i32, %arg2: i32) -> (i32, i32, i32) {
    %c0_i32 = arith.constant 0 : i32
    %c0_i32_0 = arith.constant 0 : i32
    return %arg0, %arg2, %c0_i32 : i32, i32, i32
  }
  func.func @transform_1(%arg0: i32, %arg1: i32, %arg2: i32) -> (i32, i32, i32) {
    %c0_i32 = arith.constant 0 : i32
    %c0_i32_0 = arith.constant 0 : i32
    %c0_i32_1 = arith.constant 0 : i32
    return %arg0, %c0_i32, %c0_i32_0 : i32, i32, i32
  }
  func.func @transform_2(%arg0: i32, %arg1: i32, %arg2: i32) -> (i32, i32, i32) {
    %c0_i32 = arith.constant 0 : i32
    %c0_i32_0 = arith.constant 0 : i32
    %c0_i32_1 = arith.constant 0 : i32
    return %arg1, %c0_i32, %c0_i32_0 : i32, i32, i32
  }
  func.func @transform_3(%arg0: i32, %arg1: i32, %arg2: i32) -> (i32, i32, i32) {
    %c0_i32 = arith.constant 0 : i32
    %c0_i32_0 = arith.constant 0 : i32
    %c0_i32_1 = arith.constant 0 : i32
    return %arg1, %c0_i32, %c0_i32_0 : i32, i32, i32
  }
  func.func @transform_4(%arg0: i32, %arg1: i32, %arg2: i32) -> (i32, i32, i32, i32) {
    %c0_i32 = arith.constant 0 : i32
    %c0_i32_0 = arith.constant 0 : i32
    return %arg0, %arg1, %arg2, %c0_i32 : i32, i32, i32, i32
  }
}

</mosaic_0001>

<bundles_post_ra>
// kernel: tpu_custom_call.1
= control target key start
LH: loop header
LB: loop body
LE: loop exit
PB: predicated region body
PF: predicated region fallthrough
CT: control target
= control target key end

     0   :  { %9 = vsyncpa [#allocation4], 0  ;;  %s6378_s0 = inlined_call_operand.vmem [shape: bf16[2,128,32], index: 0, kind: input, shape index: {}]   ;;  %s6379_s1 = inlined_call_operand.vmem [shape: bf16[2,32,128], index: 1, kind: input, shape index: {}]   ;;  %s6380_s2 = inlined_call_operand.vmem [shape: bf16[2,32,512], index: 2, kind: input, shape index: {}]   ;;  %s6381_s3 = inlined_call_operand.vmem [shape: bf16[2,512,32], index: 3, kind: input, shape index: {}]   ;;  %s6382_s4 = inlined_call_operand.hbm [shape: f32[2,8,128,128], index: 4, kind: output, shape index: {}]  }
   0x1   :  { %11 = vsyncpa [#allocation4 + $0x1], 0  ;;  %s4784_s15 = smov 0   ;;  %s4786_s16 = smov 0  }
   0x2   :  { %s4788_s17 = smov 0   ;;  %s4790_s18 = smov 0  }
   0x3   :  { %s4792_s19 = smov 0   ;;  %s4794_s20 = smov 0  }
   0x4   :  { %s4796_s21 = smov 0   ;;  %s4798_s22 = smov 0  }
   0x5 LB: > { %s3591_s23 = sadd.s32 4294967295, %s4755_s22   ;;  %s3592_s24 = sadd.s32 4294967294, %s4755_s22   ;;  %s4755_s22 = sphi %s4798_s22, %s17_s22   ;;  %s4751_s21 = sphi %s4796_s21, %s6471_s21   ;;  %s4747_s20 = sphi %s4794_s20, %s6470_s20   ;;  %s4743_s19 = sphi %s4792_s19, %s6469_s19   ;;  %s4739_s18 = sphi %s4790_s18, %s6468_s18   ;;  %s4735_s17 = sphi %s4788_s17, %s6467_s17   ;;  %s4731_s16 = sphi %s4786_s16, %s6466_s16   ;;  %s4727_s15 = sphi %s4784_s15, %s6465_s15  }
   0x6   : > { %s32_s25 = sadd.s32 1, %s4747_s20  ;;  %s36_s26 = sadd.s32 1, %s4751_s21 }
   0x7   : > { %p34_p0 = scmp.ge.s32.totalorder %s32_s25, 2  ;;  %p163_p1 = scmp.ne.s32.totalorder %s4735_s17, %s4731_s16 }
   0x8   : > { %p164_p2 = scmp.eq.s32.totalorder %s3591_s23, 3  ;;  %p169_p5 = scmp.ne.s32.totalorder %s4731_s16, %s4727_s15 }
   0x9   : > { %s6473_s25 = smov (%p34_p0, %s32_s25), 0  ;;  %s6475_s26 = smov (!%p34_p0, %s36_s26), %s4751_s21 }
   0xa   : > { %s147_s27 = ssub.s32 %s4747_s20, %s6473_s25  ;;  %p4835_p3 = por %p164_p2, %p163_p1 }
   0xb   : > { %p38_p4 = scmp.ge.s32.totalorder %s6475_s26, 2  ;;  %p170_p6 = scmp.eq.s32.totalorder %s3592_s24, 3 }
   0xc   : > { %p3595_p7 = scmp.ge.s32.totalorder %s4755_s22, 1  ;;  %p225_p9 = scmp.lt.s32.totalorder %s4755_s22, 5 }
   0xd   : > { %s6477_s26 = smov (%p38_p4, %s6475_s26), 0  ;;  %p4844_p8 = por %p170_p6, %p169_p5 }
   0xe   : > { %s146_s30 = ssub.s32 %s4751_s21, %s6477_s26  ;;  %s153_s5 = sadd.s32 1, %s4735_s17 }
   0xf   : > { %s148_s6 = sor.u32 %s147_s27, %s146_s30  ;;  %p226_p10 = pnand %p3595_p7, %p225_p9 }
  0x10   : > { %p151_p11 = scmp.eq.s32.totalorder %s148_s6, 0 }
  0x11   : > { %229 = sbr.rel (%p226_p10) target bundleno = 1101 (0x44d), region = 36 }
  0x12   : > { %s4853_s7 = scalar_select %p151_p11, %s4735_s17, %s153_s5  }
  0x16   : > { %p271_p12 = scmp.lt.s32.totalorder %s4743_s19, 1  ;;  %p285_p13 = scmp.lt.s32.totalorder %s4739_s18, 1  ;;  %vm542_vm0 = vcmask 261120  }
  0x17   : > { %s4138_s24 = sshll.u32 %s4739_s18, 6 }
  0x18   : > { %s4858_s8 = scalar_select %p271_p12, %s4743_s19, 1 }
  0x19   : > { %s4861_s9 = scalar_select %p285_p13, %s4739_s18, 1 }
  0x1a   : > { %s4053_s10 = sshll.u32 %s4858_s8, 4 }
  0x1b   : > { %s284_s13 = scalar_lea.vmem %s6379_s1, %s4053_s10  ;;  %s4055_s14 = sshll.u32 %s4861_s9, 8 }
  0x1c   : > { %v4089_v0 = vld [vmem:[%s284_s13 + $0x8] sm:$0xff]  ;;  %v4088_v1 = vld [vmem:[%s284_s13] sm:$0xff]  ;;  %s4871_s27 = scalar_lea.vmem %s6381_s3, %s4055_s14  ;;  %s4054_s30 = sshll.u32 %s4861_s9, 6 }
  0x1d   : > { %645 = vmatpush.bf16.msra.mxu0 %v4089_v0  ;;  %4330 = vmatpush.bf16.msra.mxu3 %v4089_v0  ;;  %v4056_v2 = vld [vmem:[%s4871_s27] sm:$0xff]  ;;  %v4057_v4 = vld [vmem:[%s4871_s27 + $0x8] sm:$0xff]  ;;  %v4058_v6 = vld [vmem:[%s4871_s27 + $0x10] sm:$0xff]  ;;  %s4903_s10 = scalar_lea.vmem %s6380_s2, %s4054_s30  ;;  %s4052_s9 = sshll.u32 %s4858_s8, 6 }
  0x1e   : > { %v4080_v3 = vld [vmem:[%s4871_s27 + $0xc0] sm:$0xff]  ;;  %v4081_v5 = vld [vmem:[%s4871_s27 + $0xc8] sm:$0xff]  ;;  %v4082_v7 = vld [vmem:[%s4871_s27 + $0xd0] sm:$0xff]  ;;  %s4915_s13 = scalar_lea.vmem %s6378_s0, %s4052_s9  ;;  %s267_s8 = sand.u32 1, %s4731_s16  }
  0x1f   : > { %v4059_v8 = vld [vmem:[%s4871_s27 + $0x18] sm:$0xff]  ;;  %v4060_v10 = vld [vmem:[%s4871_s27 + $0x20] sm:$0xff]  ;;  %v4061_v12 = vld [vmem:[%s4871_s27 + $0x28] sm:$0xff]  ;;  %s3596_s14 = sshll.u32 %s267_s8, 9  ;;  %s3448_s11 = scalar_lea.sflag [#allocation4], %s267_s8 }
  0x20   : > { %v4083_v9 = vld [vmem:[%s4871_s27 + $0xd8] sm:$0xff]  ;;  %v4084_v11 = vld [vmem:[%s4871_s27 + $0xe0] sm:$0xff]  ;;  %v4085_v13 = vld [vmem:[%s4871_s27 + $0xe8] sm:$0xff]  ;;  %s5464_s23 = scalar_lea.vmem [#allocation3], %s3596_s14 }
  0x21   : > { %646 = vmatpush.bf16.msra.mxu0 %v4088_v1  ;;  %4331 = vmatpush.bf16.msra.mxu3 %v4088_v1  ;;  %v4062_v14 = vld [vmem:[%s4871_s27 + $0x30] sm:$0xff]  ;;  %v4102_v16 = vld [vmem:[%s4903_s10 + $0x24] sm:$0xf]  ;;  %v3823_v22 = vld [vmem:[%s4903_s10 + $0x20] sm:$0xf] }
  0x22   : > { %v4086_v15 = vld [vmem:[%s4871_s27 + $0xf0] sm:$0xff]  ;;  %v4098_v19 = vld [vmem:[%s4903_s10 + $0x4] sm:$0xf]  ;;  %v3807_v26 = vld [vmem:[%s4903_s10] sm:$0xf] }
  0x23   : > { %v3825_v17 = vld [vmem:[%s4903_s10 + $0x30] sm:$0xf0]  ;;  %v4104_v23 = vld [vmem:[%s4903_s10 + $0x2c] sm:$0xf0]  ;;  %v4920_v25 = vld [vmem:[%s4915_s13] sm:$0xff] }
  0x24   : > { %3741 = vmatmul.msk.bf16.vlgmr.msra.gmra.mxu0 %vm542_vm0, %v4056_v2  ;;  %3765 = vmatmul.msk.bf16.vlgmr.msra.gmra.mxu3 %vm542_vm0, %v4080_v3  ;;  %v3828_v18 = vor.u32 %v4102_v16, %v3825_v17  ;;  %v3809_v20 = vld [vmem:[%s4903_s10 + $0x10] sm:$0xf0]  ;;  %v3824_v24 = vor.u32 %v4104_v23, %v3823_v22  ;;  %v4100_v27 = vld [vmem:[%s4903_s10 + $0xc] sm:$0xf0]  ;;  %v4063_v29 = vld [vmem:[%s4871_s27 + $0x38] sm:$0xff] }
  0x25   : > { %v3812_v21 = vor.u32 %v4098_v19, %v3809_v20  ;;  %v3808_v28 = vor.u32 %v4100_v27, %v3807_v26  ;;  %v4087_v30 = vld [vmem:[%s4871_s27 + $0xf8] sm:$0xff]  ;;  %v4933_v31 = vld [vmem:[%s4915_s13 + $0x8] sm:$0xff]  ;;  %v4064_v32 = vld [vmem:[%s4871_s27 + $0x40] sm:$0xff] }
  0x26   : > { %1120 = vmatpush.bf16.msra.mxu2 %v3828_v18  ;;  %1071 = vmatpush.bf16.msra.mxu1 %v3824_v24  ;;  %v4942_v37 = vld [vmem:[%s4915_s13 + $0x10] sm:$0xff]  ;;  %v4065_v39 = vld [vmem:[%s4871_s27 + $0x48] sm:$0xff]  ;;  %v4951_v45 = vld [vmem:[%s4915_s13 + $0x18] sm:$0xff] }
  0x27   : > { %v4066_v47 = vld [vmem:[%s4871_s27 + $0x50] sm:$0xff]  ;;  %v4960_v53 = vld [vmem:[%s4915_s13 + $0x20] sm:$0xff]  ;;  %v4067_v55 = vld [vmem:[%s4871_s27 + $0x58] sm:$0xff] }
  0x28   : > { %v4969_v61 = vld [vmem:[%s4915_s13 + $0x28] sm:$0xff]  ;;  %v4068_v63 = vld [vmem:[%s4871_s27 + $0x60] sm:$0xff]  ;;  %v4070_v18 = vld [vmem:[%s4871_s27 + $0x70] sm:$0xff] }
  0x29   : > { %v3833_v22 = vld [vmem:[%s4903_s10 + $0x38] sm:$0xf0] }
  0x2a   : > { %1121 = vmatpush.bf16.msra.mxu2 %v3812_v21  ;;  %1072 = vmatpush.bf16.msra.mxu1 %v3808_v28  ;;  %v4103_v21 = vld [vmem:[%s4903_s10 + $0x2c] sm:$0xf]  ;;  %v3815_v28 = vld [vmem:[%s4903_s10 + $0x8] sm:$0xf] }
  0x2b   : > { %v3836_v23 = vor.u32 %v4103_v21, %v3833_v22 }
  0x2d   : > { %3845 = vmatmul.msk.bf16.vlgmr.msra.gmra.mxu2 %vm542_vm0, %v4920_v25  ;;  %3837 = vmatmul.msk.bf16.vlgmr.msra.gmra.mxu1 %vm542_vm0, %v4920_v25 }
  0x2e   : > { %1218 = vmatpush.bf16.msrb.mxu1 %v3836_v23 }
  0x34   : > { %3742 = vmatmul.msk.bf16.gmra.mxu0 %vm542_vm0, %v4057_v4  ;;  %3766 = vmatmul.msk.bf16.gmra.mxu3 %vm542_vm0, %v4081_v5  ;;  %v4978_v5 = vld [vmem:[%s4915_s13 + $0x30] sm:$0xff] }
  0x3d   : > { %3846 = vmatmul.msk.bf16.gmra.mxu2 %vm542_vm0, %v4933_v31  ;;  %3838 = vmatmul.msk.bf16.gmra.mxu1 %vm542_vm0, %v4933_v31 }
  0x44   : > { %3743 = vmatmul.msk.bf16.gmra.mxu0 %vm542_vm0, %v4058_v6  ;;  %3767 = vmatmul.msk.bf16.gmra.mxu3 %vm542_vm0, %v4082_v7  ;;  %v4069_v7 = vld [vmem:[%s4871_s27 + $0x68] sm:$0xff] }
  0x4d   : > { %3847 = vmatmul.msk.bf16.gmra.mxu2 %vm542_vm0, %v4942_v37  ;;  %3839 = vmatmul.msk.bf16.gmra.mxu1 %vm542_vm0, %v4942_v37 }
  0x54   : > { %3744 = vmatmul.msk.bf16.gmra.mxu0 %vm542_vm0, %v4059_v8  ;;  %3768 = vmatmul.msk.bf16.gmra.mxu3 %vm542_vm0, %v4083_v9 }
  0x5d   : > { %3848 = vmatmul.msk.bf16.gmra.mxu2 %vm542_vm0, %v4951_v45  ;;  %3840 = vmatmul.msk.bf16.gmra.mxu1 %vm542_vm0, %v4951_v45 }
  0x64   : > { %3745 = vmatmul.msk.bf16.gmra.mxu0 %vm542_vm0, %v4060_v10  ;;  %3769 = vmatmul.msk.bf16.gmra.mxu3 %vm542_vm0, %v4084_v11 }
  0x6d   : > { %3849 = vmatmul.msk.bf16.gmra.mxu2 %vm542_vm0, %v4960_v53  ;;  %3841 = vmatmul.msk.bf16.gmra.mxu1 %vm542_vm0, %v4960_v53 }
  0x74   : > { %3746 = vmatmul.msk.bf16.gmra.mxu0 %vm542_vm0, %v4061_v12  ;;  %3770 = vmatmul.msk.bf16.gmra.mxu3 %vm542_vm0, %v4085_v13  ;;  %v4987_v13 = vld [vmem:[%s4915_s13 + $0x38] sm:$0xff] }
  0x7d   : > { %3850 = vmatmul.msk.bf16.gmra.mxu2 %vm542_vm0, %v4969_v61  ;;  %3842 = vmatmul.msk.bf16.gmra.mxu1 %vm542_vm0, %v4969_v61 }
  0x84   : > { %3747 = vmatmul.msk.bf16.gmra.mxu0 %vm542_vm0, %v4062_v14  ;;  %3771 = vmatmul.msk.bf16.gmra.mxu3 %vm542_vm0, %v4086_v15  ;;  %v3831_v14 = vld [vmem:[%s4903_s10 + $0x28] sm:$0xf]  ;;  %v4105_v15 = vld [vmem:[%s4903_s10 + $0x34] sm:$0xf0] }
  0x85   : > { %v3832_v16 = vor.u32 %v4105_v15, %v3831_v14 }
  0x87   : > { %1169 = vmatpush.bf16.msrb.mxu3 %v3832_v16 }
  0x8d   : > { %3851 = vmatmul.msk.bf16.gmra.mxu2 %vm542_vm0, %v4978_v5  ;;  %3843 = vmatmul.msk.bf16.gmra.mxu1 %vm542_vm0, %v4978_v5 }
  0x94   : > { %3748 = vmatmul.msk.bf16.gmra.mxu0 %vm542_vm0, %v4063_v29  ;;  %3772 = vmatmul.msk.bf16.gmra.mxu3 %vm542_vm0, %v4087_v30  ;;  %v4101_v29 = vld [vmem:[%s4903_s10 + $0x14] sm:$0xf0] }
  0x95   : > { %v3816_v30 = vor.u32 %v4101_v29, %v3815_v28 }
  0x97   : > { %1170 = vmatpush.bf16.msrb.mxu3 %v3816_v30  ;;  %v4074_v30 = vld [vmem:[%s4871_s27 + $0x90] sm:$0xff] }
  0x9d   : > { %3852 = vmatmul.msk.bf16.gmra.mxu2 %vm542_vm0, %v4987_v13  ;;  %3844 = vmatmul.msk.bf16.gmra.mxu1 %vm542_vm0, %v4987_v13 }
  0xa1   : > { %v648_v33 = vpop.f32.mrf.mxu0 }
  0xa4   : > { %3749 = vmatmul.msk.bf16.gmra.mxu0 %vm542_vm0, %v4064_v32  ;;  %3853 = vmatmul.msk.bf16.vlgmr.msrb.gmra.mxu3 %vm542_vm0, %v4920_v25 }
  0xa7   : > { %v768_v34 = vpop.f32.mrf.mxu3 }
  0xa9   : > { %v650_v35 = vpop.f32.mrf.mxu0 }
  0xaa   : > { %v4142_v36 = vpack.c.bf16 %v650_v35, %v648_v33  ;;  %v4071_v33 = vld [vmem:[%s4871_s27 + $0x78] sm:$0xff]  ;;  %v1074_v35 = vpop.f32.mrf.mxu1 }
  0xac   : > { %4143 = vst [vmem:[#allocation2 + $0xb0] sm:$0xff] %v4142_v36  }
  0xaf   : > { %v770_v38 = vpop.f32.mrf.mxu3 }
  0xb0   : > { %v4262_v40 = vpack.c.bf16 %v770_v38, %v768_v34  ;;  %v1123_v36 = vpop.f32.mrf.mxu2 }
  0xb1   : > { %v653_v41 = vpop.f32.mrf.mxu0 }
  0xb2   : > { %4322 = vst [vmem:[#allocation2 + $0xa8] sm:$0xff] %v4262_v40   ;;  %v3817_v40 = vld [vmem:[%s4903_s10 + $0x18] sm:$0xf0] }
  0xb4   : > { %3750 = vmatmul.msk.bf16.gmra.mxu0 %vm542_vm0, %v4065_v39  ;;  %v4099_v39 = vld [vmem:[%s4903_s10 + $0xc] sm:$0xf]  ;;  %3854 = vmatmul.msk.bf16.gmra.mxu3 %vm542_vm0, %v4933_v31  ;;  %s3465_s10 = sshll.u32 %s5464_s23, 4  ;;  %s3466_s10 = int_to_ptr.vmem [resolvable:$true] %s3465_s10 }
  0xb7   : > { %v773_v42 = vpop.f32.mrf.mxu3 }
  0xb9   : > { %v655_v43 = vpop.f32.mrf.mxu0 }
  0xba   : > { %v4147_v44 = vpack.c.bf16 %v655_v43, %v653_v41  ;;  %v3820_v41 = vor.u32 %v4099_v39, %v3817_v40 }
  0xbc   : > { %4299 = vst [vmem:[#allocation2] sm:$0xff] %v4147_v44   ;;  %1219 = vmatpush.bf16.msrb.mxu1 %v3820_v41  ;;  %v1076_v44 = vpop.f32.mrf.mxu1 }
  0xbf   : > { %v775_v46 = vpop.f32.mrf.mxu3  ;;  %3861 = vmatmul.msk.bf16.vlgmr.msrb.gmra.mxu1 %vm542_vm0, %v4920_v25 }
  0xc0   : > { %v4267_v48 = vpack.c.bf16 %v775_v46, %v773_v42  ;;  %v5007_v42 = vpack.c.bf16 %v1123_v36, %v1074_v35  ;;  %v1125_v46 = vpop.f32.mrf.mxu2 }
  0xc1   : > { %v658_v49 = vpop.f32.mrf.mxu0 }
  0xc2   : > { %4323 = vst [vmem:[#allocation2 + $0xd0] sm:$0xff] %v4267_v48   ;;  %v1857_v48 = vunpack.c.h.b16 %v5007_v42 }
  0xc3   : > { %v4107_v23 = vld [vmem:[#allocation2] sm:$0xff] }
  0xc4   : > { %3751 = vmatmul.msk.bf16.gmra.mxu0 %vm542_vm0, %v4066_v47  ;;  %3855 = vmatmul.msk.bf16.gmra.mxu3 %vm542_vm0, %v4942_v37 }
  0xc7   : > { %v778_v50 = vpop.f32.mrf.mxu3 }
  0xc9   : > { %v660_v51 = vpop.f32.mrf.mxu0 }
  0xca   : > { %v4152_v52 = vpack.c.bf16 %v660_v51, %v658_v49  ;;  %v5012_v49 = vpack.c.bf16 %v1125_v46, %v1076_v44 }
  0xcc   : > { %4300 = vst [vmem:[#allocation2 + $0xd8] sm:$0xff] %v4152_v52   ;;  %v1858_v51 = vunpack.c.h.b16 %v5012_v49  ;;  %v1329_v28 = vunpack.c.l.b16 %v5012_v49 }
  0xce   : > { %v5015_v52 = vpack.c.b16 %v1858_v51, %v1857_v48 }
  0xcf   : > { %v780_v54 = vpop.f32.mrf.mxu3  ;;  %3862 = vmatmul.msk.bf16.gmra.mxu1 %vm542_vm0, %v4933_v31 }
  0xd0   : > { %v4272_v56 = vpack.c.bf16 %v780_v54, %v778_v50 }
  0xd1   : > { %v663_v57 = vpop.f32.mrf.mxu0 }
  0xd2   : > { %4324 = vst [vmem:[#allocation2 + $0x10] sm:$0xff] %v4272_v56  }
  0xd3   : > { %v4108_v16 = vld [vmem:[#allocation2 + $0xd8] sm:$0xff] }
  0xd4   : > { %3752 = vmatmul.msk.bf16.gmra.mxu0 %vm542_vm0, %v4067_v55  ;;  %v4072_v55 = vld [vmem:[%s4871_s27 + $0x80] sm:$0xff]  ;;  %3856 = vmatmul.msk.bf16.gmra.mxu3 %vm542_vm0, %v4951_v45 }
  0xd7   : > { %v783_v58 = vpop.f32.mrf.mxu3 }
  0xd9   : > { %v665_v59 = vpop.f32.mrf.mxu0 }
  0xda   : > { %v4157_v60 = vpack.c.bf16 %v665_v59, %v663_v57  ;;  %v1079_v57 = vpop.f32.mrf.mxu1 }
  0xdc   : > { %4301 = vst [vmem:[#allocation2 + $0x18] sm:$0xff] %v4157_v60  }
  0xdf   : > { %v785_v62 = vpop.f32.mrf.mxu3  ;;  %3863 = vmatmul.msk.bf16.gmra.mxu1 %vm542_vm0, %v4942_v37  ;;  %v4106_v37 = vld [vmem:[#allocation2 + $0xb0] sm:$0xff] }
  0xe0   : > { %v4277_v0 = vpack.c.bf16 %v785_v62, %v783_v58  ;;  %v1128_v58 = vpop.f32.mrf.mxu2 }
  0xe1   : > { %v668_v1 = vpop.f32.mrf.mxu0  ;;  %v5021_v60 = vpack.c.bf16 %v1128_v58, %v1079_v57 }
  0xe2   : > { %4325 = vst [vmem:[#allocation2 + $0x28] sm:$0xff] %v4277_v0  }
  0xe3   : > { %v4109_v31 = vld [vmem:[#allocation2 + $0x18] sm:$0xff] }
  0xe4   : > { %3753 = vmatmul.msk.bf16.gmra.mxu0 %vm542_vm0, %v4068_v63  ;;  %v1081_v63 = vpop.f32.mrf.mxu1  ;;  %3857 = vmatmul.msk.bf16.gmra.mxu3 %vm542_vm0, %v4960_v53 }
  0xe7   : > { %v788_v2 = vpop.f32.mrf.mxu3 }
  0xe8   : > { %v1130_v0 = vpop.f32.mrf.mxu2 }
  0xe9   : > { %v670_v3 = vpop.f32.mrf.mxu0  ;;  %v4133_v51 = vld [vmem:[#allocation2 + $0x28] sm:$0xff] }
  0xea   : > { %v4162_v4 = vpack.c.bf16 %v670_v3, %v668_v1  ;;  %v5026_v3 = vpack.c.bf16 %v1130_v0, %v1081_v63 }
  0xec   : > { %4302 = vst [vmem:[#allocation2 + $0x50] sm:$0xff] %v4162_v4  }
  0xef   : > { %v790_v6 = vpop.f32.mrf.mxu3  ;;  %3864 = vmatmul.msk.bf16.gmra.mxu1 %vm542_vm0, %v4951_v45  ;;  %v4075_v45 = vld [vmem:[%s4871_s27 + $0x98] sm:$0xff] }
  0xf0   : > { %v4282_v8 = vpack.c.bf16 %v790_v6, %v788_v2  ;;  %v1859_v2 = vunpack.c.h.b16 %v5021_v60 }
  0xf1   : > { %v673_v9 = vpop.f32.mrf.mxu0 }
  0xf2   : > { %4326 = vst [vmem:[#allocation2 + $0xa0] sm:$0xff] %v4282_v8  }
  0xf4   : > { %3754 = vmatmul.msk.bf16.gmra.mxu0 %vm542_vm0, %v4069_v7  ;;  %v1860_v7 = vunpack.c.h.b16 %v5026_v3  ;;  %3858 = vmatmul.msk.bf16.gmra.mxu3 %vm542_vm0, %v4969_v61 }
  0xf6   : > { %v5029_v8 = vpack.c.b16 %v1860_v7, %v1859_v2 }
  0xf7   : > { %v793_v10 = vpop.f32.mrf.mxu3 }
  0xf9   : > { %v675_v11 = vpop.f32.mrf.mxu0 }
  0xfa   : > { %v4167_v12 = vpack.c.bf16 %v675_v11, %v673_v9  ;;  %v4110_v9 = vld [vmem:[#allocation2 + $0x50] sm:$0xff]  ;;  %v1084_v11 = vpop.f32.mrf.mxu1 }
  0xfc   : > { %4303 = vst [vmem:[#allocation2 + $0x68] sm:$0xff] %v4167_v12   ;;  %v1133_v12 = vpop.f32.mrf.mxu2 }
  0xfd   : > { %v5035_v15 = vpack.c.bf16 %v1133_v12, %v1084_v11  ;;  %v4076_v11 = vld [vmem:[%s4871_s27 + $0xa0] sm:$0xff] }
  0xff   : > { %v795_v17 = vpop.f32.mrf.mxu3  ;;  %3865 = vmatmul.msk.bf16.gmra.mxu1 %vm542_vm0, %v4960_v53 }
 0x100   : > { %v4287_v19 = vpack.c.bf16 %v795_v17, %v793_v10  ;;  %v4073_v10 = vld [vmem:[%s4871_s27 + $0x88] sm:$0xff] }
 0x101   : > { %v678_v20 = vpop.f32.mrf.mxu0 }
 0x102   : > { %4327 = vst [vmem:[#allocation2 + $0xf8] sm:$0xff] %v4287_v19   ;;  %v1086_v17 = vpop.f32.mrf.mxu1 }
 0x103   : > { %v4111_v6 = vld [vmem:[#allocation2 + $0x68] sm:$0xff] }
 0x104   : > { %3755 = vmatmul.msk.bf16.gmra.mxu0 %vm542_vm0, %v4070_v18  ;;  %v1135_v18 = vpop.f32.mrf.mxu2  ;;  %3859 = vmatmul.msk.bf16.gmra.mxu3 %vm542_vm0, %v4978_v5 }
 0x105   : > { %v5040_v21 = vpack.c.bf16 %v1135_v18, %v1086_v17 }
 0x107   : > { %v798_v24 = vpop.f32.mrf.mxu3 }
 0x109   : > { %v680_v26 = vpop.f32.mrf.mxu0  ;;  %v4135_v39 = vld [vmem:[#allocation2 + $0xf8] sm:$0xff] }
 0x10a   : > { %v4172_v27 = vpack.c.bf16 %v680_v26, %v678_v20  ;;  %v1861_v20 = vunpack.c.h.b16 %v5035_v15 }
 0x10c   : > { %4304 = vst [vmem:[#allocation2 + $0x30] sm:$0xff] %v4172_v27   ;;  %v1328_v27 = vunpack.c.l.b16 %v5007_v42 }
 0x10e   : > { %v1344_v35 = vpack.c.b16 %v1329_v28, %v1328_v27  ;;  %v4077_v28 = vld [vmem:[%s4871_s27 + $0xa8] sm:$0xff] }
 0x10f   : > { %v800_v32 = vpop.f32.mrf.mxu3  ;;  %3866 = vmatmul.msk.bf16.gmra.mxu1 %vm542_vm0, %v4969_v61 }
 0x110   : > { %v4292_v34 = vpack.c.bf16 %v800_v32, %v798_v24  ;;  %v1862_v24 = vunpack.c.h.b16 %v5040_v21  ;;  %v1089_v32 = vpop.f32.mrf.mxu1 }
 0x111   : > { %v683_v38 = vpop.f32.mrf.mxu0 }
 0x112   : > { %4328 = vst [vmem:[#allocation2 + $0x20] sm:$0xff] %v4292_v34   ;;  %v5043_v26 = vpack.c.b16 %v1862_v24, %v1861_v20 }
 0x113   : > { %v4112_v62 = vld [vmem:[#allocation2 + $0x30] sm:$0xff] }
 0x114   : > { %3756 = vmatmul.msk.bf16.gmra.mxu0 %vm542_vm0, %v4071_v33  ;;  %v1138_v33 = vpop.f32.mrf.mxu2  ;;  %3860 = vmatmul.msk.bf16.gmra.mxu3 %vm542_vm0, %v4987_v13 }
 0x117   : > { %v803_v43 = vpop.f32.mrf.mxu3 }
 0x118   : > { %v1091_v40 = vpop.f32.mrf.mxu1 }
 0x119   : > { %v685_v47 = vpop.f32.mrf.mxu0  ;;  %v4136_v36 = vld [vmem:[#allocation2 + $0x20] sm:$0xff] }
 0x11a   : > { %v4177_v50 = vpack.c.bf16 %v685_v47, %v683_v38  ;;  %v5051_v38 = vpack.c.bf16 %v1138_v33, %v1089_v32  ;;  %v4134_v47 = vld [vmem:[#allocation2 + $0xa0] sm:$0xff] }
 0x11c   : > { %4305 = vst [vmem:[#allocation2 + $0x48] sm:$0xff] %v4177_v50   ;;  %v1140_v41 = vpop.f32.mrf.mxu2  ;;  %v1330_v50 = vunpack.c.l.b16 %v5021_v60  ;;  %v4131_v60 = vld [vmem:[#allocation2 + $0xd0] sm:$0xff]  ;;  %v1334_v24 = vunpack.c.l.b16 %v5051_v38 }
 0x11d   : > { %v5056_v44 = vpack.c.bf16 %v1140_v41, %v1091_v40 }
 0x11f   : > { %v805_v54 = vpop.f32.mrf.mxu3  ;;  %v1864_v48 = vunpack.c.h.b16 %v5056_v44  ;;  %v1335_v27 = vunpack.c.l.b16 %v5056_v44  ;;  %3867 = vmatmul.msk.bf16.gmra.mxu1 %vm542_vm0, %v4978_v5  ;;  %v4078_v44 = vld [vmem:[%s4871_s27 + $0xb0] sm:$0xff] }
 0x120   : > { %v4297_v56 = vpack.c.bf16 %v805_v54, %v803_v43  ;;  %v1863_v43 = vunpack.c.h.b16 %v5051_v38  ;;  %v1331_v54 = vunpack.c.l.b16 %v5026_v3 }
 0x121   : > { %v688_v59 = vpop.f32.mrf.mxu0  ;;  %v1347_v32 = vpack.c.b16 %v1335_v27, %v1334_v24 }
 0x122   : > { %4329 = vst [vmem:[#allocation2 + $0x98] sm:$0xff] %v4297_v56   ;;  %v5059_v49 = vpack.c.b16 %v1864_v48, %v1863_v43  ;;  %v1345_v58 = vpack.c.b16 %v1331_v54, %v1330_v50 }
 0x123   : > { %v4113_v25 = vld [vmem:[#allocation2 + $0x48] sm:$0xff] }
 0x124   : > { %3757 = vmatmul.msk.bf16.gmra.mxu0 %vm542_vm0, %v4072_v55  ;;  %1408 = vmatpush.bf16.msrb.mxu2 %v4113_v25  ;;  %v1094_v55 = vpop.f32.mrf.mxu1  ;;  %v1143_v56 = vpop.f32.mrf.mxu2 }
 0x125   : > { %v5067_v25 = vpack.c.bf16 %v1143_v56, %v1094_v55 }
 0x128   : > { %1409 = vmatpush.bf16.msrb.mxu2 %v4112_v62 }
 0x129   : > { %v690_v1 = vpop.f32.mrf.mxu0  ;;  %v4137_v29 = vld [vmem:[#allocation2 + $0x98] sm:$0xff] }
 0x12a   : > { %v4182_v4 = vpack.c.bf16 %v690_v1, %v688_v59  ;;  %v4132_v59 = vld [vmem:[#allocation2 + $0x10] sm:$0xff]  ;;  %v1865_v1 = vunpack.c.h.b16 %v5067_v25 }
 0x12c   : > { %4306 = vst [vmem:[#allocation2 + $0x80] sm:$0xff] %v4182_v4   ;;  %1410 = vmatpush.bf16.msrb.mxu2 %v4111_v6  ;;  %v1096_v62 = vpop.f32.mrf.mxu1  ;;  %v1145_v63 = vpop.f32.mrf.mxu2  ;;  %v4130_v6 = vld [vmem:[#allocation2 + $0xa8] sm:$0xff] }
 0x12d   : > { %v1279_v2 = vpack.c.bf16 %v1145_v63, %v1096_v62  ;;  %v4079_v62 = vld [vmem:[%s4871_s27 + $0xb8] sm:$0xff]  ;;  %s4048_s27 = sshll.u32 %s4743_s19, 7 }
 0x12e   : > { %s3462_s30 = sadd.s32 %s4138_s24, %s4048_s27  ;;  %s4681_s27 = scalar_lea.hbm %s6382_s4, 2048 }
 0x12f   : > { %v1866_v4 = vunpack.c.h.b16 %v1279_v2  ;;  %v1337_v43 = vunpack.c.l.b16 %v1279_v2  ;;  %3868 = vmatmul.msk.bf16.gmra.mxu1 %vm542_vm0, %v4987_v13  ;;  %s4049_s18 = sshll.u32 %s3462_s30, 3 }
 0x130   : > { %1411 = vmatpush.bf16.msrb.mxu2 %v4110_v9  ;;  %v1332_v9 = vunpack.c.l.b16 %v5035_v15  ;;  %s3464_s6 = scalar_lea.hbm %s6382_s4, %s4049_s18 }
 0x131   : > { %v693_v14 = vpop.f32.mrf.mxu0  ;;  %v5072_v7 = vpack.c.b16 %v1866_v4, %v1865_v1  ;;  %v1172_v1 = vpop.f32.mrf.mxu3  ;;  %s3467_s9 = sshll.u32 %s3464_s6, 4  ;;  %s3468_s9 = int_to_ptr.hbm [resolvable:$true] %s3467_s9 }
 0x132   : > { %s4675_s12 = sshra.s32 %s3468_s9, 4  ;;  %s4676_s12 = int_to_ptr.hbm [resolvable:$true] %s4675_s12 }
 0x133   : > { %s4677_s13 = scalar_lea.hbm %s4676_s12, 512  ;;  %p4682_p4 = scmp.lt.s32.totalorder %s4676_s12, %s6382_s4 }
 0x134   : > { %3758 = vmatmul.msk.bf16.gmra.mxu0 %vm542_vm0, %v4073_v10  ;;  %1412 = vmatpush.bf16.msrb.mxu2 %v4109_v31  ;;  %v1333_v10 = vunpack.c.l.b16 %v5040_v21  ;;  %v1099_v12 = vpop.f32.mrf.mxu1  ;;  %p4678_p0 = scmp.ne.s32.totalorder %s4676_s12, %s4677_s13  ;;  %p4683_p5 = scmp.lt.s32.totalorder %s4681_s27, %s4677_s13 }
 0x136   : > { %v1346_v31 = vpack.c.b16 %v1333_v10, %v1332_v9  ;;  %p4679_p1 = pnand %p4678_p0, %p4835_p3  ;;  %p4684_p6 = por %p4683_p5, %p4682_p4 }
 0x138   : > { %1413 = vmatpush.bf16.msrb.mxu2 %v4108_v16  ;;  %p4680_p2 = pneg %p4679_p1 }
 0x139   : > { %v695_v19 = vpop.f32.mrf.mxu0 }
 0x13a   : > { %v4187_v22 = vpack.c.bf16 %v695_v19, %v693_v14  ;;  %v1148_v14 = vpop.f32.mrf.mxu2  ;;  %p4685_p7 = pnand %p4684_p6, %p4680_p2 }
 0x13b   : > { %v1281_v16 = vpack.c.bf16 %v1148_v14, %v1099_v12 }
 0x13c   : > { %4307 = vst [vmem:[#allocation2 + $0x88] sm:$0xff] %v4187_v22   ;;  %1414 = vmatpush.bf16.msrb.mxu2 %v4107_v23  ;;  %v1101_v17 = vpop.f32.mrf.mxu1 }
 0x13d   : > { %v1867_v19 = vunpack.c.h.b16 %v1281_v16 }
 0x140   : > { %1415 = vmatpush.bf16.msrb.mxu2 %v4106_v37 }
 0x141   : > { %v698_v34 = vpop.f32.mrf.mxu0 }
 0x142   : > { %v1150_v18 = vpop.f32.mrf.mxu2 }
 0x143   : > { %1416 = vmatmul.bf16.vlgmr.msrb.gmra.mxu2 %v1344_v35  ;;  %v1283_v20 = vpack.c.bf16 %v1150_v18, %v1101_v17 }
 0x144   : > { %3013 = vmatpush.bf16.msra.mxu2 %v4137_v29  ;;  %3759 = vmatmul.msk.bf16.gmra.mxu0 %vm542_vm0, %v4074_v30  ;;  %v1104_v29 = vpop.f32.mrf.mxu1 }
 0x145   : > { %v1868_v22 = vunpack.c.h.b16 %v1283_v20 }
 0x147   : > { %v5082_v23 = vpack.c.b16 %v1868_v22, %v1867_v19 }
 0x148   : > { %3014 = vmatpush.bf16.msra.mxu2 %v4136_v36 }
 0x149   : > { %v700_v42 = vpop.f32.mrf.mxu0 }
 0x14a   : > { %v4192_v46 = vpack.c.bf16 %v700_v42, %v698_v34  ;;  %v1153_v37 = vpop.f32.mrf.mxu2  ;;  %v1336_v42 = vunpack.c.l.b16 %v5067_v25  ;;  %v1338_v25 = vunpack.c.l.b16 %v1281_v16 }
 0x14b   : > { %v1285_v61 = vpack.c.bf16 %v1153_v37, %v1104_v29 }
 0x14c   : > { %3015 = vmatpush.bf16.msra.mxu2 %v4135_v39  ;;  %4308 = vst [vmem:[#allocation2 + $0xe8] sm:$0xff] %v4192_v46   ;;  %v1106_v33 = vpop.f32.mrf.mxu1  ;;  %v1348_v50 = vpack.c.b16 %v1337_v43, %v1336_v42 }
 0x14d   : > { %v1869_v36 = vunpack.c.h.b16 %v1285_v61  ;;  %v1340_v10 = vunpack.c.l.b16 %v1285_v61 }
 0x150   : > { %3016 = vmatpush.bf16.msra.mxu2 %v4134_v47 }
 0x151   : > { %v703_v57 = vpop.f32.mrf.mxu0 }
 0x152   : > { %v1155_v34 = vpop.f32.mrf.mxu2 }
 0x153   : > { %1421 = vmatmul.bf16.gmra.mxu2 %v1345_v58  ;;  %v1287_v38 = vpack.c.bf16 %v1155_v34, %v1106_v33  ;;  %v4116_v43 = vld [vmem:[#allocation2 + $0xe8] sm:$0xff] }
 0x154   : > { %3017 = vmatpush.bf16.msra.mxu2 %v4133_v51  ;;  %3760 = vmatmul.msk.bf16.gmra.mxu0 %vm542_vm0, %v4075_v45  ;;  %v1109_v46 = vpop.f32.mrf.mxu1 }
 0x155   : > { %v1870_v40 = vunpack.c.h.b16 %v1287_v38 }
 0x157   : > { %v5092_v41 = vpack.c.b16 %v1870_v40, %v1869_v36 }
 0x158   : > { %3018 = vmatpush.bf16.msra.mxu2 %v4132_v59 }
 0x159   : > { %v705_v0 = vpop.f32.mrf.mxu0 }
 0x15a   : > { %v4197_v3 = vpack.c.bf16 %v705_v0, %v703_v57  ;;  %v1158_v47 = vpop.f32.mrf.mxu2 }
 0x15b   : > { %v1289_v5 = vpack.c.bf16 %v1158_v47, %v1109_v46  ;;  %v4115_v47 = vld [vmem:[#allocation2 + $0x88] sm:$0xff] }
 0x15c   : > { %3019 = vmatpush.bf16.msra.mxu2 %v4131_v60  ;;  %4309 = vst [vmem:[#allocation2 + $0xb8] sm:$0xff] %v4197_v3   ;;  %v1111_v51 = vpop.f32.mrf.mxu1  ;;  %v1339_v60 = vunpack.c.l.b16 %v1283_v20 }
 0x15d   : > { %v1871_v55 = vunpack.c.h.b16 %v1289_v5  ;;  %v1342_v29 = vunpack.c.l.b16 %v1289_v5  ;;  %v1293_v5 = vlaneseq }
 0x15e   : > { %v1349_v0 = vpack.c.b16 %v1339_v60, %v1338_v25 }
 0x15f   : > { %v5109_v25 = vand.u32 127, %v1293_v5 }
 0x160   : > { %3020 = vmatpush.bf16.msra.mxu2 %v4130_v6  ;;  %v1174_v6 = vpop.f32.mrf.mxu3 }
 0x161   : > { %v708_v53 = vpop.f32.mrf.mxu0  ;;  %vm1295_vm1 = vcmp.lt.s32.totalorder %v5109_v25, 8 }
 0x162   : > { %v1160_v54 = vpop.f32.mrf.mxu2 }
 0x163   : > { %1426 = vmatmul.bf16.gmra.mxu2 %v1346_v31  ;;  %v1291_v56 = vpack.c.bf16 %v1160_v54, %v1111_v51 }
 0x164   : > { %3761 = vmatmul.msk.bf16.gmra.mxu0 %vm542_vm0, %v4076_v11  ;;  %v1221_v2 = vpop.f32.mrf.mxu1  ;;  %v1341_v11 = vunpack.c.l.b16 %v1287_v38  ;;  %v4117_v38 = vld [vmem:[#allocation2 + $0xb8] sm:$0xff] }
 0x165   : > { %v1872_v58 = vunpack.c.h.b16 %v1291_v56  ;;  %v1262_v4 = vpack.c.bf16 %v1221_v2, %v1172_v1  ;;  %v1343_v37 = vunpack.c.l.b16 %v1291_v56 }
 0x166   : > { %v1350_v16 = vpack.c.b16 %v1341_v11, %v1340_v10 }
 0x167   : > { %v5101_v59 = vpack.c.b16 %v1872_v58, %v1871_v55  ;;  %v2403_v12 = vunpack.c.l.b16 %v1262_v4 }
 0x169   : > { %v710_v15 = vpop.f32.mrf.mxu0 }
 0x16a   : > { %v4202_v21 = vpack.c.bf16 %v710_v15, %v708_v53  ;;  %v1177_v15 = vpop.f32.mrf.mxu3 }
 0x16c   : > { %4310 = vst [vmem:[#allocation2 + $0x60] sm:$0xff] %v4202_v21   ;;  %v1223_v9 = vpop.f32.mrf.mxu1 }
 0x16d   : > { %v1264_v14 = vpack.c.bf16 %v1223_v9, %v1174_v6 }
 0x16f   : > { %v2404_v31 = vunpack.c.l.b16 %v1264_v14 }
 0x171   : > { %v713_v30 = vpop.f32.mrf.mxu0  ;;  %v5105_v18 = vpack.c.b16 %v2404_v31, %v2403_v12 }
 0x172   : > { %v1179_v27 = vpop.f32.mrf.mxu3 }
 0x173   : > { %1431 = vmatmul.bf16.gmra.mxu2 %v1347_v32  ;;  %v4118_v32 = vld [vmem:[#allocation2 + $0x60] sm:$0xff] }
 0x174   : > { %3762 = vmatmul.msk.bf16.gmra.mxu0 %vm542_vm0, %v4077_v28  ;;  %v1226_v19 = vpop.f32.mrf.mxu1 }
 0x179   : > { %v715_v35 = vpop.f32.mrf.mxu0 }
 0x17a   : > { %v4207_v39 = vpack.c.bf16 %v715_v35, %v713_v30  ;;  %v1266_v30 = vpack.c.bf16 %v1226_v19, %v1177_v15  ;;  %v1351_v35 = vpack.c.b16 %v1343_v37, %v1342_v29  ;;  %v1182_v40 = vpop.f32.mrf.mxu3 }
 0x17c   : > { %4311 = vst [vmem:[#allocation2 + $0xf0] sm:$0xff] %v4207_v39   ;;  %v1228_v28 = vpop.f32.mrf.mxu1  ;;  %v2405_v61 = vunpack.c.l.b16 %v1266_v30  ;;  %v2935_v6 = vunpack.c.h.b16 %v1266_v30 }
 0x17d   : > { %v1268_v33 = vpack.c.bf16 %v1228_v28, %v1179_v27 }
 0x17f   : > { %v2406_v36 = vunpack.c.l.b16 %v1268_v33  ;;  %v2936_v9 = vunpack.c.h.b16 %v1268_v33 }
 0x181   : > { %v718_v48 = vpop.f32.mrf.mxu0  ;;  %v5107_v39 = vpack.c.b16 %v2406_v36, %v2405_v61 }
 0x182   : > { %v1184_v51 = vpop.f32.mrf.mxu3 }
 0x183   : > { %1436 = vmatmul.bf16.gmra.mxu2 %v1348_v50  ;;  %v4119_v24 = vld [vmem:[#allocation2 + $0xf0] sm:$0xff]  ;;  %v2934_v50 = vunpack.c.h.b16 %v1264_v14 }
 0x184   : > { %3763 = vmatmul.msk.bf16.gmra.mxu0 %vm542_vm0, %v4078_v44  ;;  %v1231_v42 = vpop.f32.mrf.mxu1 }
 0x185   : > { %v1270_v55 = vpack.c.bf16 %v1231_v42, %v1182_v40 }
 0x187   : > { %v2407_v60 = vunpack.c.l.b16 %v1270_v55  ;;  %v2937_v29 = vunpack.c.h.b16 %v1270_v55 }
 0x189   : > { %v720_v45 = vpop.f32.mrf.mxu0 }
 0x18a   : > { %v4212_v57 = vpack.c.bf16 %v720_v45, %v718_v48  ;;  %v2933_v48 = vunpack.c.h.b16 %v1262_v4  ;;  %v4114_v45 = vld [vmem:[#allocation2 + $0x80] sm:$0xff] }
 0x18c   : > { %4312 = vst [vmem:[#allocation2 + $0x8] sm:$0xff] %v4212_v57   ;;  %v1233_v54 = vpop.f32.mrf.mxu1  ;;  %v2949_v56 = vpack.c.b16 %v2934_v50, %v2933_v48 }
 0x18d   : > { %v1272_v57 = vpack.c.bf16 %v1233_v54, %v1184_v51 }
 0x18f   : > { %v2938_v37 = vunpack.c.h.b16 %v1272_v57 }
 0x191   : > { %v723_v63 = vpop.f32.mrf.mxu0 }
 0x193   : > { %1441 = vmatmul.bf16.gmra.mxu2 %v1349_v0  ;;  %v4120_v20 = vld [vmem:[#allocation2 + $0x8] sm:$0xff] }
 0x194   : > { %3764 = vmatmul.msk.bf16.gmra.mxu0 %vm542_vm0, %v4079_v62  ;;  %v2408_v62 = vunpack.c.l.b16 %v1272_v57  ;;  %v1236_v0 = vpop.f32.mrf.mxu1 }
 0x196   : > { %v5113_v1 = vpack.c.b16 %v2408_v62, %v2407_v60 }
 0x199   : > { %v725_v3 = vpop.f32.mrf.mxu0 }
 0x19a   : > { %v4217_v13 = vpack.c.bf16 %v725_v3, %v723_v63  ;;  %v1187_v63 = vpop.f32.mrf.mxu3 }
 0x19b   : > { %v1274_v12 = vpack.c.bf16 %v1236_v0, %v1187_v63 }
 0x19c   : > { %4313 = vst [vmem:[#allocation2 + $0x78] sm:$0xff] %v4217_v13   ;;  %v1238_v10 = vpop.f32.mrf.mxu1 }
 0x19d   : > { %v2939_v5 = vunpack.c.h.b16 %v1274_v12 }
 0x1a1   : > { %v728_v53 = vpop.f32.mrf.mxu0 }
 0x1a3   : > { %v4121_v17 = vld [vmem:[#allocation2 + $0x78] sm:$0xff]  ;;  %1446 = vmatmul.bf16.gmra.mxu2 %v1350_v16 }
 0x1a4   : > { %1937 = vmatpush.bf16.msra.mxu3 %v4121_v17  ;;  %v2409_v17 = vunpack.c.l.b16 %v1274_v12 }
 0x1a8   : > { %1938 = vmatpush.bf16.msra.mxu3 %v4120_v20  ;;  %v1241_v20 = vpop.f32.mrf.mxu1 }
 0x1a9   : > { %v730_v21 = vpop.f32.mrf.mxu0 }
 0x1aa   : > { %v4222_v22 = vpack.c.bf16 %v730_v21, %v728_v53  ;;  %v2950_v53 = vpack.c.b16 %v2936_v9, %v2935_v6 }
 0x1ac   : > { %4314 = vst [vmem:[#allocation2 + $0x38] sm:$0xff] %v4222_v22   ;;  %1939 = vmatpush.bf16.msra.mxu3 %v4119_v24 }
 0x1b0   : > { %1940 = vmatpush.bf16.msra.mxu3 %v4118_v32  ;;  %v1243_v32 = vpop.f32.mrf.mxu1 }
 0x1b1   : > { %v733_v34 = vpop.f32.mrf.mxu0 }
 0x1b3   : > { %1451 = vmatmul.bf16.gmra.mxu2 %v1351_v35 }
 0x1b4   : > { %1941 = vmatpush.bf16.msra.mxu3 %v4117_v38 }
 0x1b8   : > { %1942 = vmatpush.bf16.msra.mxu3 %v4116_v43  ;;  %v1246_v43 = vpop.f32.mrf.mxu1 }
 0x1b9   : > { %v735_v44 = vpop.f32.mrf.mxu0 }
 0x1ba   : > { %v4227_v46 = vpack.c.bf16 %v735_v44, %v733_v34  ;;  %v2951_v34 = vpack.c.b16 %v2938_v37, %v2937_v29 }
 0x1bc   : > { %4315 = vst [vmem:[#allocation2 + $0x58] sm:$0xff] %v4227_v46   ;;  %1943 = vmatpush.bf16.msra.mxu3 %v4115_v47 }
 0x1c0   : > { %1944 = vmatpush.bf16.msra.mxu3 %v4114_v45  ;;  %v1248_v45 = vpop.f32.mrf.mxu1 }
 0x1c1   : > { %v738_v58 = vpop.f32.mrf.mxu0 }
 0x1c3   : > { %1945 = vmatmul.bf16.vlgmr.msra.gmra.mxu3 %v5015_v52  ;;  %3021 = vmatmul.bf16.vlgmr.msra.gmra.mxu2 %v2949_v56  ;;  %v1189_v52 = vpop.f32.mrf.mxu3 }
 0x1c4   : > { %v1276_v31 = vpack.c.bf16 %v1238_v10, %v1189_v52 }
 0x1c6   : > { %v1417_v2 = vpop.f32.mrf.mxu2  ;;  %v2410_v15 = vunpack.c.l.b16 %v1276_v31  ;;  %v2940_v51 = vunpack.c.h.b16 %v1276_v31 }
 0x1c7   : > { %v5117_v3 = vsel %vm1295_vm1, %v1417_v2, -1e+30 }
 0x1c8   : > { %1473 = vmax.xlane.f32.xlu0 %v5117_v3  ;;  %v5126_v21 = vpack.c.b16 %v2410_v15, %v2409_v17  ;;  %v2952_v57 = vpack.c.b16 %v2940_v51, %v2939_v5  ;;  %v1251_v2 = vpop.f32.mrf.mxu1 }
 0x1c9   : > { %v740_v13 = vpop.f32.mrf.mxu0 }
 0x1ca   : > { %v4232_v4 = vpack.c.bf16 %v740_v13, %v738_v58 }
 0x1cb   : > { %v1192_v19 = vpop.f32.mrf.mxu3 }
 0x1cc   : > { %4316 = vst [vmem:[#allocation2 + $0x40] sm:$0xff] %v4232_v4   ;;  %v1278_v61 = vpack.c.bf16 %v1241_v20, %v1192_v19 }
 0x1ce   : > { %v1419_v11 = vpop.f32.mrf.mxu2  ;;  %v2411_v38 = vunpack.c.l.b16 %v1278_v61  ;;  %v2941_v10 = vunpack.c.h.b16 %v1278_v61 }
 0x1cf   : > { %v5122_v14 = vsel %vm1295_vm1, %v1419_v11, -1e+30 }
 0x1d0   : > { %1475 = vmax.xlane.f32.xlu0 %v5122_v14 }
 0x1d1   : > { %v743_v16 = vpop.f32.mrf.mxu0 }
 0x1d3   : > { %1950 = vmatmul.bf16.gmra.mxu3 %v5029_v8  ;;  %3026 = vmatmul.bf16.gmra.mxu2 %v2950_v53  ;;  %v1194_v30 = vpop.f32.mrf.mxu3  ;;  %v1253_v53 = vpop.f32.mrf.mxu1 }
 0x1d4   : > { %v1280_v35 = vpack.c.bf16 %v1243_v32, %v1194_v30 }
 0x1d6   : > { %v1422_v22 = vpop.f32.mrf.mxu2  ;;  %v2412_v40 = vunpack.c.l.b16 %v1280_v35  ;;  %v2942_v11 = vunpack.c.h.b16 %v1280_v35 }
 0x1d7   : > { %v5130_v24 = vsel %vm1295_vm1, %v1422_v22, -1e+30 }
 0x1d8   : > { %1477 = vmax.xlane.f32.xlu1 %v5130_v24  ;;  %v5139_v44 = vpack.c.b16 %v2412_v40, %v2411_v38  ;;  %v2953_v17 = vpack.c.b16 %v2942_v11, %v2941_v10 }
 0x1d9   : > { %v745_v27 = vpop.f32.mrf.mxu0 }
 0x1da   : > { %v4237_v28 = vpack.c.bf16 %v745_v27, %v743_v16 }
 0x1db   : > { %v1197_v42 = vpop.f32.mrf.mxu3 }
 0x1dc   : > { %4317 = vst [vmem:[#allocation2 + $0xc8] sm:$0xff] %v4237_v28   ;;  %v1282_v55 = vpack.c.bf16 %v1246_v43, %v1197_v42  ;;  %v1256_v28 = vpop.f32.mrf.mxu1 }
 0x1de   : > { %v1424_v8 = vpop.f32.mrf.mxu2  ;;  %v2413_v62 = vunpack.c.l.b16 %v1282_v55  ;;  %v2943_v61 = vunpack.c.h.b16 %v1282_v55 }
 0x1df   : > { %v5135_v33 = vsel %vm1295_vm1, %v1424_v8, -1e+30 }
 0x1e0   : > { %1479 = vmax.xlane.f32.xlu1 %v5135_v33 }
 0x1e1   : > { %v748_v36 = vpop.f32.mrf.mxu0 }
 0x1e3   : > { %1955 = vmatmul.bf16.gmra.mxu3 %v5043_v26  ;;  %3031 = vmatmul.bf16.gmra.mxu2 %v2951_v34  ;;  %v1199_v54 = vpop.f32.mrf.mxu3 }
 0x1e4   : > { %v1284_v58 = vpack.c.bf16 %v1248_v45, %v1199_v54 }
 0x1e6   : > { %v1427_v46 = vpop.f32.mrf.mxu2  ;;  %v2414_v63 = vunpack.c.l.b16 %v1284_v58  ;;  %v2944_v34 = vunpack.c.h.b16 %v1284_v58 }
 0x1e7   : > { %v5143_v47 = vsel %vm1295_vm1, %v1427_v46, -1e+30 }
 0x1e8   : > { %1481 = vmax.xlane.f32.xlu2 %v5143_v47  ;;  %v5152_v13 = vpack.c.b16 %v2414_v63, %v2413_v62  ;;  %v2954_v42 = vpack.c.b16 %v2944_v34, %v2943_v61 }
 0x1e9   : > { %v750_v48 = vpop.f32.mrf.mxu0 }
 0x1ea   : > { %v4242_v50 = vpack.c.bf16 %v750_v48, %v748_v36  ;;  %v1258_v36 = vpop.f32.mrf.mxu1 }
 0x1eb   : > { %v1202_v0 = vpop.f32.mrf.mxu3 }
 0x1ec   : > { %4318 = vst [vmem:[#allocation2 + $0xe0] sm:$0xff] %v4242_v50   ;;  %v1286_v31 = vpack.c.bf16 %v1251_v2, %v1202_v0 }
 0x1ee   : > { %v1429_v26 = vpop.f32.mrf.mxu2  ;;  %v2415_v20 = vunpack.c.l.b16 %v1286_v31  ;;  %v2945_v55 = vunpack.c.h.b16 %v1286_v31  ;;  %v4124_v31 = vld [vmem:[#allocation2 + $0x40] sm:$0xff] }
 0x1ef   : > { %v5148_v56 = vsel %vm1295_vm1, %v1429_v26, -1e+30 }
 0x1f0   : > { %1483 = vmax.xlane.f32.xlu2 %v5148_v56 }
 0x1f1   : > { %v753_v60 = vpop.f32.mrf.mxu0 }
 0x1f3   : > { %1960 = vmatmul.bf16.gmra.mxu3 %v5059_v49  ;;  %3036 = vmatmul.bf16.gmra.mxu2 %v2952_v57  ;;  %v1204_v12 = vpop.f32.mrf.mxu3  ;;  %v4126_v11 = vld [vmem:[#allocation2 + $0xe0] sm:$0xff] }
 0x1f4   : > { %v1288_v15 = vpack.c.bf16 %v1253_v53, %v1204_v12  ;;  %v4125_v53 = vld [vmem:[#allocation2 + $0xc8] sm:$0xff] }
 0x1f6   : > { %v1432_v4 = vpop.f32.mrf.mxu2  ;;  %v2416_v22 = vunpack.c.l.b16 %v1288_v15  ;;  %v2946_v57 = vunpack.c.h.b16 %v1288_v15  ;;  %v4123_v15 = vld [vmem:[#allocation2 + $0x58] sm:$0xff] }
 0x1f7   : > { %v5156_v6 = vsel %vm1295_vm1, %v1432_v4, -1e+30 }
 0x1f8   : > { %1485 = vmax.xlane.f32.xlu0 %v5156_v6  ;;  %v5165_v29 = vpack.c.b16 %v2416_v22, %v2415_v20 }
 0x1f9   : > { %v755_v9 = vpop.f32.mrf.mxu0 }
 0x1fa   : > { %v4247_v52 = vpack.c.bf16 %v755_v9, %v753_v60 }
 0x1fb   : > { %v1207_v27 = vpop.f32.mrf.mxu3 }
 0x1fc   : > { %4319 = vst [vmem:[#allocation2 + $0x90] sm:$0xff] %v4247_v52   ;;  %v1290_v38 = vpack.c.bf16 %v1256_v28, %v1207_v27  ;;  %v4122_v28 = vld [vmem:[#allocation2 + $0x38] sm:$0xff] }
 0x1fe   : > { %v1434_v49 = vpop.f32.mrf.mxu2  ;;  %v2417_v48 = vunpack.c.l.b16 %v1290_v38  ;;  %v2947_v9 = vunpack.c.h.b16 %v1290_v38 }
 0x1ff   : > { %v5161_v16 = vsel %vm1295_vm1, %v1434_v49, -1e+30 }
 0x200   : > { %1487 = vmax.xlane.f32.xlu1 %v5161_v16 }
 0x201   : > { %v758_v19 = vpop.f32.mrf.mxu0 }
 0x203   : > { %1965 = vmatmul.bf16.gmra.mxu3 %v5072_v7  ;;  %3041 = vmatmul.bf16.gmra.mxu2 %v2953_v17  ;;  %v1209_v35 = vpop.f32.mrf.mxu3  ;;  %v4127_v4 = vld [vmem:[#allocation2 + $0x90] sm:$0xff] }
 0x204   : > { %v1292_v43 = vpack.c.bf16 %v1258_v36, %v1209_v35 }
 0x206   : > { %v1437_v37 = vpop.f32.mrf.mxu2  ;;  %v2418_v50 = vunpack.c.l.b16 %v1292_v43  ;;  %v2948_v52 = vunpack.c.h.b16 %v1292_v43 }
 0x207   : > { %v5169_v30 = vsel %vm1295_vm1, %v1437_v37, -1e+30 }
 0x208   : > { %1489 = vmax.xlane.f32.xlu2 %v5169_v30  ;;  %v5178_v5 = vpack.c.b16 %v2418_v50, %v2417_v48  ;;  %v2956_v12 = vpack.c.b16 %v2948_v52, %v2947_v9 }
 0x209   : > { %v760_v32 = vpop.f32.mrf.mxu0 }
 0x20a   : > { %v4252_v8 = vpack.c.bf16 %v760_v32, %v758_v19 }
 0x20c   : > { %4320 = vst [vmem:[#allocation2 + $0x70] sm:$0xff] %v4252_v8  }
 0x20e   : > { %v1439_v7 = vpop.f32.mrf.mxu2 }
 0x20f   : > { %v5174_v40 = vsel %vm1295_vm1, %v1439_v7, -1e+30 }
 0x210   : > { %1491 = vmax.xlane.f32.xlu0 %v5174_v40 }
 0x211   : > { %v763_v46 = vpop.f32.mrf.mxu0 }
 0x213   : > { %1970 = vmatmul.bf16.gmra.mxu3 %v5082_v23  ;;  %3046 = vmatmul.bf16.gmra.mxu2 %v2954_v42  ;;  %v2955_v23 = vpack.c.b16 %v2946_v57, %v2945_v55  ;;  %v4128_v0 = vld [vmem:[#allocation2 + $0x70] sm:$0xff] }
 0x216   : > { %v1442_v51 = vpop.f32.mrf.mxu2 }
 0x217   : > { %v5182_v54 = vsel %vm1295_vm1, %v1442_v51, -1e+30 }
 0x218   : > { %1493 = vmax.xlane.f32.xlu1 %v5182_v54 }
 0x219   : > { %v765_v45 = vpop.f32.mrf.mxu0 }
 0x21a   : > { %v4257_v26 = vpack.c.bf16 %v765_v45, %v763_v46 }
 0x21c   : > { %4321 = vst [vmem:[#allocation2 + $0xc0] sm:$0xff] %v4257_v26  }
 0x21e   : > { %v1444_v58 = vpop.f32.mrf.mxu2 }
 0x21f   : > { %v5187_v60 = vsel %vm1295_vm1, %v1444_v58, -1e+30 }
 0x220   : > { %1495 = vmax.xlane.f32.xlu2 %v5187_v60 }
 0x223   : > { %v4129_v62 = vld [vmem:[#allocation2 + $0xc0] sm:$0xff]  ;;  %1975 = vmatmul.bf16.gmra.mxu3 %v5092_v41  ;;  %3051 = vmatmul.bf16.gmra.mxu2 %v2955_v23 }
 0x224   : > { %2483 = vmatpush.bf16.msra.mxu1 %v4129_v62 }
 0x226   : > { %v1447_v63 = vpop.f32.mrf.mxu2 }
 0x227   : > { %v5193_v2 = vsel %vm1295_vm1, %v1447_v63, -1e+30 }
 0x228   : > { %2484 = vmatpush.bf16.msra.mxu1 %v4128_v0  ;;  %1497 = vmax.xlane.f32.xlu0 %v5193_v2 }
 0x22c   : > { %2485 = vmatpush.bf16.msra.mxu1 %v4127_v4 }
 0x22e   : > { %v1449_v10 = vpop.f32.mrf.mxu2 }
 0x22f   : > { %v5198_v41 = vsel %vm1295_vm1, %v1449_v10, -1e+30 }
 0x230   : > { %2486 = vmatpush.bf16.msra.mxu1 %v4126_v11  ;;  %1499 = vmax.xlane.f32.xlu1 %v5198_v41 }
 0x233   : > { %1980 = vmatmul.bf16.gmra.mxu3 %v5101_v59  ;;  %3056 = vmatmul.bf16.gmra.mxu2 %v2956_v12 }
 0x234   : > { %2487 = vmatpush.bf16.msra.mxu1 %v4125_v53 }
 0x236   : > { %v1452_v49 = vpop.f32.mrf.mxu2 }
 0x237   : > { %v5204_v17 = vsel %vm1295_vm1, %v1452_v49, -1e+30 }
 0x238   : > { %2488 = vmatpush.bf16.msra.mxu1 %v4124_v31  ;;  %1501 = vmax.xlane.f32.xlu2 %v5204_v17 }
 0x23b   : > { %v1474_v19 = vpop.xlane.xlu0 %1473 }
 0x23c   : > { %v1505_v20 = vsub.f32 %v5117_v3, %v1474_v19  ;;  %2489 = vmatpush.bf16.msra.mxu1 %v4123_v15 }
 0x23e   : > { %v1521_v22 = vmul.f32 1.442695, %v1505_v20  ;;  %v1454_v27 = vpop.f32.mrf.mxu2 }
 0x23f   : > { %v5210_v59 = vsel %vm1295_vm1, %v1454_v27, -1e+30 }
 0x240   : > { %4405 = vpow2.f32 %v1521_v22  ;;  %2490 = vmatpush.bf16.msra.mxu1 %v4122_v28  ;;  %1503 = vmax.xlane.f32.xlu0 %v5210_v59 }
 0x243   : > { %v1476_v37 = vpop.xlane.xlu0 %1475  ;;  %2491 = vmatmul.bf16.vlgmr.msra.gmra.mxu1 %v5105_v18 }
 0x244   : > { %v1506_v32 = vsub.f32 %v5122_v14, %v1476_v37 }
 0x246   : > { %v5215_v8 = vpop.eup %4405  ;;  %v1523_v3 = vmul.f32 1.442695, %v1506_v32  ;;  %v1946_v61 = vpop.f32.mrf.mxu3 }
 0x247   : > { %v3022_v34 = vpop.f32.mrf.mxu2  ;;  %1553 = vadd.xlane.f32.xlu1 %v5215_v8  ;;  %v5220_v35 = vsel %vm1295_vm1, %v1946_v61, -1e+30 }
 0x248   : > { %4407 = vpow2.f32 %v1523_v3  ;;  %2002 = vmax.xlane.f32.xlu2 %v5220_v35  ;;  %v5228_v42 = vsel %vm1295_vm1, %v3022_v34, -1e+30 }
 0x24b   : > { %v1478_v36 = vpop.xlane.xlu1 %1477 }
 0x24c   : > { %v1507_v7 = vsub.f32 %v5130_v24, %v1478_v36 }
 0x24e   : > { %v5224_v18 = vpop.eup %4407  ;;  %v1525_v14 = vmul.f32 1.442695, %v1507_v7  ;;  %v1948_v38 = vpop.f32.mrf.mxu3 }
 0x24f   : > { %v3024_v43 = vpop.f32.mrf.mxu2  ;;  %3078 = vmax.xlane.f32.xlu1 %v5228_v42  ;;  %v5233_v46 = vsel %vm1295_vm1, %v1948_v38, -1e+30 }
 0x250   : > { %4409 = vpow2.f32 %v1525_v14  ;;  %1555 = vadd.xlane.f32.xlu2 %v5224_v18  ;;  %2004 = vmax.xlane.f32.xlu0 %v5233_v46  ;;  %v5249_v57 = vsel %vm1295_vm1, %v3024_v43, -1e+30 }
 0x253   : > { %v1480_v24 = vpop.xlane.xlu1 %1479  ;;  %2496 = vmatmul.bf16.gmra.mxu1 %v5107_v39 }
 0x254   : > { %v1508_v48 = vsub.f32 %v5135_v33, %v1480_v24 }
 0x256   : > { %v5239_v50 = vpop.eup %4409  ;;  %v1527_v51 = vmul.f32 1.442695, %v1508_v48  ;;  %v1951_v45 = vpop.f32.mrf.mxu3 }
 0x257   : > { %v3027_v26 = vpop.f32.mrf.mxu2  ;;  %v5243_v55 = vsel %vm1295_vm1, %v1951_v45, -1e+30 }
 0x258   : > { %4411 = vpow2.f32 %v1527_v51  ;;  %1557 = vadd.xlane.f32.xlu0 %v5239_v50  ;;  %2006 = vmax.xlane.f32.xlu1 %v5243_v55  ;;  %v5261_v4 = vsel %vm1295_vm1, %v3027_v26, -1e+30 }
 0x259   : > { %3080 = vmax.xlane.f32.xlu2 %v5249_v57 }
 0x25b   : > { %v1482_v39 = vpop.xlane.xlu2 %1481 }
 0x25c   : > { %v1509_v33 = vsub.f32 %v5143_v47, %v1482_v39 }
 0x25e   : > { %v5253_v58 = vpop.eup %4411  ;;  %v1529_v23 = vmul.f32 1.442695, %v1509_v33  ;;  %v1953_v62 = vpop.f32.mrf.mxu3 }
 0x25f   : > { %v3029_v63 = vpop.f32.mrf.mxu2  ;;  %v5257_v0 = vsel %vm1295_vm1, %v1953_v62, -1e+30 }
 0x260   : > { %4413 = vpow2.f32 %v1529_v23  ;;  %1559 = vadd.xlane.f32.xlu1 %v5253_v58  ;;  %3082 = vmax.xlane.f32.xlu0 %v5261_v4  ;;  %v5276_v49 = vsel %vm1295_vm1, %v3029_v63, -1e+30 }
 0x261   : > { %2008 = vmax.xlane.f32.xlu2 %v5257_v0 }
 0x263   : > { %v1484_v47 = vpop.xlane.xlu2 %1483  ;;  %2501 = vmatmul.bf16.gmra.mxu1 %v5113_v1 }
 0x264   : > { %v1510_v9 = vsub.f32 %v5148_v56, %v1484_v47 }
 0x266   : > { %v5268_v52 = vpop.eup %4413  ;;  %v1531_v10 = vmul.f32 1.442695, %v1510_v9  ;;  %v1956_v11 = vpop.f32.mrf.mxu3 }
 0x267   : > { %v3032_v12 = vpop.f32.mrf.mxu2  ;;  %v5272_v53 = vsel %vm1295_vm1, %v1956_v11, -1e+30 }
 0x268   : > { %4415 = vpow2.f32 %v1531_v10  ;;  %2010 = vmax.xlane.f32.xlu0 %v5272_v53  ;;  %3084 = vmax.xlane.f32.xlu1 %v5276_v49  ;;  %v5292_v27 = vsel %vm1295_vm1, %v3032_v12, -1e+30 }
 0x269   : > { %1561 = vadd.xlane.f32.xlu2 %v5268_v52 }
 0x26b   : > { %v1486_v1 = vpop.xlane.xlu0 %1485 }
 0x26c   : > { %v1511_v56 = vsub.f32 %v5156_v6, %v1486_v1 }
 0x26e   : > { %v5282_v31 = vpop.eup %4415  ;;  %v1533_v15 = vmul.f32 1.442695, %v1511_v56  ;;  %v1958_v19 = vpop.f32.mrf.mxu3 }
 0x26f   : > { %v3034_v20 = vpop.f32.mrf.mxu2  ;;  %v5286_v22 = vsel %vm1295_vm1, %v1958_v19, -1e+30 }
 0x270   : > { %4417 = vpow2.f32 %v1533_v15  ;;  %1563 = vadd.xlane.f32.xlu0 %v5282_v31  ;;  %2012 = vmax.xlane.f32.xlu1 %v5286_v22  ;;  %v5305_v36 = vsel %vm1295_vm1, %v3034_v20, -1e+30 }
 0x271   : > { %3086 = vmax.xlane.f32.xlu2 %v5292_v27 }
 0x273   : > { %v1488_v6 = vpop.xlane.xlu1 %1487  ;;  %2506 = vmatmul.bf16.gmra.mxu1 %v5126_v21 }
 0x274   : > { %v1512_v28 = vsub.f32 %v5161_v16, %v1488_v6 }
 0x276   : > { %v5297_v37 = vpop.eup %4417  ;;  %v1535_v32 = vmul.f32 1.442695, %v1512_v28  ;;  %v1961_v3 = vpop.f32.mrf.mxu3 }
 0x277   : > { %v3037_v61 = vpop.f32.mrf.mxu2  ;;  %v5301_v34 = vsel %vm1295_vm1, %v1961_v3, -1e+30 }
 0x278   : > { %4419 = vpow2.f32 %v1535_v32  ;;  %1565 = vadd.xlane.f32.xlu1 %v5297_v37  ;;  %3088 = vmax.xlane.f32.xlu0 %v5305_v36  ;;  %v5319_v48 = vsel %vm1295_vm1, %v3037_v61, -1e+30 }
 0x279   : > { %2014 = vmax.xlane.f32.xlu2 %v5301_v34 }
 0x27b   : > { %v1490_v21 = vpop.xlane.xlu2 %1489 }
 0x27c   : > { %v1513_v16 = vsub.f32 %v5169_v30, %v1490_v21 }
 0x27e   : > { %v5311_v7 = vpop.eup %4419  ;;  %v1537_v14 = vmul.f32 1.442695, %v1513_v16  ;;  %v1963_v38 = vpop.f32.mrf.mxu3 }
 0x27f   : > { %v3039_v43 = vpop.f32.mrf.mxu2  ;;  %v5315_v24 = vsel %vm1295_vm1, %v1963_v38, -1e+30 }
 0x280   : > { %4421 = vpow2.f32 %v1537_v14  ;;  %2016 = vmax.xlane.f32.xlu0 %v5315_v24  ;;  %3090 = vmax.xlane.f32.xlu1 %v5319_v48  ;;  %v5336_v62 = vsel %vm1295_vm1, %v3039_v43, -1e+30 }
 0x281   : > { %1567 = vadd.xlane.f32.xlu2 %v5311_v7 }
 0x283   : > { %v1492_v30 = vpop.xlane.xlu0 %1491  ;;  %2511 = vmatmul.bf16.gmra.mxu1 %v5139_v44 }
 0x284   : > { %v1514_v51 = vsub.f32 %v5174_v40, %v1492_v30 }
 0x286   : > { %v5326_v45 = vpop.eup %4421  ;;  %v1539_v26 = vmul.f32 1.442695, %v1514_v51  ;;  %v1966_v39 = vpop.f32.mrf.mxu3 }
 0x287   : > { %v3042_v33 = vpop.f32.mrf.mxu2  ;;  %v5330_v23 = vsel %vm1295_vm1, %v1966_v39, -1e+30 }
 0x288   : > { %4423 = vpow2.f32 %v1539_v26  ;;  %1569 = vadd.xlane.f32.xlu0 %v5326_v45  ;;  %2018 = vmax.xlane.f32.xlu1 %v5330_v23  ;;  %v5348_v12 = vsel %vm1295_vm1, %v3042_v33, -1e+30 }
 0x289   : > { %3092 = vmax.xlane.f32.xlu2 %v5336_v62 }
 0x28b   : > { %v1494_v44 = vpop.xlane.xlu1 %1493 }
 0x28c   : > { %v1515_v40 = vsub.f32 %v5182_v54, %v1494_v44 }
 0x28e   : > { %v5340_v63 = vpop.eup %4423  ;;  %v1541_v47 = vmul.f32 1.442695, %v1515_v40  ;;  %v1968_v9 = vpop.f32.mrf.mxu3 }
 0x28f   : > { %v3044_v10 = vpop.f32.mrf.mxu2  ;;  %v5344_v11 = vsel %vm1295_vm1, %v1968_v9, -1e+30 }
 0x290   : > { %4425 = vpow2.f32 %v1541_v47  ;;  %1571 = vadd.xlane.f32.xlu1 %v5340_v63  ;;  %3094 = vmax.xlane.f32.xlu0 %v5348_v12  ;;  %v5363_v28 = vsel %vm1295_vm1, %v3044_v10, -1e+30 }
 0x291   : > { %2020 = vmax.xlane.f32.xlu2 %v5344_v11 }
 0x293   : > { %v1496_v54 = vpop.xlane.xlu2 %1495  ;;  %2516 = vmatmul.bf16.gmra.mxu1 %v5152_v13 }
 0x294   : > { %v1516_v1 = vsub.f32 %v5187_v60, %v1496_v54 }
 0x296   : > { %v5355_v56 = vpop.eup %4425  ;;  %v1543_v15 = vmul.f32 1.442695, %v1516_v1  ;;  %v1971_v19 = vpop.f32.mrf.mxu3 }
 0x297   : > { %v3047_v20 = vpop.f32.mrf.mxu2  ;;  %v5359_v6 = vsel %vm1295_vm1, %v1971_v19, -1e+30 }
 0x298   : > { %4427 = vpow2.f32 %v1543_v15  ;;  %2022 = vmax.xlane.f32.xlu0 %v5359_v6  ;;  %3096 = vmax.xlane.f32.xlu1 %v5363_v28  ;;  %v5379_v14 = vsel %vm1295_vm1, %v3047_v20, -1e+30 }
 0x299   : > { %1573 = vadd.xlane.f32.xlu2 %v5355_v56 }
 0x29b   : > { %v1498_v13 = vpop.xlane.xlu0 %1497 }
 0x29c   : > { %v1517_v60 = vsub.f32 %v5193_v2, %v1498_v13 }
 0x29e   : > { %v5369_v32 = vpop.eup %4427  ;;  %v1545_v3 = vmul.f32 1.442695, %v1517_v60  ;;  %v1973_v61 = vpop.f32.mrf.mxu3 }
 0x29f   : > { %v3049_v21 = vpop.f32.mrf.mxu2  ;;  %v5373_v16 = vsel %vm1295_vm1, %v1973_v61, -1e+30 }
 0x2a0   : > { %4429 = vpow2.f32 %v1545_v3  ;;  %1575 = vadd.xlane.f32.xlu0 %v5369_v32  ;;  %2024 = vmax.xlane.f32.xlu1 %v5373_v16  ;;  %v5392_v33 = vsel %vm1295_vm1, %v3049_v21, -1e+30 }
 0x2a1   : > { %3098 = vmax.xlane.f32.xlu2 %v5379_v14 }
 0x2a3   : > { %v1500_v2 = vpop.xlane.xlu1 %1499  ;;  %2521 = vmatmul.bf16.gmra.mxu1 %v5165_v29 }
 0x2a4   : > { %v1518_v38 = vsub.f32 %v5198_v41, %v1500_v2 }
 0x2a6   : > { %v5384_v43 = vpop.eup %4429  ;;  %v1547_v30 = vmul.f32 1.442695, %v1518_v38  ;;  %v1976_v51 = vpop.f32.mrf.mxu3 }
 0x2a7   : > { %v3052_v26 = vpop.f32.mrf.mxu2  ;;  %v5388_v39 = vsel %vm1295_vm1, %v1976_v51, -1e+30 }
 0x2a8   : > { %4431 = vpow2.f32 %v1547_v30  ;;  %1577 = vadd.xlane.f32.xlu1 %v5384_v43  ;;  %3100 = vmax.xlane.f32.xlu0 %v5392_v33  ;;  %v5406_v10 = vsel %vm1295_vm1, %v3052_v26, -1e+30 }
 0x2a9   : > { %2026 = vmax.xlane.f32.xlu2 %v5388_v39 }
 0x2ab   : > { %v1502_v29 = vpop.xlane.xlu2 %1501 }
 0x2ac   : > { %v1519_v41 = vsub.f32 %v5204_v17, %v1502_v29 }
 0x2ae   : > { %v5398_v44 = vpop.eup %4431  ;;  %v1549_v40 = vmul.f32 1.442695, %v1519_v41  ;;  %v1978_v47 = vpop.f32.mrf.mxu3 }
 0x2af   : > { %v5402_v9 = vsel %vm1295_vm1, %v1978_v47, -1e+30  ;;  %v3054_v54 = vpop.f32.mrf.mxu2 }
 0x2b0   : > { %4433 = vpow2.f32 %v1549_v40  ;;  %2028 = vmax.xlane.f32.xlu0 %v5402_v9  ;;  %3102 = vmax.xlane.f32.xlu1 %v5406_v10  ;;  %v5423_v60 = vsel %vm1295_vm1, %v3054_v54, -1e+30 }
 0x2b1   : > { %1579 = vadd.xlane.f32.xlu2 %v5398_v44  ;;  %6401 = vst [vmem:[#allocation6_spill] sm:$0xff] %v5423_v60 }
 0x2b3   : > { %v1504_v17 = vpop.xlane.xlu0 %1503  ;;  %2526 = vmatmul.bf16.gmra.mxu1 %v5178_v5 }
 0x2b4   : > { %v1520_v1 = vsub.f32 %v5210_v59, %v1504_v17 }
 0x2b6   : > { %v5413_v15 = vpop.eup %4433  ;;  %v1551_v19 = vmul.f32 1.442695, %v1520_v1  ;;  %v1981_v20 = vpop.f32.mrf.mxu3 }
 0x2b7   : > { %v5417_v13 = vsel %vm1295_vm1, %v1981_v20, -1e+30  ;;  %v3057_v59 = vpop.f32.mrf.mxu2 }
 0x2b8   : > { %4435 = vpow2.f32 %v1551_v19  ;;  %1581 = vadd.xlane.f32.xlu0 %v5413_v15  ;;  %2030 = vmax.xlane.f32.xlu1 %v5417_v13  ;;  %v5435_v51 = vsel %vm1295_vm1, %v3057_v59, -1e+30 }
 0x2b9   : > { %3104 = vmax.xlane.f32.xlu2 %v5423_v60  ;;  %6402 = vst [vmem:[#allocation7_spill] sm:$0xff] %v5435_v51 }
 0x2ba   : > { %v1554_v5 = vpop.xlane.xlu1 %1553 }
 0x2bb   : > { %4437 = vrcp.f32 %v1554_v5  ;;  %v2003_v3 = vpop.xlane.xlu2 %2002  ;;  %v1596_v1 = vand.u32 2147483648, %v1554_v5  ;;  %v1594_v59 = vand.u32 2147483647, %v1554_v5  ;;  %vm1590_vm3 = vweird.f32 %v1554_v5 }
 0x2bc   : > { %v2034_v61 = vsub.f32 %v5220_v35, %v2003_v3 }
 0x2bd   : > { %vm1595_vm5 = vcmp.eq.f32.partialorder %v1594_v59, 8.507059e+37 }
 0x2be   : > { %v5427_v21 = vpop.eup %4435  ;;  %v2050_v2 = vmul.f32 1.442695, %v2034_v61  ;;  %v1983_v38 = vpop.f32.mrf.mxu3 }
 0x2bf   : > { %v5431_v30 = vsel %vm1295_vm1, %v1983_v38, -1e+30  ;;  %v3059_v17 = vpop.f32.mrf.mxu2  ;;  %v1597_v38 = vor.u32 1.1754944e-38, %v1596_v1 }
 0x2c0   : > { %4439 = vpow2.f32 %v2050_v2  ;;  %1583 = vadd.xlane.f32.xlu1 %v5427_v21  ;;  %v2492_v26 = vpop.f32.mrf.mxu1  ;;  %3106 = vmax.xlane.f32.xlu0 %v5435_v51  ;;  %v5447_v3 = vsel %vm1295_vm1, %v3059_v17, -1e+30 }
 0x2c1   : > { %v4438_v35 = vpop.eup %4437  ;;  %2032 = vmax.xlane.f32.xlu2 %v5431_v30  ;;  %6404 = vst [vmem:[#allocation9_spill] sm:$0xff] %v5447_v3  ;;  %v5469_v59 = vsel %vm1295_vm1, %v2492_v26, -1e+30 }
 0x2c2   : > { %v1586_v29 = vmul.f32 %v4438_v35, %v1554_v5  ;;  %v3079_v41 = vpop.xlane.xlu1 %3078  ;;  %vm1591_vm2 = vweird.f32 %v4438_v35 }
 0x2c3   : > { %v1556_v40 = vpop.xlane.xlu2 %1555  ;;  %v5440_v47 = vpop.xlane.xlu0 %2004  ;;  %vm1592_vm4 = vmor %vm1590_vm3, %vm1591_vm2 }
 0x2c4   : > { %v1587_v54 = vsub.f32 1.0, %v1586_v29  ;;  %4441 = vrcp.f32 %v1556_v40  ;;  %v3110_v29 = vsub.f32 %v5228_v42, %v3079_v41  ;;  %vm1605_vm7 = vweird.f32 %v1556_v40 }
 0x2c6   : > { %v5443_v19 = vpop.eup %4439  ;;  %v1588_v20 = vmul.f32 %v4438_v35, %v1587_v54  ;;  %v3126_v42 = vmul.f32 1.442695, %v3110_v29  ;;  %v2035_v29 = vsub.f32 %v5233_v46, %v5440_v47 }
 0x2c7   : > { %6403 = vst [vmem:[#allocation8_spill] sm:$0xff] %v5443_v19 }
 0x2c8   : > { %v1589_v61 = vadd.f32 %v4438_v35, %v1588_v20  ;;  %v2494_v2 = vpop.f32.mrf.mxu1  ;;  %2082 = vadd.xlane.f32.xlu0 %v5443_v19  ;;  %3108 = vmax.xlane.f32.xlu1 %v5447_v3 }
 0x2c9   : > { %v5456_v54 = vsel %vm1295_vm1, %v2494_v2, -1e+30 }
 0x2ca   : > { %v4442_v51 = vpop.eup %4441  ;;  %v1593_v17 = vsel %vm1592_vm4, %v4438_v35, %v1589_v61  ;;  %2550 = vmax.xlane.f32.xlu2 %v5456_v54  ;;  %v1611_v35 = vand.u32 2147483648, %v1556_v40 }
 0x2cb   : > { %v1598_v20 = vsel %vm1595_vm5, %v1597_v38, %v1593_v17  ;;  %v1601_v5 = vmul.f32 %v4442_v51, %v1556_v40  ;;  %v5459_v60 = vpop.xlane.xlu0 %1557  ;;  %v2007_v19 = vpop.xlane.xlu1 %2006  ;;  %vm1606_vm6 = vweird.f32 %v4442_v51  ;;  %v1609_v38 = vand.u32 2147483647, %v1556_v40 }
 0x2cc   : > { %v1599_v3 = vmul.f32 %v5215_v8, %v1598_v20  ;;  %4443 = vrcp.f32 %v5459_v60  ;;  %v3081_v1 = vpop.xlane.xlu2 %3080  ;;  %vm1607_vm8 = vmor %vm1605_vm7, %vm1606_vm6  ;;  %vm1620_vm11 = vweird.f32 %v5459_v60 }
 0x2cd   : > { %v1602_v41 = vsub.f32 1.0, %v1601_v5  ;;  %v3111_v2 = vsub.f32 %v5249_v57, %v3081_v1  ;;  %4445 = vpow2.f32 %v3126_v42  ;;  %v1612_v5 = vor.u32 1.1754944e-38, %v1611_v35 }
 0x2ce   : > { %1825 = vst [vmem:[%s5464_s23] sm:$0xff] %v1599_v3  ;;  %v2036_v3 = vsub.f32 %v5243_v55, %v2007_v19  ;;  %vm1610_vm9 = vcmp.eq.f32.partialorder %v1609_v38, 8.507059e+37  ;;  %v1626_v35 = vand.u32 2147483648, %v5459_v60  ;;  %v1624_v38 = vand.u32 2147483647, %v5459_v60 }
 0x2cf   : > { %v1603_v61 = vmul.f32 %v4442_v51, %v1602_v41  ;;  %v3128_v8 = vmul.f32 1.442695, %v3111_v2  ;;  %v2052_v41 = vmul.f32 1.442695, %v2035_v29 }
 0x2d0   : > { %v2497_v17 = vpop.f32.mrf.mxu1  ;;  %2548 = vmax.xlane.f32.xlu1 %v5469_v59  ;;  %vm1625_vm13 = vcmp.eq.f32.partialorder %v1624_v38, 8.507059e+37 }
 0x2d1   : > { %v1604_v57 = vadd.f32 %v4442_v51, %v1603_v61  ;;  %v5477_v20 = vsel %vm1295_vm1, %v2497_v17, -1e+30  ;;  %4447 = vpow2.f32 %v3128_v8  ;;  %v2054_v61 = vmul.f32 1.442695, %v2036_v3 }
 0x2d2   : > { %v4444_v26 = vpop.eup %4443  ;;  %2552 = vmax.xlane.f32.xlu0 %v5477_v20  ;;  %v1627_v3 = vor.u32 1.1754944e-38, %v1626_v35 }
 0x2d3   : > { %v1608_v40 = vsel %vm1607_vm8, %v4442_v51, %v1604_v57  ;;  %v1616_v46 = vmul.f32 %v4444_v26, %v5459_v60  ;;  %v1560_v47 = vpop.xlane.xlu1 %1559  ;;  %v3083_v1 = vpop.xlane.xlu0 %3082  ;;  %vm1621_vm10 = vweird.f32 %v4444_v26 }
 0x2d4   : > { %v1613_v42 = vsel %vm1610_vm9, %v1612_v5, %v1608_v40  ;;  %4449 = vrcp.f32 %v1560_v47  ;;  %v2009_v55 = vpop.xlane.xlu2 %2008  ;;  %v3112_v8 = vsub.f32 %v5261_v4, %v3083_v1  ;;  %v5484_v17 = vpop.eup %4445  ;;  %vm1622_vm12 = vmor %vm1620_vm11, %vm1621_vm10  ;;  %v1641_v35 = vand.u32 2147483648, %v1560_v47 }
 0x2d5   : > { %v1614_v19 = vmul.f32 %v5224_v18, %v1613_v42  ;;  %v1617_v2 = vsub.f32 1.0, %v1616_v46  ;;  %4451 = vpow2.f32 %v2052_v41  ;;  %v2037_v40 = vsub.f32 %v5257_v0, %v2009_v55 }
 0x2d6   : > { %v3130_v29 = vmul.f32 1.442695, %v3112_v8  ;;  %4453 = vpow2.f32 %v2054_v61  ;;  %vm1635_vm15 = vweird.f32 %v1560_v47 }
 0x2d7   : > { %1826 = vst [vmem:[%s5464_s23 + $0x8] sm:$0xff] %v1614_v19  ;;  %v1618_v51 = vmul.f32 %v4444_v26, %v1617_v2  ;;  %v5488_v57 = vpop.eup %4447  ;;  %v2056_v0 = vmul.f32 1.442695, %v2037_v40 }
 0x2d8   : > { %v2499_v5 = vpop.f32.mrf.mxu1  ;;  %3158 = vadd.xlane.f32.xlu1 %v5484_v17  ;;  %3160 = vadd.xlane.f32.xlu2 %v5488_v57  ;;  %4455 = vpow2.f32 %v3130_v29 }
 0x2d9   : > { %v1619_v18 = vadd.f32 %v4444_v26, %v1618_v51  ;;  %v1639_v51 = vand.u32 2147483647, %v1560_v47 }
 0x2da   : > { %v4450_v4 = vpop.eup %4449 }
 0x2db   : > { %v1623_v46 = vsel %vm1622_vm12, %v4444_v26, %v1619_v18  ;;  %v1631_v1 = vmul.f32 %v4450_v4, %v1560_v47  ;;  %v5494_v42 = vpop.xlane.xlu0 %2010  ;;  %v3085_v41 = vpop.xlane.xlu1 %3084  ;;  %vm1636_vm14 = vweird.f32 %v4450_v4  ;;  %vm1640_vm2 = vcmp.eq.f32.partialorder %v1639_v51, 8.507059e+37 }
 0x2dc   : > { %v1628_v19 = vsel %vm1625_vm13, %v1627_v3, %v1623_v46  ;;  %v5496_v2 = vpop.xlane.xlu2 %1561  ;;  %v5500_v8 = vpop.eup %4451  ;;  %vm1637_vm0 = vmor %vm1635_vm15, %vm1636_vm14  ;;  %v1642_v3 = vor.u32 1.1754944e-38, %v1641_v35 }
 0x2dd   : > { %v1629_v60 = vmul.f32 %v5239_v50, %v1628_v19  ;;  %v1632_v61 = vsub.f32 1.0, %v1631_v1  ;;  %4457 = vrcp.f32 %v5496_v2  ;;  %v5502_v55 = vpop.eup %4453  ;;  %v3113_v50 = vsub.f32 %v5276_v49, %v3085_v41 }
 0x2de   : > { %v5505_v38 = vpop.eup %4455  ;;  %4459 = vpow2.f32 %v2056_v0  ;;  %v1654_v35 = vand.u32 2147483647, %v5496_v2  ;;  %v5522_v0 = vsel %vm1295_vm1, %v2499_v5, -1e+30  ;;  %vm1650_vm4 = vweird.f32 %v5496_v2 }
 0x2df   : > { %1827 = vst [vmem:[%s5464_s23 + $0x10] sm:$0xff] %v1629_v60  ;;  %v1633_v26 = vmul.f32 %v4450_v4, %v1632_v61  ;;  %3162 = vadd.xlane.f32.xlu0 %v5505_v38  ;;  %v3132_v41 = vmul.f32 1.442695, %v3113_v50 }
 0x2e0   : > { %6405 = vst [vmem:[#allocation10_spill] sm:$0xff] %v5505_v38  ;;  %v2502_v29 = vpop.f32.mrf.mxu1  ;;  %2084 = vadd.xlane.f32.xlu1 %v5500_v8  ;;  %2086 = vadd.xlane.f32.xlu2 %v5502_v55  ;;  %vm1655_vm6 = vcmp.eq.f32.partialorder %v1654_v35, 8.507059e+37 }
 0x2e1   : > { %v1634_v18 = vadd.f32 %v4450_v4, %v1633_v26 }
 0x2e3   : > { %v4458_v40 = vpop.eup %4457  ;;  %v1638_v46 = vsel %vm1637_vm0, %v4450_v4, %v1634_v18  ;;  %v5511_v1 = vpop.xlane.xlu0 %1563  ;;  %v1656_v4 = vand.u32 2147483648, %v5496_v2 }
 0x2e4   : > { %v2013_v19 = vpop.xlane.xlu1 %2012  ;;  %v1643_v60 = vsel %vm1640_vm2, %v1642_v3, %v1638_v46  ;;  %v1646_v61 = vmul.f32 %v4458_v40, %v5496_v2  ;;  %4461 = vrcp.f32 %v5511_v1  ;;  %v3087_v49 = vpop.xlane.xlu2 %3086  ;;  %vm1651_vm3 = vweird.f32 %v4458_v40 }
 0x2e5   : > { %v1644_v47 = vmul.f32 %v5253_v58, %v1643_v60  ;;  %v3114_v38 = vsub.f32 %v5292_v27, %v3087_v49  ;;  %v5524_v51 = vpop.eup %4459  ;;  %v5528_v58 = vsel %vm1295_vm1, %v2502_v29, -1e+30  ;;  %v2038_v27 = vsub.f32 %v5272_v53, %v5494_v42  ;;  %vm1652_vm5 = vmor %vm1650_vm4, %vm1651_vm3 }
 0x2e6   : > { %v1647_v26 = vsub.f32 1.0, %v1646_v61  ;;  %4463 = vpow2.f32 %v3132_v41  ;;  %v2039_v60 = vsub.f32 %v5286_v22, %v2013_v19  ;;  %vm1665_vm8 = vweird.f32 %v5511_v1 }
 0x2e7   : > { %1828 = vst [vmem:[%s5464_s23 + $0x18] sm:$0xff] %v1644_v47  ;;  %v3134_v3 = vmul.f32 1.442695, %v3114_v38  ;;  %2088 = vadd.xlane.f32.xlu0 %v5524_v51  ;;  %v1657_v38 = vor.u32 1.1754944e-38, %v1656_v4  ;;  %v2058_v41 = vmul.f32 1.442695, %v2038_v27 }
 0x2e8   : > { %v1648_v18 = vmul.f32 %v4458_v40, %v1647_v26  ;;  %v2504_v50 = vpop.f32.mrf.mxu1  ;;  %2554 = vmax.xlane.f32.xlu1 %v5522_v0  ;;  %2556 = vmax.xlane.f32.xlu2 %v5528_v58  ;;  %v1671_v4 = vand.u32 2147483648, %v5511_v1 }
 0x2e9   : > { %4465 = vpow2.f32 %v3134_v3  ;;  %v1669_v3 = vand.u32 2147483647, %v5511_v1 }
 0x2ea   : > { %v4462_v5 = vpop.eup %4461  ;;  %v1649_v46 = vadd.f32 %v4458_v40, %v1648_v18 }
 0x2eb   : > { %v1661_v29 = vmul.f32 %v4462_v5, %v5511_v1  ;;  %v3089_v49 = vpop.xlane.xlu0 %3088  ;;  %vm1666_vm7 = vweird.f32 %v4462_v5  ;;  %vm1670_vm10 = vcmp.eq.f32.partialorder %v1669_v3, 8.507059e+37 }
 0x2ec   : > { %v5538_v61 = vpop.xlane.xlu1 %1565  ;;  %v1653_v53 = vsel %vm1652_vm5, %v4458_v40, %v1649_v46  ;;  %v2015_v42 = vpop.xlane.xlu2 %2014  ;;  %v3115_v18 = vsub.f32 %v5305_v36, %v3089_v49  ;;  %v2060_v40 = vmul.f32 1.442695, %v2039_v60  ;;  %v5550_v46 = vsel %vm1295_vm1, %v2504_v50, -1e+30  ;;  %vm1667_vm9 = vmor %vm1665_vm8, %vm1666_vm7 }
 0x2ed   : > { %4467 = vrcp.f32 %v5538_v61  ;;  %v1658_v47 = vsel %vm1655_vm6, %v1657_v38, %v1653_v53  ;;  %v1662_v26 = vsub.f32 1.0, %v1661_v29  ;;  %v5544_v22 = vpop.eup %4463  ;;  %v1672_v29 = vor.u32 1.1754944e-38, %v1671_v4 }
 0x2ee   : > { %v1659_v2 = vmul.f32 %v5268_v52, %v1658_v47  ;;  %v3136_v35 = vmul.f32 1.442695, %v3115_v18  ;;  %4469 = vpow2.f32 %v2058_v41  ;;  %v2040_v60 = vsub.f32 %v5301_v34, %v2015_v42 }
 0x2ef   : > { %v1663_v19 = vmul.f32 %v4462_v5, %v1662_v26  ;;  %v5553_v52 = vpop.eup %4465  ;;  %2558 = vmax.xlane.f32.xlu0 %v5550_v46  ;;  %v1686_v34 = vand.u32 2147483648, %v5538_v61  ;;  %v1684_v18 = vand.u32 2147483647, %v5538_v61  ;;  %vm1680_vm12 = vweird.f32 %v5538_v61 }
 0x2f0   : > { %1829 = vst [vmem:[%s5464_s23 + $0x20] sm:$0xff] %v1659_v2  ;;  %v2507_v27 = vpop.f32.mrf.mxu1  ;;  %3164 = vadd.xlane.f32.xlu1 %v5544_v22  ;;  %4471 = vpow2.f32 %v3136_v35  ;;  %3166 = vadd.xlane.f32.xlu2 %v5553_v52  ;;  %v2062_v42 = vmul.f32 1.442695, %v2040_v60 }
 0x2f1   : > { %v1664_v36 = vadd.f32 %v4462_v5, %v1663_v19  ;;  %4473 = vpow2.f32 %v2060_v40  ;;  %vm1685_vm14 = vcmp.eq.f32.partialorder %v1684_v18, 8.507059e+37 }
 0x2f3   : > { %v4468_v38 = vpop.eup %4467  ;;  %v1668_v50 = vsel %vm1667_vm9, %v4462_v5, %v1664_v36  ;;  %v5560_v53 = vpop.xlane.xlu0 %2016  ;;  %v1687_v36 = vor.u32 1.1754944e-38, %v1686_v34 }
 0x2f4   : > { %v1676_v49 = vmul.f32 %v4468_v38, %v5538_v61  ;;  %v3091_v47 = vpop.xlane.xlu1 %3090  ;;  %v1673_v1 = vsel %vm1670_vm10, %v1672_v29, %v1668_v50  ;;  %v5562_v41 = vpop.xlane.xlu2 %1567  ;;  %vm1681_vm11 = vweird.f32 %v4468_v38 }
 0x2f5   : > { %v1674_v26 = vmul.f32 %v5282_v31, %v1673_v1  ;;  %4475 = vrcp.f32 %v5562_v41  ;;  %v5567_v4 = vpop.eup %4469  ;;  %v3116_v35 = vsub.f32 %v5319_v48, %v3091_v47  ;;  %vm1682_vm13 = vmor %vm1680_vm12, %vm1681_vm11  ;;  %vm1695_vm0 = vweird.f32 %v5562_v41 }
 0x2f6   : > { %v1677_v2 = vsub.f32 1.0, %v1676_v49  ;;  %v5571_v19 = vpop.eup %4471  ;;  %4477 = vpow2.f32 %v2062_v42  ;;  %v1701_v42 = vand.u32 2147483648, %v5562_v41 }
 0x2f7   : > { %1830 = vst [vmem:[%s5464_s23 + $0x28] sm:$0xff] %v1674_v26  ;;  %v5574_v40 = vpop.eup %4473  ;;  %3168 = vadd.xlane.f32.xlu0 %v5571_v19  ;;  %v3138_v47 = vmul.f32 1.442695, %v3116_v35 }
 0x2f8   : > { %v1678_v5 = vmul.f32 %v4468_v38, %v1677_v2  ;;  %v2509_v3 = vpop.f32.mrf.mxu1  ;;  %2090 = vadd.xlane.f32.xlu1 %v5567_v4  ;;  %2092 = vadd.xlane.f32.xlu2 %v5574_v40 }
 0x2fa   : > { %v1679_v31 = vadd.f32 %v4468_v38, %v1678_v5 }
 0x2fb   : > { %v4476_v29 = vpop.eup %4475  ;;  %v5580_v50 = vpop.xlane.xlu0 %1569 }
 0x2fc   : > { %v1683_v60 = vsel %vm1682_vm13, %v4468_v38, %v1679_v31  ;;  %v2019_v49 = vpop.xlane.xlu1 %2018  ;;  %v1691_v26 = vmul.f32 %v4476_v29, %v5562_v41  ;;  %4479 = vrcp.f32 %v5580_v50  ;;  %v3093_v48 = vpop.xlane.xlu2 %3092  ;;  %v5590_v38 = vsel %vm1295_vm1, %v2507_v27, -1e+30 }
 0x2fd   : > { %v1688_v1 = vsel %vm1685_vm14, %v1687_v36, %v1683_v60  ;;  %v3117_v34 = vsub.f32 %v5336_v62, %v3093_v48  ;;  %v5592_v5 = vpop.eup %4477  ;;  %vm1696_vm15 = vweird.f32 %v4476_v29  ;;  %v1699_v31 = vand.u32 2147483647, %v5562_v41 }
 0x2fe   : > { %v1689_v61 = vmul.f32 %v5297_v37, %v1688_v1  ;;  %v1692_v2 = vsub.f32 1.0, %v1691_v26  ;;  %v2041_v37 = vsub.f32 %v5315_v24, %v5560_v53  ;;  %4481 = vpow2.f32 %v3138_v47  ;;  %vm1697_vm2 = vmor %vm1695_vm0, %vm1696_vm15 }
 0x2ff   : > { %v3140_v36 = vmul.f32 1.442695, %v3117_v34  ;;  %v5600_v62 = vsel %vm1295_vm1, %v2509_v3, -1e+30  ;;  %2094 = vadd.xlane.f32.xlu0 %v5592_v5  ;;  %v1702_v1 = vor.u32 1.1754944e-38, %v1701_v42  ;;  %v2042_v48 = vsub.f32 %v5330_v23, %v2019_v49 }
 0x300   : > { %1831 = vst [vmem:[%s5464_s23 + $0x30] sm:$0xff] %v1689_v61  ;;  %v1693_v18 = vmul.f32 %v4476_v29, %v1692_v2  ;;  %v2512_v60 = vpop.f32.mrf.mxu1  ;;  %2560 = vmax.xlane.f32.xlu1 %v5590_v38  ;;  %2562 = vmax.xlane.f32.xlu2 %v5600_v62  ;;  %vm1700_vm3 = vcmp.eq.f32.partialorder %v1699_v31, 8.507059e+37  ;;  %v2064_v41 = vmul.f32 1.442695, %v2041_v37  ;;  %v1716_v42 = vand.u32 2147483648, %v5580_v50 }
 0x301   : > { %4483 = vpow2.f32 %v3140_v36  ;;  %v1714_v36 = vand.u32 2147483647, %v5580_v50  ;;  %vm1710_vm5 = vweird.f32 %v5580_v50 }
 0x302   : > { %v4480_v27 = vpop.eup %4479  ;;  %v1694_v35 = vadd.f32 %v4476_v29, %v1693_v18 }
 0x303   : > { %v1706_v26 = vmul.f32 %v4480_v27, %v5580_v50  ;;  %v3095_v53 = vpop.xlane.xlu0 %3094  ;;  %vm1711_vm4 = vweird.f32 %v4480_v27  ;;  %vm1715_vm7 = vcmp.eq.f32.partialorder %v1714_v36, 8.507059e+37 }
 0x304   : > { %v5607_v24 = vpop.xlane.xlu1 %1571  ;;  %v1698_v3 = vsel %vm1697_vm2, %v4476_v29, %v1694_v35  ;;  %v2021_v61 = vpop.xlane.xlu2 %2020  ;;  %v3118_v18 = vsub.f32 %v5348_v12, %v3095_v53  ;;  %v2066_v29 = vmul.f32 1.442695, %v2042_v48  ;;  %v5619_v35 = vsel %vm1295_vm1, %v2512_v60, -1e+30  ;;  %vm1712_vm6 = vmor %vm1710_vm5, %vm1711_vm4 }
 0x305   : > { %4485 = vrcp.f32 %v5607_v24  ;;  %v1703_v47 = vsel %vm1700_vm3, %v1702_v1, %v1698_v3  ;;  %v1707_v2 = vsub.f32 1.0, %v1706_v26  ;;  %v5613_v23 = vpop.eup %4481  ;;  %v1717_v26 = vor.u32 1.1754944e-38, %v1716_v42 }
 0x306   : > { %v1704_v34 = vmul.f32 %v5311_v7, %v1703_v47  ;;  %v3142_v31 = vmul.f32 1.442695, %v3118_v18  ;;  %4487 = vpow2.f32 %v2064_v41  ;;  %v2043_v48 = vsub.f32 %v5344_v11, %v2021_v61 }
 0x307   : > { %v1708_v49 = vmul.f32 %v4480_v27, %v1707_v2  ;;  %v5622_v7 = vpop.eup %4483  ;;  %2564 = vmax.xlane.f32.xlu0 %v5619_v35  ;;  %v1731_v11 = vand.u32 2147483648, %v5607_v24  ;;  %v1729_v18 = vand.u32 2147483647, %v5607_v24  ;;  %vm1725_vm9 = vweird.f32 %v5607_v24 }
 0x308   : > { %1832 = vst [vmem:[%s5464_s23 + $0x38] sm:$0xff] %v1704_v34  ;;  %v2514_v37 = vpop.f32.mrf.mxu1  ;;  %3170 = vadd.xlane.f32.xlu1 %v5613_v23  ;;  %4489 = vpow2.f32 %v3142_v31  ;;  %3172 = vadd.xlane.f32.xlu2 %v5622_v7  ;;  %v2068_v61 = vmul.f32 1.442695, %v2043_v48 }
 0x309   : > { %v1709_v12 = vadd.f32 %v4480_v27, %v1708_v49  ;;  %4491 = vpow2.f32 %v2066_v29  ;;  %vm1730_vm11 = vcmp.eq.f32.partialorder %v1729_v18, 8.507059e+37 }
 0x30b   : > { %v4486_v1 = vpop.eup %4485  ;;  %v1713_v60 = vsel %vm1712_vm6, %v4480_v27, %v1709_v12  ;;  %v2023_v3 = vpop.xlane.xlu0 %2022  ;;  %v1732_v12 = vor.u32 1.1754944e-38, %v1731_v11 }
 0x30c   : > { %v1721_v53 = vmul.f32 %v4486_v1, %v5607_v24  ;;  %v5629_v47 = vpop.xlane.xlu1 %3096  ;;  %v1718_v50 = vsel %vm1715_vm7, %v1717_v26, %v1713_v60  ;;  %v1574_v41 = vpop.xlane.xlu2 %1573  ;;  %vm1726_vm8 = vweird.f32 %v4486_v1  ;;  %v2044_v31 = vsub.f32 %v5359_v6, %v2023_v3 }
 0x30d   : > { %v1719_v2 = vmul.f32 %v5326_v45, %v1718_v50  ;;  %4493 = vrcp.f32 %v1574_v41  ;;  %v5633_v42 = vpop.eup %4487  ;;  %vm1727_vm10 = vmor %vm1725_vm9, %vm1726_vm8  ;;  %vm1740_vm13 = vweird.f32 %v1574_v41 }
 0x30e   : > { %v1722_v34 = vsub.f32 1.0, %v1721_v53  ;;  %6406 = vst [vmem:[#allocation11_spill] sm:$0xff] %v5633_v42  ;;  %v5637_v49 = vpop.eup %4489  ;;  %4495 = vpow2.f32 %v2068_v61  ;;  %v2070_v24 = vmul.f32 1.442695, %v2044_v31  ;;  %v1746_v61 = vand.u32 2147483648, %v1574_v41 }
 0x30f   : > { %1833 = vst [vmem:[%s5464_s23 + $0x40] sm:$0xff] %v1719_v2  ;;  %v5640_v29 = vpop.eup %4491  ;;  %3174 = vadd.xlane.f32.xlu0 %v5637_v49 }
 0x310   : > { %v1723_v27 = vmul.f32 %v4486_v1, %v1722_v34  ;;  %v2517_v36 = vpop.f32.mrf.mxu1  ;;  %2096 = vadd.xlane.f32.xlu1 %v5633_v42  ;;  %6407 = vst [vmem:[#allocation12_spill] sm:$0xff] %v5640_v29  ;;  %2098 = vadd.xlane.f32.xlu2 %v5640_v29 }
 0x312   : > { %v1724_v45 = vadd.f32 %v4486_v1, %v1723_v27  ;;  %v5653_v27 = vsel %vm1295_vm1, %v2514_v37, -1e+30  ;;  %v1747_v37 = vor.u32 1.1754944e-38, %v1746_v61 }
 0x313   : > { %v4494_v26 = vpop.eup %4493  ;;  %v1576_v60 = vpop.xlane.xlu0 %1575 }
 0x314   : > { %v1728_v48 = vsel %vm1727_vm10, %v4486_v1, %v1724_v45  ;;  %v2025_v53 = vpop.xlane.xlu1 %2024  ;;  %v1736_v2 = vmul.f32 %v4494_v26, %v1574_v41  ;;  %4497 = vrcp.f32 %v1576_v60  ;;  %v5646_v34 = vpop.xlane.xlu2 %3098  ;;  %vm1741_vm12 = vweird.f32 %v4494_v26 }
 0x315   : > { %v1733_v50 = vsel %vm1730_vm11, %v1732_v12, %v1728_v48  ;;  %v2045_v11 = vsub.f32 %v5373_v16, %v2025_v53  ;;  %v5655_v1 = vpop.eup %4495  ;;  %v1744_v45 = vand.u32 2147483647, %v1574_v41  ;;  %4499 = vpow2.f32 %v2070_v24  ;;  %vm1742_vm14 = vmor %vm1740_vm13, %vm1741_vm12 }
 0x316   : > { %v1734_v6 = vmul.f32 %v5340_v63, %v1733_v50  ;;  %v1737_v3 = vsub.f32 1.0, %v1736_v2  ;;  %6408 = vst [vmem:[#allocation13_spill] sm:$0xff] %v5655_v1  ;;  %v5660_v63 = vsel %vm1295_vm1, %v2517_v36, -1e+30  ;;  %v1759_v61 = vand.u32 2147483647, %v1576_v60 }
 0x317   : > { %v2072_v12 = vmul.f32 1.442695, %v2045_v11  ;;  %2100 = vadd.xlane.f32.xlu0 %v5655_v1  ;;  %vm1745_vm15 = vcmp.eq.f32.partialorder %v1744_v45, 8.507059e+37  ;;  %vm1755_vm2 = vweird.f32 %v1576_v60 }
 0x318   : > { %1834 = vst [vmem:[%s5464_s23 + $0x48] sm:$0xff] %v1734_v6  ;;  %v1738_v18 = vmul.f32 %v4494_v26, %v1737_v3  ;;  %v2519_v48 = vpop.f32.mrf.mxu1  ;;  %2566 = vmax.xlane.f32.xlu1 %v5653_v27  ;;  %2568 = vmax.xlane.f32.xlu2 %v5660_v63  ;;  %vm1760_vm4 = vcmp.eq.f32.partialorder %v1759_v61, 8.507059e+37 }
 0x319   : > { %4501 = vpow2.f32 %v2072_v12 }
 0x31a   : > { %v4498_v16 = vpop.eup %4497  ;;  %v1739_v31 = vadd.f32 %v4494_v26, %v1738_v18  ;;  %v1761_v18 = vand.u32 2147483648, %v1576_v60 }
 0x31b   : > { %v1751_v53 = vmul.f32 %v4498_v16, %v1576_v60  ;;  %v5664_v2 = vpop.xlane.xlu0 %3100  ;;  %v5668_v12 = vpop.eup %4499  ;;  %vm1756_vm0 = vweird.f32 %v4498_v16 }
 0x31c   : > { %v1578_v50 = vpop.xlane.xlu1 %1577  ;;  %v1743_v6 = vsel %vm1742_vm14, %v4494_v26, %v1739_v31  ;;  %v2027_v36 = vpop.xlane.xlu2 %2026  ;;  %v5675_v26 = vsel %vm1295_vm1, %v2519_v48, -1e+30  ;;  %vm1757_vm3 = vmor %vm1755_vm2, %vm1756_vm0  ;;  %v1762_v31 = vor.u32 1.1754944e-38, %v1761_v18 }
 0x31d   : > { %4503 = vrcp.f32 %v1578_v50  ;;  %v1748_v24 = vsel %vm1745_vm15, %v1747_v37, %v1743_v6  ;;  %v1752_v3 = vsub.f32 1.0, %v1751_v53  ;;  %v2046_v11 = vsub.f32 %v5388_v39, %v2027_v36 }
 0x31e   : > { %v1749_v41 = vmul.f32 %v5355_v56, %v1748_v24  ;;  %vm1770_vm6 = vweird.f32 %v1578_v50 }
 0x31f   : > { %v1753_v1 = vmul.f32 %v4498_v16, %v1752_v3  ;;  %v2074_v42 = vmul.f32 1.442695, %v2046_v11  ;;  %v5670_v29 = vpop.eup %4501  ;;  %2570 = vmax.xlane.f32.xlu0 %v5675_v26  ;;  %v1776_v3 = vand.u32 2147483648, %v1578_v50 }
 0x320   : > { %1835 = vst [vmem:[%s5464_s23 + $0x50] sm:$0xff] %v1749_v41  ;;  %v2522_v45 = vpop.f32.mrf.mxu1  ;;  %2102 = vadd.xlane.f32.xlu1 %v5668_v12  ;;  %2104 = vadd.xlane.f32.xlu2 %v5670_v29 }
 0x321   : > { %v1754_v39 = vadd.f32 %v4498_v16, %v1753_v1  ;;  %4505 = vpow2.f32 %v2074_v42  ;;  %v5689_v61 = vsel %vm1295_vm1, %v2522_v45, -1e+30 }
 0x323   : > { %v4504_v56 = vpop.eup %4503  ;;  %v1758_v37 = vsel %vm1757_vm3, %v4498_v16, %v1754_v39  ;;  %v2029_v6 = vpop.xlane.xlu0 %2028  ;;  %v1774_v16 = vand.u32 2147483647, %v1578_v50 }
 0x324   : > { %v1766_v53 = vmul.f32 %v4504_v56, %v1578_v50  ;;  %v5680_v48 = vpop.xlane.xlu1 %3102  ;;  %v1763_v36 = vsel %vm1760_vm4, %v1762_v31, %v1758_v37  ;;  %v1580_v24 = vpop.xlane.xlu2 %1579  ;;  %v2047_v1 = vsub.f32 %v5402_v9, %v2029_v6  ;;  %vm1771_vm5 = vweird.f32 %v4504_v56 }
 0x325   : > { %v1764_v42 = vmul.f32 %v5369_v32, %v1763_v36  ;;  %4507 = vrcp.f32 %v1580_v24  ;;  %vm1772_vm7 = vmor %vm1770_vm6, %vm1771_vm5  ;;  %v1777_v31 = vor.u32 1.1754944e-38, %v1776_v3  ;;  %vm1775_vm8 = vcmp.eq.f32.partialorder %v1774_v16, 8.507059e+37 }
 0x326   : > { %v1767_v60 = vsub.f32 1.0, %v1766_v53  ;;  %v2076_v11 = vmul.f32 1.442695, %v2047_v1  ;;  %v3121_v53 = vsub.f32 %v5392_v33, %v5664_v2  ;;  %v1791_v16 = vand.u32 2147483648, %v1580_v24 }
 0x327   : > { %v5684_v41 = vpop.eup %4505  ;;  %1836 = vst [vmem:[%s5464_s23 + $0x58] sm:$0xff] %v1764_v42  ;;  %v1789_v2 = vand.u32 2147483647, %v1580_v24  ;;  %vm1785_vm10 = vweird.f32 %v1580_v24 }
 0x328   : > { %v1768_v18 = vmul.f32 %v4504_v56, %v1767_v60  ;;  %4509 = vpow2.f32 %v2076_v11  ;;  %v2524_v39 = vpop.f32.mrf.mxu1  ;;  %2572 = vmax.xlane.f32.xlu1 %v5689_v61  ;;  %2106 = vadd.xlane.f32.xlu0 %v5684_v41 }
 0x329   : > { %v5695_v32 = vsel %vm1295_vm1, %v2524_v39, -1e+30  ;;  %vm1790_vm12 = vcmp.eq.f32.partialorder %v1789_v2, 8.507059e+37 }
 0x32a   : > { %v1769_v9 = vadd.f32 %v4504_v56, %v1768_v18  ;;  %2574 = vmax.xlane.f32.xlu2 %v5695_v32  ;;  %v3148_v18 = vmul.f32 1.442695, %v3121_v53 }
 0x32b   : > { %v4508_v37 = vpop.eup %4507  ;;  %v5700_v6 = vpop.xlane.xlu0 %1581 }
 0x32c   : > { %v1773_v45 = vsel %vm1772_vm7, %v4504_v56, %v1769_v9  ;;  %v2031_v50 = vpop.xlane.xlu1 %2030  ;;  %v1781_v1 = vmul.f32 %v4508_v37, %v1580_v24  ;;  %4511 = vrcp.f32 %v5700_v6  ;;  %v5703_v42 = vpop.xlane.xlu2 %3104  ;;  %vm1786_vm9 = vweird.f32 %v4508_v37 }
 0x32d   : > { %v1778_v36 = vsel %vm1775_vm8, %v1777_v31, %v1773_v45  ;;  %v2048_v56 = vsub.f32 %v5417_v13, %v2031_v50  ;;  %v3119_v31 = vsub.f32 %v5363_v28, %v5629_v47  ;;  %v3120_v13 = vsub.f32 %v5379_v14, %v5646_v34  ;;  %vm1787_vm11 = vmor %vm1785_vm10, %vm1786_vm9 }
 0x32e   : > { %v1779_v60 = vmul.f32 %v5384_v43, %v1778_v36  ;;  %v5706_v3 = vpop.eup %4509  ;;  %v1782_v11 = vsub.f32 1.0, %v1781_v1  ;;  %v1792_v50 = vor.u32 1.1754944e-38, %v1791_v16  ;;  %v1806_v16 = vand.u32 2147483648, %v5700_v6 }
 0x32f   : > { %v2078_v39 = vmul.f32 1.442695, %v2048_v56  ;;  %v3144_v34 = vmul.f32 1.442695, %v3119_v31  ;;  %v3146_v56 = vmul.f32 1.442695, %v3120_v13  ;;  %vm1800_vm14 = vweird.f32 %v5700_v6 }
 0x330   : > { %1837 = vst [vmem:[%s5464_s23 + $0x60] sm:$0xff] %v1779_v60  ;;  %v1783_v33 = vmul.f32 %v4508_v37, %v1782_v11  ;;  %2108 = vadd.xlane.f32.xlu1 %v5706_v3  ;;  %v2527_v9 = vpop.f32.mrf.mxu1  ;;  %v3122_v13 = vsub.f32 %v5406_v10, %v5680_v48 }
 0x331   : > { %v5715_v43 = vsel %vm1295_vm1, %v2527_v9, -1e+30  ;;  %4513 = vpow2.f32 %v2078_v39  ;;  %v1804_v39 = vand.u32 2147483647, %v5700_v6 }
 0x332   : > { %v4512_v45 = vpop.eup %4511  ;;  %v1784_v53 = vadd.f32 %v4508_v37, %v1783_v33  ;;  %2576 = vmax.xlane.f32.xlu0 %v5715_v43  ;;  %4515 = vpow2.f32 %v3148_v18 }
 0x333   : > { %v1796_v36 = vmul.f32 %v4512_v45, %v5700_v6  ;;  %v5723_v28 = vpop.xlane.xlu0 %3106  ;;  %vm1801_vm13 = vweird.f32 %v4512_v45  ;;  %vm1805_vm0 = vcmp.eq.f32.partialorder %v1804_v39, 8.507059e+37 }
 0x334   : > { %v5721_v1 = vpop.xlane.xlu1 %1583  ;;  %v1788_v47 = vsel %vm1787_vm11, %v4508_v37, %v1784_v53  ;;  %v2033_v14 = vpop.xlane.xlu2 %2032  ;;  %vm1802_vm15 = vmor %vm1800_vm14, %vm1801_vm13 }
 0x335   : > { %4517 = vrcp.f32 %v5721_v1  ;;  %v1793_v24 = vsel %vm1790_vm12, %v1792_v50, %v1788_v47  ;;  %v1797_v60 = vsub.f32 1.0, %v1796_v36  ;;  %v2049_v11 = vsub.f32 %v5431_v30, %v2033_v14 }
 0x336   : > { %v1794_v18 = vmul.f32 %v5398_v44, %v1793_v24  ;;  %4519 = vpow2.f32 %v3144_v34  ;;  %v1807_v50 = vor.u32 1.1754944e-38, %v1806_v16  ;;  %v1821_v24 = vand.u32 2147483648, %v5721_v1 }
 0x337   : > { %v1798_v33 = vmul.f32 %v4512_v45, %v1797_v60  ;;  %v2080_v37 = vmul.f32 1.442695, %v2049_v11  ;;  %v5730_v9 = vpop.eup %4513  ;;  %4521 = vpow2.f32 %v3146_v56  ;;  %vm1815_vm2 = vweird.f32 %v5721_v1 }
 0x338   : > { %1838 = vst [vmem:[%s5464_s23 + $0x68] sm:$0xff] %v1794_v18  ;;  %v2529_v2 = vpop.f32.mrf.mxu1  ;;  %v5733_v53 = vpop.eup %4515  ;;  %2110 = vadd.xlane.f32.xlu2 %v5730_v9  ;;  %v1819_v18 = vand.u32 2147483647, %v5721_v1 }
 0x339   : > { %6409 = vst [vmem:[#allocation14_spill] sm:$0xff] %v5733_v53  ;;  %v1799_v31 = vadd.f32 %v4512_v45, %v1798_v33  ;;  %v5739_v44 = vsel %vm1295_vm1, %v2529_v2, -1e+30  ;;  %4523 = vpow2.f32 %v2080_v37 }
 0x33a   : > { %3180 = vadd.xlane.f32.xlu0 %v5733_v53  ;;  %2578 = vmax.xlane.f32.xlu1 %v5739_v44  ;;  %vm1820_vm4 = vcmp.eq.f32.partialorder %v1819_v18, 8.507059e+37 }
 0x33b   : > { %v4518_v30 = vpop.eup %4517  ;;  %v1803_v6 = vsel %vm1802_vm15, %v4512_v45, %v1799_v31  ;;  %v2083_v25 = vpop.xlane.xlu0 %2082  ;;  %v3150_v45 = vmul.f32 1.442695, %v3122_v13 }
 0x33c   : > { %v1811_v36 = vmul.f32 %v4518_v30, %v5721_v1  ;;  %v5747_v47 = vpop.xlane.xlu1 %3108  ;;  %v1808_v14 = vsel %vm1805_vm0, %v1807_v50, %v1803_v6  ;;  %4525 = vrcp.f32 %v2083_v25  ;;  %v5752_v11 = vpop.eup %4519  ;;  %vm1816_vm1 = vweird.f32 %v4518_v30 }
 0x33d   : > { %v1809_v10 = vmul.f32 %v5413_v15, %v1808_v14  ;;  %v2551_v34 = vpop.xlane.xlu2 %2550  ;;  %6410 = vst [vmem:[#allocation15_spill] sm:$0xff] %v5752_v11  ;;  %v5756_v16 = vpop.eup %4521  ;;  %vm1817_vm3 = vmor %vm1815_vm2, %vm1816_vm1  ;;  %vm2119_vm6 = vweird.f32 %v2083_v25 }
 0x33e   : > { %v1812_v48 = vsub.f32 1.0, %v1811_v36  ;;  %v2581_v60 = vsub.f32 %v5456_v54, %v2551_v34  ;;  %6411 = vst [vmem:[#allocation16_spill] sm:$0xff] %v5756_v16  ;;  %v1822_v54 = vor.u32 1.1754944e-38, %v1821_v24 }
 0x33f   : > { %1839 = vst [vmem:[%s5464_s23 + $0x70] sm:$0xff] %v1809_v10  ;;  %v5758_v39 = vpop.eup %4523  ;;  %v2125_v10 = vand.u32 2147483648, %v2083_v25 }
 0x340   : > { %v1813_v56 = vmul.f32 %v4518_v30, %v1812_v48  ;;  %v2598_v33 = vmul.f32 1.442695, %v2581_v60  ;;  %6412 = vst [vmem:[#allocation17_spill] sm:$0xff] %v5758_v39  ;;  %3178 = vadd.xlane.f32.xlu2 %v5756_v16  ;;  %v2123_v60 = vand.u32 2147483647, %v2083_v25 }
 0x342   : > { %v1814_v15 = vadd.f32 %v4518_v30, %v1813_v56  ;;  %v4526_v37 = vpop.eup %4525  ;;  %4527 = vpow2.f32 %v2598_v33  ;;  %2112 = vadd.xlane.f32.xlu0 %v5758_v39  ;;  %3176 = vadd.xlane.f32.xlu1 %v5752_v11  ;;  %vm2124_vm8 = vcmp.eq.f32.partialorder %v2123_v60, 8.507059e+37 }
 0x343   : > { %4529 = vpow2.f32 %v3150_v45  ;;  %v2115_v31 = vmul.f32 %v4526_v37, %v2083_v25  ;;  %vm2120_vm5 = vweird.f32 %v4526_v37 }
 0x344   : > { %v1818_v2 = vsel %vm1817_vm3, %v4518_v30, %v1814_v15  ;;  %v2549_v13 = vpop.xlane.xlu1 %2548  ;;  %vm2121_vm7 = vmor %vm2119_vm6, %vm2120_vm5 }
 0x345   : > { %v1823_v50 = vsel %vm1820_vm4, %v1822_v54, %v1818_v2  ;;  %v2580_v6 = vsub.f32 %v5469_v59, %v2549_v13  ;;  %v2116_v36 = vsub.f32 1.0, %v2115_v31  ;;  %v2553_v14 = vpop.xlane.xlu0 %2552  ;;  %v6415_v54 = vld [vmem:[#allocation8_spill] sm:$0xff] }
 0x346   : > { %v1824_v1 = vmul.f32 %v5427_v21, %v1823_v50  ;;  %v2582_v34 = vsub.f32 %v5477_v20, %v2553_v14  ;;  %v2126_v21 = vor.u32 1.1754944e-38, %v2125_v10 }
 0x347   : > { %v2596_v48 = vmul.f32 1.442695, %v2580_v6  ;;  %v2117_v24 = vmul.f32 %v4526_v37, %v2116_v36 }
 0x348   : > { %1840 = vst [vmem:[%s5464_s23 + $0x78] sm:$0xff] %v1824_v1  ;;  %v5768_v45 = vpop.eup %4527  ;;  %v2600_v30 = vmul.f32 1.442695, %v2582_v34 }
 0x349   : > { %6413 = vst [vmem:[#allocation18_spill] sm:$0xff] %v5768_v45  ;;  %4531 = vpow2.f32 %v2596_v48  ;;  %v5770_v56 = vpop.eup %4529  ;;  %v2118_v18 = vadd.f32 %v4526_v37, %v2117_v24 }
 0x34a   : > { %6414 = vst [vmem:[#allocation19_spill] sm:$0xff] %v5770_v56  ;;  %4533 = vpow2.f32 %v2600_v30  ;;  %2630 = vadd.xlane.f32.xlu0 %v5768_v45  ;;  %3182 = vadd.xlane.f32.xlu1 %v5770_v56 }
 0x34b   : > { %v2122_v59 = vsel %vm2121_vm7, %v4526_v37, %v2118_v18  ;;  %v3161_v15 = vpop.xlane.xlu2 %3160 }
 0x34c   : > { %v3159_v20 = vpop.xlane.xlu1 %3158  ;;  %v2127_v33 = vsel %vm2124_vm8, %v2126_v21, %v2122_v59  ;;  %v3214_v36 = vand.u32 2147483647, %v3161_v15  ;;  %v3216_v34 = vand.u32 2147483648, %v3161_v15  ;;  %vm3210_vm9 = vweird.f32 %v3161_v15 }
 0x34d   : > { %4535 = vrcp.f32 %v3159_v20  ;;  %v2128_v2 = vmul.f32 %v6415_v54, %v2127_v33  ;;  %v3199_v14 = vand.u32 2147483647, %v3159_v20  ;;  %v3201_v60 = vand.u32 2147483648, %v3159_v20 }
 0x34e   : > { %4537 = vrcp.f32 %v3161_v15  ;;  %vm3195_vm10 = vweird.f32 %v3159_v20  ;;  %vm5796_vm14 = vcmp.eq.f32.partialorder %v3214_v36, 8.507059e+37 }
 0x34f   : > { %v5775_v31 = vpop.eup %4531  ;;  %3933 = vst [vmem:[%s5464_s23 + $0x80] sm:$0xff] %v2128_v2  ;;  %vm5791_vm13 = vcmp.eq.f32.partialorder %v3199_v14, 8.507059e+37  ;;  %v3217_v2 = vor.u32 1.1754944e-38, %v3216_v34 }
 0x350   : > { %6416 = vst [vmem:[#allocation8_spill] sm:$0xff] %v5775_v31  ;;  %2628 = vadd.xlane.f32.xlu2 %v5775_v31  ;;  %v5779_v25 = vpop.eup %4533 }
 0x351   : > { %6417 = vst [vmem:[#allocation20_spill] sm:$0xff] %v5779_v25 }
 0x352   : > { %2632 = vadd.xlane.f32.xlu1 %v5779_v25  ;;  %v5786_v48 = vpop.xlane.xlu0 %3162 }
 0x353   : > { %v4536_v13 = vpop.eup %4535  ;;  %v5784_v10 = vpop.xlane.xlu2 %2086  ;;  %vm3225_vm3 = vweird.f32 %v5786_v48  ;;  %v3229_v34 = vand.u32 2147483647, %v5786_v48 }
 0x354   : > { %v4538_v50 = vpop.eup %4537  ;;  %v3191_v37 = vmul.f32 %v4536_v13, %v3159_v20  ;;  %v5782_v6 = vpop.xlane.xlu1 %2084  ;;  %vm3196_vm11 = vweird.f32 %v4536_v13  ;;  %v2153_v33 = vand.u32 2147483647, %v5784_v10  ;;  %vm2149_vm0 = vweird.f32 %v5784_v10 }
 0x355   : > { %v3206_v1 = vmul.f32 %v4538_v50, %v3161_v15  ;;  %4539 = vrcp.f32 %v5782_v6  ;;  %vm3211_vm12 = vweird.f32 %v4538_v50  ;;  %vm3197_vm15 = vmor %vm3195_vm10, %vm3196_vm11  ;;  %v2155_v20 = vand.u32 2147483648, %v5784_v10 }
 0x356   : > { %v3192_v24 = vsub.f32 1.0, %v3191_v37  ;;  %4541 = vrcp.f32 %v5784_v10  ;;  %vm2134_vm1 = vweird.f32 %v5782_v6  ;;  %vm3212_vm2 = vmor %vm3210_vm9, %vm3211_vm12  ;;  %vm5813_vm4 = vcmp.eq.f32.partialorder %v2153_v33, 8.507059e+37 }
 0x357   : > { %v3207_v30 = vsub.f32 1.0, %v3206_v1  ;;  %4543 = vrcp.f32 %v5786_v48  ;;  %v3202_v1 = vor.u32 1.1754944e-38, %v3201_v60  ;;  %v2140_v53 = vand.u32 2147483648, %v5782_v6 }
 0x358   : > { %v3193_v18 = vmul.f32 %v4536_v13, %v3192_v24  ;;  %vm5834_vm8 = vcmp.eq.f32.partialorder %v3229_v34, 8.507059e+37 }
 0x359   : > { %v3208_v21 = vmul.f32 %v4538_v50, %v3207_v30 }
 0x35a   : > { %v3194_v37 = vadd.f32 %v4536_v13, %v3193_v18  ;;  %v5818_v45 = vpop.xlane.xlu0 %2088 }
 0x35b   : > { %v5800_v25 = vpop.eup %4539  ;;  %v3209_v24 = vadd.f32 %v4538_v50, %v3208_v21  ;;  %4545 = vrcp.f32 %v5818_v45  ;;  %v2168_v15 = vand.u32 2147483647, %v5818_v45 }
 0x35c   : > { %v4542_v14 = vpop.eup %4541  ;;  %v3198_v36 = vsel %vm3197_vm15, %v4536_v13, %v3194_v37  ;;  %v2130_v60 = vmul.f32 %v5800_v25, %v5782_v6  ;;  %v2555_v30 = vpop.xlane.xlu1 %2554  ;;  %v3231_v13 = vand.u32 2147483648, %v5786_v48  ;;  %vm2135_vm5 = vweird.f32 %v5800_v25 }
 0x35d   : > { %v4544_v18 = vpop.eup %4543  ;;  %v3213_v21 = vsel %vm3212_vm2, %v4538_v50, %v3209_v24  ;;  %v3203_v31 = vsel %vm5791_vm13, %v3202_v1, %v3198_v36  ;;  %v2145_v56 = vmul.f32 %v4542_v14, %v5784_v10  ;;  %v2557_v37 = vpop.xlane.xlu2 %2556  ;;  %v2138_v1 = vand.u32 2147483647, %v5782_v6  ;;  %vm5843_vm9 = vmor %vm2134_vm1, %vm2135_vm5 }
 0x35e   : > { %v3218_v11 = vsel %vm5796_vm14, %v3217_v2, %v3213_v21  ;;  %v3204_v50 = vmul.f32 %v5484_v17, %v3203_v31  ;;  %v3221_v59 = vmul.f32 %v4544_v18, %v5786_v48  ;;  %v2131_v36 = vsub.f32 1.0, %v2130_v60 }
 0x35f   : > { %v3219_v33 = vmul.f32 %v5488_v57, %v3218_v11  ;;  %v2146_v24 = vsub.f32 1.0, %v2145_v56  ;;  %v2584_v39 = vsub.f32 %v5528_v58, %v2557_v37  ;;  %vm2150_vm6 = vweird.f32 %v4542_v14 }
 0x360   : > { %4029 = vst [vmem:[%s5464_s23 + $0x180] sm:$0xff] %v3204_v50  ;;  %v3222_v16 = vsub.f32 1.0, %v3221_v59  ;;  %v2132_v31 = vmul.f32 %v5800_v25, %v2131_v36  ;;  %v2156_v2 = vor.u32 1.1754944e-38, %v2155_v20  ;;  %vm3226_vm7 = vweird.f32 %v4544_v18  ;;  %vm2151_vm10 = vmor %vm2149_vm0, %vm2150_vm6 }
 0x361   : > { %4030 = vst [vmem:[%s5464_s23 + $0x188] sm:$0xff] %v3219_v33  ;;  %v2147_v17 = vmul.f32 %v4542_v14, %v2146_v24  ;;  %v2604_v54 = vmul.f32 1.442695, %v2584_v39  ;;  %v2583_v11 = vsub.f32 %v5522_v0, %v2555_v30  ;;  %v2141_v39 = vor.u32 1.1754944e-38, %v2140_v53  ;;  %vm3227_vm11 = vmor %vm3225_vm3, %vm3226_vm7  ;;  %v4546_v10 = vpop.eup %4545  ;;  %v6428_v33 = vld [vmem:[#allocation10_spill] sm:$0xff] }
 0x362   : > { %v3223_v57 = vmul.f32 %v4544_v18, %v3222_v16  ;;  %v2133_v60 = vadd.f32 %v5800_v25, %v2132_v31  ;;  %v3232_v16 = vor.u32 1.1754944e-38, %v3231_v13  ;;  %vm2139_vm12 = vcmp.eq.f32.partialorder %v2138_v1, 8.507059e+37  ;;  %v2559_v37 = vpop.xlane.xlu0 %2558 }
 0x363   : > { %v2148_v58 = vadd.f32 %v4542_v14, %v2147_v17  ;;  %4547 = vpow2.f32 %v2604_v54  ;;  %v2602_v20 = vmul.f32 1.442695, %v2583_v11  ;;  %v2160_v1 = vmul.f32 %v4546_v10, %v5818_v45 }
 0x364   : > { %v3224_v0 = vadd.f32 %v4544_v18, %v3223_v57  ;;  %v5849_v34 = vpop.xlane.xlu1 %3164  ;;  %v2137_v6 = vsel %vm5843_vm9, %v5800_v25, %v2133_v60  ;;  %v2170_v17 = vand.u32 2147483648, %v5818_v45  ;;  %vm2165_vm13 = vweird.f32 %v4546_v10 }
 0x365   : > { %v2152_v30 = vsel %vm2151_vm10, %v4542_v14, %v2148_v58  ;;  %4549 = vrcp.f32 %v5849_v34  ;;  %v2142_v50 = vsel %vm2139_vm12, %v2141_v39, %v2137_v6  ;;  %v5859_v14 = vpop.xlane.xlu2 %3166  ;;  %v2161_v36 = vsub.f32 1.0, %v2160_v1 }
 0x366   : > { %v2157_v53 = vsel %vm5813_vm4, %v2156_v2, %v2152_v30  ;;  %v3228_v13 = vsel %vm3227_vm11, %v4544_v18, %v3224_v0  ;;  %4551 = vpow2.f32 %v2602_v20  ;;  %v2143_v59 = vmul.f32 %v5500_v8, %v2142_v50 }
 0x367   : > { %v2158_v48 = vmul.f32 %v5502_v55, %v2157_v53  ;;  %v3233_v25 = vsel %vm5834_vm8, %v3232_v16, %v3228_v13  ;;  %4553 = vrcp.f32 %v5859_v14  ;;  %v2585_v55 = vsub.f32 %v5550_v46, %v2559_v37 }
 0x368   : > { %v3234_v24 = vmul.f32 %v6428_v33, %v3233_v25  ;;  %3934 = vst [vmem:[%s5464_s23 + $0x88] sm:$0xff] %v2143_v59  ;;  %v2162_v31 = vmul.f32 %v4546_v10, %v2161_v36  ;;  %vm2164_vm14 = vweird.f32 %v5818_v45  ;;  %vm5880_vm15 = vcmp.eq.f32.partialorder %v2168_v15, 8.507059e+37 }
 0x369   : > { %v5869_v18 = vpop.eup %4547  ;;  %3935 = vst [vmem:[%s5464_s23 + $0x90] sm:$0xff] %v2158_v48  ;;  %v2606_v54 = vmul.f32 1.442695, %v2585_v55  ;;  %v2171_v56 = vor.u32 1.1754944e-38, %v2170_v17  ;;  %v3259_v60 = vand.u32 2147483647, %v5859_v14  ;;  %vm2166_vm0 = vmor %vm2164_vm14, %vm2165_vm13  ;;  %vm3240_vm1 = vweird.f32 %v5849_v34 }
 0x36a   : > { %4031 = vst [vmem:[%s5464_s23 + $0x190] sm:$0xff] %v3234_v24  ;;  %2636 = vadd.xlane.f32.xlu0 %v5869_v18  ;;  %v2163_v46 = vadd.f32 %v4546_v10, %v2162_v31  ;;  %v5889_v21 = vpop.xlane.xlu0 %3168  ;;  %v3261_v45 = vand.u32 2147483648, %v5859_v14  ;;  %v3244_v39 = vand.u32 2147483647, %v5849_v34  ;;  %v3246_v37 = vand.u32 2147483648, %v5849_v34 }
 0x36b   : > { %v4550_v8 = vpop.eup %4549  ;;  %4555 = vpow2.f32 %v2606_v54  ;;  %vm3255_vm3 = vweird.f32 %v5859_v14  ;;  %vm5904_vm4 = vcmp.eq.f32.partialorder %v3259_v60, 8.507059e+37  ;;  %v3274_v1 = vand.u32 2147483647, %v5889_v21 }
 0x36c   : > { %v5877_v2 = vpop.eup %4551  ;;  %v3236_v11 = vmul.f32 %v4550_v8, %v5849_v34  ;;  %v5885_v58 = vpop.xlane.xlu1 %2090  ;;  %4557 = vrcp.f32 %v5889_v21  ;;  %v2167_v30 = vsel %vm2166_vm0, %v4546_v10, %v2163_v46  ;;  %vm3241_vm2 = vweird.f32 %v4550_v8 }
 0x36d   : > { %2634 = vadd.xlane.f32.xlu2 %v5877_v2  ;;  %v4554_v0 = vpop.eup %4553  ;;  %v5893_v20 = vpop.xlane.xlu2 %2092  ;;  %v2172_v53 = vsel %vm5880_vm15, %v2171_v56, %v2167_v30  ;;  %v3262_v25 = vor.u32 1.1754944e-38, %v3261_v45  ;;  %vm3242_vm6 = vmor %vm3240_vm1, %vm3241_vm2  ;;  %vm3245_vm7 = vcmp.eq.f32.partialorder %v3244_v39, 8.507059e+37  ;;  %vm3270_vm8 = vweird.f32 %v5889_v21 }
 0x36e   : > { %v3237_v16 = vsub.f32 1.0, %v3236_v11  ;;  %v3251_v6 = vmul.f32 %v4554_v0, %v5859_v14  ;;  %4559 = vrcp.f32 %v5893_v20  ;;  %v2173_v50 = vmul.f32 %v5524_v51, %v2172_v53 }
 0x36f   : > { %4561 = vrcp.f32 %v5885_v58  ;;  %vm3256_vm5 = vweird.f32 %v4554_v0  ;;  %v3247_v51 = vor.u32 1.1754944e-38, %v3246_v37  ;;  %v2198_v36 = vand.u32 2147483647, %v5893_v20 }
 0x370   : > { %v3238_v13 = vmul.f32 %v4550_v8, %v3237_v16  ;;  %v3252_v48 = vsub.f32 1.0, %v3251_v6  ;;  %3936 = vst [vmem:[%s5464_s23 + $0x98] sm:$0xff] %v2173_v50  ;;  %v2183_v17 = vand.u32 2147483647, %v5885_v58  ;;  %vm2194_vm9 = vweird.f32 %v5893_v20  ;;  %vm3257_vm10 = vmor %vm3255_vm3, %vm3256_vm5 }
 0x371   : > { %v5910_v33 = vpop.eup %4555  ;;  %v2200_v60 = vand.u32 2147483648, %v5893_v20  ;;  %vm5927_vm11 = vcmp.eq.f32.partialorder %v3274_v1, 8.507059e+37  ;;  %vm2179_vm12 = vweird.f32 %v5885_v58  ;;  %vm5937_vm13 = vcmp.eq.f32.partialorder %v2198_v36, 8.507059e+37 }
 0x372   : > { %v3239_v59 = vadd.f32 %v4550_v8, %v3238_v13  ;;  %v3253_v34 = vmul.f32 %v4554_v0, %v3252_v48  ;;  %v4558_v24 = vpop.eup %4557  ;;  %2638 = vadd.xlane.f32.xlu1 %v5910_v33  ;;  %v5919_v46 = vpop.xlane.xlu0 %2094  ;;  %vm5957_vm3 = vcmp.eq.f32.partialorder %v2183_v17, 8.507059e+37 }
 0x373   : > { %v3266_v11 = vmul.f32 %v4558_v24, %v5889_v21  ;;  %4563 = vrcp.f32 %v5919_v46  ;;  %vm3271_vm14 = vweird.f32 %v4558_v24 }
 0x374   : > { %v3243_v15 = vsel %vm3242_vm6, %v4550_v8, %v3239_v59  ;;  %v2561_v55 = vpop.xlane.xlu1 %2560  ;;  %v4560_v31 = vpop.eup %4559  ;;  %v3254_v54 = vadd.f32 %v4554_v0, %v3253_v34  ;;  %v2201_v59 = vor.u32 1.1754944e-38, %v2200_v60  ;;  %v2185_v34 = vand.u32 2147483648, %v5885_v58  ;;  %vm3272_vm0 = vmor %vm3270_vm8, %vm3271_vm14 }
 0x375   : > { %v3248_v57 = vsel %vm3245_vm7, %v3247_v51, %v3243_v15  ;;  %v2190_v56 = vmul.f32 %v4560_v31, %v5893_v20  ;;  %v2563_v16 = vpop.xlane.xlu2 %2562  ;;  %v3267_v30 = vsub.f32 1.0, %v3266_v11  ;;  %v4562_v14 = vpop.eup %4561  ;;  %vm2195_vm15 = vweird.f32 %v4560_v31 }
 0x376   : > { %v3249_v8 = vmul.f32 %v5544_v22, %v3248_v57  ;;  %v3258_v39 = vsel %vm3257_vm10, %v4554_v0, %v3254_v54  ;;  %v2587_v6 = vsub.f32 %v5600_v62, %v2563_v16  ;;  %v3276_v0 = vand.u32 2147483648, %v5889_v21  ;;  %vm2196_vm2 = vmor %vm2194_vm9, %vm2195_vm15 }
 0x377   : > { %v3263_v22 = vsel %vm5904_vm4, %v3262_v25, %v3258_v39  ;;  %v2191_v37 = vsub.f32 1.0, %v2190_v56  ;;  %v3268_v50 = vmul.f32 %v4558_v24, %v3267_v30  ;;  %v2175_v62 = vmul.f32 %v4562_v14, %v5885_v58 }
 0x378   : > { %4032 = vst [vmem:[%s5464_s23 + $0x198] sm:$0xff] %v3249_v8  ;;  %v3264_v13 = vmul.f32 %v5553_v52, %v3263_v22  ;;  %v2610_v1 = vmul.f32 1.442695, %v2587_v6  ;;  %v2586_v51 = vsub.f32 %v5590_v38, %v2561_v55  ;;  %v3277_v52 = vor.u32 1.1754944e-38, %v3276_v0 }
 0x379   : > { %v2192_v48 = vmul.f32 %v4560_v31, %v2191_v37  ;;  %v3269_v10 = vadd.f32 %v4558_v24, %v3268_v50  ;;  %v2176_v25 = vsub.f32 1.0, %v2175_v62  ;;  %vm2180_vm1 = vweird.f32 %v4562_v14  ;;  %v4564_v54 = vpop.eup %4563 }
 0x37a   : > { %4033 = vst [vmem:[%s5464_s23 + $0x1a0] sm:$0xff] %v3264_v13  ;;  %4565 = vpow2.f32 %v2610_v1  ;;  %v2608_v8 = vmul.f32 1.442695, %v2586_v51  ;;  %v2565_v56 = vpop.xlane.xlu0 %2564  ;;  %v2205_v60 = vmul.f32 %v4564_v54, %v5919_v46  ;;  %vm2181_vm4 = vmor %vm2179_vm12, %vm2180_vm1  ;;  %v2186_v17 = vor.u32 1.1754944e-38, %v2185_v34 }
 0x37b   : > { %v2193_v15 = vadd.f32 %v4560_v31, %v2192_v48  ;;  %v3273_v57 = vsel %vm3272_vm0, %v4558_v24, %v3269_v10  ;;  %v2177_v11 = vmul.f32 %v4562_v14, %v2176_v25  ;;  %v2213_v6 = vand.u32 2147483647, %v5919_v46 }
 0x37c   : > { %v5949_v36 = vpop.xlane.xlu1 %3170  ;;  %v3278_v21 = vsel %vm5927_vm11, %v3277_v52, %v3273_v57  ;;  %v2206_v45 = vsub.f32 1.0, %v2205_v60  ;;  %v2215_v22 = vand.u32 2147483648, %v5919_v46  ;;  %vm2210_vm5 = vweird.f32 %v4564_v54 }
 0x37d   : > { %4567 = vrcp.f32 %v5949_v36  ;;  %v2197_v38 = vsel %vm2196_vm2, %v4560_v31, %v2193_v15  ;;  %v5962_v16 = vpop.xlane.xlu2 %3172  ;;  %v3279_v24 = vmul.f32 %v5571_v19, %v3278_v21  ;;  %v2178_v39 = vadd.f32 %v4562_v14, %v2177_v11 }
 0x37e   : > { %v2202_v20 = vsel %vm5937_vm13, %v2201_v59, %v2197_v38  ;;  %4569 = vpow2.f32 %v2608_v8  ;;  %v2588_v19 = vsub.f32 %v5619_v35, %v2565_v56  ;;  %v2207_v58 = vmul.f32 %v4564_v54, %v2206_v45 }
 0x37f   : > { %v2203_v31 = vmul.f32 %v5574_v40, %v2202_v20  ;;  %4571 = vrcp.f32 %v5962_v16  ;;  %4034 = vst [vmem:[%s5464_s23 + $0x1a8] sm:$0xff] %v3279_v24  ;;  %v2182_v30 = vsel %vm2181_vm4, %v4562_v14, %v2178_v39  ;;  %vm2209_vm6 = vweird.f32 %v5919_v46 }
 0x380   : > { %v5976_v37 = vpop.eup %4565  ;;  %v2187_v40 = vsel %vm5957_vm3, %v2186_v17, %v2182_v30  ;;  %v2612_v13 = vmul.f32 1.442695, %v2588_v19  ;;  %v2208_v14 = vadd.f32 %v4564_v54, %v2207_v58  ;;  %vm2211_vm7 = vmor %vm2209_vm6, %vm2210_vm5  ;;  %vm2214_vm8 = vcmp.eq.f32.partialorder %v2213_v6, 8.507059e+37 }
 0x381   : > { %3938 = vst [vmem:[%s5464_s23 + $0xa8] sm:$0xff] %v2203_v31  ;;  %v2188_v0 = vmul.f32 %v5567_v4, %v2187_v40  ;;  %2642 = vadd.xlane.f32.xlu0 %v5976_v37  ;;  %v2216_v48 = vor.u32 1.1754944e-38, %v2215_v22  ;;  %v3304_v59 = vand.u32 2147483647, %v5962_v16  ;;  %v3306_v25 = vand.u32 2147483648, %v5962_v16 }
 0x382   : > { %4573 = vpow2.f32 %v2612_v13  ;;  %v5991_v4 = vpop.xlane.xlu0 %3174  ;;  %v2212_v10 = vsel %vm2211_vm7, %v4564_v54, %v2208_v14  ;;  %v3289_v52 = vand.u32 2147483647, %v5949_v36  ;;  %v3291_v57 = vand.u32 2147483648, %v5949_v36 }
 0x383   : > { %v4568_v53 = vpop.eup %4567  ;;  %3937 = vst [vmem:[%s5464_s23 + $0xa0] sm:$0xff] %v2188_v0  ;;  %4575 = vrcp.f32 %v5991_v4  ;;  %v2217_v51 = vsel %vm2214_vm8, %v2216_v48, %v2212_v10  ;;  %vm3300_vm10 = vweird.f32 %v5962_v16  ;;  %vm3285_vm11 = vweird.f32 %v5949_v36 }
 0x384   : > { %v3281_v50 = vmul.f32 %v4568_v53, %v5949_v36  ;;  %v5985_v35 = vpop.xlane.xlu1 %2096  ;;  %v5987_v62 = vpop.eup %4569  ;;  %v2218_v11 = vmul.f32 %v5592_v5, %v2217_v51  ;;  %vm3286_vm9 = vweird.f32 %v4568_v53  ;;  %vm6006_vm12 = vcmp.eq.f32.partialorder %v3304_v59, 8.507059e+37 }
 0x385   : > { %v4572_v1 = vpop.eup %4571  ;;  %2640 = vadd.xlane.f32.xlu2 %v5987_v62  ;;  %v5995_v34 = vpop.xlane.xlu2 %2098  ;;  %v3307_v38 = vor.u32 1.1754944e-38, %v3306_v25  ;;  %vm3287_vm14 = vmor %vm3285_vm11, %vm3286_vm9  ;;  %v3292_v60 = vor.u32 1.1754944e-38, %v3291_v57  ;;  %vm3290_vm15 = vcmp.eq.f32.partialorder %v3289_v52, 8.507059e+37  ;;  %vm3315_vm0 = vweird.f32 %v5991_v4 }
 0x386   : > { %v3282_v46 = vsub.f32 1.0, %v3281_v50  ;;  %v3296_v15 = vmul.f32 %v4572_v1, %v5962_v16  ;;  %4577 = vrcp.f32 %v5995_v34  ;;  %3939 = vst [vmem:[%s5464_s23 + $0xb0] sm:$0xff] %v2218_v11  ;;  %vm3301_vm13 = vweird.f32 %v4572_v1 }
 0x387   : > { %4579 = vrcp.f32 %v5985_v35  ;;  %v2243_v20 = vand.u32 2147483647, %v5995_v34  ;;  %v2228_v36 = vand.u32 2147483647, %v5985_v35  ;;  %vm2239_vm1 = vweird.f32 %v5995_v34  ;;  %vm3302_vm2 = vmor %vm3300_vm10, %vm3301_vm13 }
 0x388   : > { %v3283_v54 = vmul.f32 %v4568_v53, %v3282_v46  ;;  %v3297_v8 = vsub.f32 1.0, %v3296_v15  ;;  %v6011_v55 = vpop.eup %4573  ;;  %v2245_v30 = vand.u32 2147483648, %v5995_v34  ;;  %v3319_v58 = vand.u32 2147483647, %v5991_v4 }
 0x389   : > { %v4576_v24 = vpop.eup %4575  ;;  %2644 = vadd.xlane.f32.xlu1 %v6011_v55  ;;  %vm6030_vm3 = vcmp.eq.f32.partialorder %v2243_v20, 8.507059e+37  ;;  %vm2224_vm4 = vweird.f32 %v5985_v35  ;;  %v2230_v59 = vand.u32 2147483648, %v5985_v35  ;;  %vm6042_vm6 = vcmp.eq.f32.partialorder %v2228_v36, 8.507059e+37 }
 0x38a   : > { %v3284_v21 = vadd.f32 %v4568_v53, %v3283_v54  ;;  %v3298_v5 = vmul.f32 %v4572_v1, %v3297_v8  ;;  %v3311_v6 = vmul.f32 %v4576_v24, %v5991_v4  ;;  %v6020_v22 = vpop.xlane.xlu0 %2100  ;;  %vm3316_vm5 = vweird.f32 %v4576_v24 }
 0x38b   : > { %4581 = vrcp.f32 %v6020_v22  ;;  %v2246_v52 = vor.u32 1.1754944e-38, %v2245_v30  ;;  %vm6046_vm8 = vcmp.eq.f32.partialorder %v3319_v58, 8.507059e+37  ;;  %vm3317_vm9 = vmor %vm3315_vm0, %vm3316_vm5 }
 0x38c   : > { %v3288_v39 = vsel %vm3287_vm14, %v4568_v53, %v3284_v21  ;;  %v2567_v31 = vpop.xlane.xlu1 %2566  ;;  %v3299_v17 = vadd.f32 %v4572_v1, %v3298_v5  ;;  %v4578_v19 = vpop.eup %4577  ;;  %v3321_v53 = vand.u32 2147483648, %v5991_v4  ;;  %v3312_v48 = vsub.f32 1.0, %v3311_v6 }
 0x38d   : > { %v3293_v45 = vsel %vm3290_vm15, %v3292_v60, %v3288_v39  ;;  %v2569_v0 = vpop.xlane.xlu2 %2568  ;;  %v2235_v14 = vmul.f32 %v4578_v19, %v5995_v34  ;;  %v4580_v16 = vpop.eup %4579  ;;  %vm2240_vm7 = vweird.f32 %v4578_v19  ;;  %v2231_v21 = vor.u32 1.1754944e-38, %v2230_v59 }
 0x38e   : > { %v3294_v40 = vmul.f32 %v5613_v23, %v3293_v45  ;;  %v3303_v13 = vsel %vm3302_vm2, %v4572_v1, %v3299_v17  ;;  %v2590_v1 = vsub.f32 %v5660_v63, %v2569_v0  ;;  %v3313_v46 = vmul.f32 %v4576_v24, %v3312_v48  ;;  %vm2241_vm11 = vmor %vm2239_vm1, %vm2240_vm7  ;;  %v6447_v0 = vld [vmem:[#allocation12_spill] sm:$0xff] }
 0x38f   : > { %v3308_v23 = vsel %vm6006_vm12, %v3307_v38, %v3303_v13  ;;  %v2236_v25 = vsub.f32 1.0, %v2235_v14  ;;  %v2220_v51 = vmul.f32 %v4580_v16, %v5985_v35  ;;  %v3322_v38 = vor.u32 1.1754944e-38, %v3321_v53  ;;  %v6448_v35 = vld [vmem:[#allocation11_spill] sm:$0xff] }
 0x390   : > { %4035 = vst [vmem:[%s5464_s23 + $0x1b0] sm:$0xff] %v3294_v40  ;;  %v3309_v10 = vmul.f32 %v5622_v7, %v3308_v23  ;;  %v2616_v11 = vmul.f32 1.442695, %v2590_v1  ;;  %v3314_v63 = vadd.f32 %v4576_v24, %v3313_v46  ;;  %v2589_v7 = vsub.f32 %v5653_v27, %v2567_v31 }
 0x391   : > { %v2237_v54 = vmul.f32 %v4578_v19, %v2236_v25  ;;  %v2221_v8 = vsub.f32 1.0, %v2220_v51  ;;  %v4582_v56 = vpop.eup %4581  ;;  %vm2225_vm10 = vweird.f32 %v4580_v16  ;;  %v2258_v4 = vand.u32 2147483647, %v6020_v22 }
 0x392   : > { %4036 = vst [vmem:[%s5464_s23 + $0x1b8] sm:$0xff] %v3309_v10  ;;  %4583 = vpow2.f32 %v2616_v11  ;;  %v3318_v20 = vsel %vm3317_vm9, %v4576_v24, %v3314_v63  ;;  %v2250_v36 = vmul.f32 %v4582_v56, %v6020_v22  ;;  %v2571_v17 = vpop.xlane.xlu0 %2570  ;;  %v2614_v31 = vmul.f32 1.442695, %v2589_v7  ;;  %vm2226_vm12 = vmor %vm2224_vm4, %vm2225_vm10  ;;  %v6450_v11 = vld [vmem:[#allocation13_spill] sm:$0xff] }
 0x393   : > { %v2238_v60 = vadd.f32 %v4578_v19, %v2237_v54  ;;  %v2222_v39 = vmul.f32 %v4580_v16, %v2221_v8  ;;  %v3323_v27 = vsel %vm6046_vm8, %v3322_v38, %v3318_v20  ;;  %v2591_v30 = vsub.f32 %v5675_v26, %v2571_v17 }
 0x394   : > { %v6055_v5 = vpop.xlane.xlu1 %2102  ;;  %v3324_v6 = vmul.f32 %v5637_v49, %v3323_v27  ;;  %v2251_v58 = vsub.f32 1.0, %v2250_v36  ;;  %vm2255_vm13 = vweird.f32 %v4582_v56  ;;  %v2260_v53 = vand.u32 2147483648, %v6020_v22 }
 0x395   : > { %v6064_v45 = vpop.xlane.xlu2 %2104  ;;  %v2242_v24 = vsel %vm2241_vm11, %v4578_v19, %v2238_v60  ;;  %v2223_v40 = vadd.f32 %v4580_v16, %v2222_v39  ;;  %4585 = vpow2.f32 %v2614_v31  ;;  %v2618_v50 = vmul.f32 1.442695, %v2591_v30 }
 0x396   : > { %v2247_v34 = vsel %vm6030_vm3, %v2246_v52, %v2242_v24  ;;  %4037 = vst [vmem:[%s5464_s23 + $0x1c0] sm:$0xff] %v3324_v6  ;;  %v2252_v49 = vmul.f32 %v4582_v56, %v2251_v58  ;;  %4587 = vrcp.f32 %v6064_v45  ;;  %vm2254_vm14 = vweird.f32 %v6020_v22  ;;  %v6449_v22 = vld [vmem:[#allocation9_spill] sm:$0xff] }
 0x397   : > { %v2248_v13 = vmul.f32 %v6447_v0, %v2247_v34  ;;  %v2227_v26 = vsel %vm2226_vm12, %v4580_v16, %v2223_v40  ;;  %4589 = vrcp.f32 %v6055_v5  ;;  %vm2256_vm15 = vmor %vm2254_vm14, %vm2255_vm13  ;;  %v2261_v16 = vor.u32 1.1754944e-38, %v2260_v53 }
 0x398   : > { %v6077_v19 = vpop.eup %4583  ;;  %v2232_v14 = vsel %vm6042_vm6, %v2231_v21, %v2227_v26  ;;  %v2253_v23 = vadd.f32 %v4582_v56, %v2252_v49  ;;  %vm2259_vm0 = vcmp.eq.f32.partialorder %v2258_v4, 8.507059e+37  ;;  %4591 = vpow2.f32 %v2618_v50 }
 0x399   : > { %3941 = vst [vmem:[%s5464_s23 + $0xc0] sm:$0xff] %v2248_v13  ;;  %v2233_v48 = vmul.f32 %v6448_v35, %v2232_v14  ;;  %2648 = vadd.xlane.f32.xlu0 %v6077_v19  ;;  %v3125_v51 = vsub.f32 %v6449_v22, %v5747_v47  ;;  %v2288_v8 = vand.u32 2147483647, %v6064_v45  ;;  %vm2284_vm1 = vweird.f32 %v6064_v45 }
 0x39a   : > { %v2257_v1 = vsel %vm2256_vm15, %v4582_v56, %v2253_v23  ;;  %v2290_v20 = vand.u32 2147483648, %v6064_v45  ;;  %v2275_v39 = vand.u32 2147483648, %v6055_v5  ;;  %vm2269_vm4 = vweird.f32 %v6055_v5 }
 0x39b   : > { %3940 = vst [vmem:[%s5464_s23 + $0xb8] sm:$0xff] %v2233_v48  ;;  %v6088_v10 = vpop.xlane.xlu0 %2106  ;;  %v6091_v46 = vpop.eup %4585  ;;  %v2262_v15 = vsel %vm2259_vm0, %v2261_v16, %v2257_v1  ;;  %v3156_v38 = vmul.f32 1.442695, %v3125_v51  ;;  %vm6108_vm3 = vcmp.eq.f32.partialorder %v2288_v8, 8.507059e+37  ;;  %v2273_v30 = vand.u32 2147483647, %v6055_v5 }
 0x39c   : > { %v2573_v59 = vpop.xlane.xlu1 %2572  ;;  %4593 = vrcp.f32 %v6088_v10  ;;  %v4588_v57 = vpop.eup %4587  ;;  %v2263_v54 = vmul.f32 %v6450_v11, %v2262_v15  ;;  %2646 = vadd.xlane.f32.xlu2 %v6091_v46  ;;  %v2291_v34 = vor.u32 1.1754944e-38, %v2290_v20  ;;  %v2276_v53 = vor.u32 1.1754944e-38, %v2275_v39 }
 0x39d   : > { %v2592_v25 = vsub.f32 %v5689_v61, %v2573_v59  ;;  %v2575_v52 = vpop.xlane.xlu2 %2574  ;;  %v2280_v63 = vmul.f32 %v4588_v57, %v6064_v45  ;;  %v4590_v56 = vpop.eup %4589  ;;  %vm2285_vm2 = vweird.f32 %v4588_v57  ;;  %v2303_v50 = vand.u32 2147483647, %v6088_v10 }
 0x39e   : > { %v2593_v61 = vsub.f32 %v5695_v32, %v2575_v52  ;;  %3942 = vst [vmem:[%s5464_s23 + $0xc8] sm:$0xff] %v2263_v54  ;;  %v2265_v21 = vmul.f32 %v4590_v56, %v6055_v5  ;;  %v6103_v60 = vpop.eup %4591  ;;  %vm2270_vm5 = vweird.f32 %v4590_v56  ;;  %vm2286_vm6 = vmor %vm2284_vm1, %vm2285_vm2  ;;  %v2305_v35 = vand.u32 2147483648, %v6088_v10 }
 0x39f   : > { %v2620_v7 = vmul.f32 1.442695, %v2592_v25  ;;  %v2281_v47 = vsub.f32 1.0, %v2280_v63  ;;  %vm2271_vm7 = vmor %vm2269_vm4, %vm2270_vm5  ;;  %vm2274_vm9 = vcmp.eq.f32.partialorder %v2273_v30, 8.507059e+37  ;;  %vm2299_vm10 = vweird.f32 %v6088_v10 }
 0x3a0   : > { %v2622_v36 = vmul.f32 1.442695, %v2593_v61  ;;  %v2266_v4 = vsub.f32 1.0, %v2265_v21  ;;  %v2306_v52 = vor.u32 1.1754944e-38, %v2305_v35  ;;  %vm2304_vm12 = vcmp.eq.f32.partialorder %v2303_v50, 8.507059e+37 }
 0x3a1   : > { %4595 = vpow2.f32 %v2620_v7  ;;  %v2282_v27 = vmul.f32 %v4588_v57, %v2281_v47 }
 0x3a2   : > { %v4594_v17 = vpop.eup %4593  ;;  %4597 = vpow2.f32 %v2622_v36  ;;  %v2267_v40 = vmul.f32 %v4590_v56, %v2266_v4 }
 0x3a3   : > { %v2295_v24 = vmul.f32 %v4594_v17, %v6088_v10  ;;  %v2283_v6 = vadd.f32 %v4588_v57, %v2282_v27  ;;  %vm2300_vm8 = vweird.f32 %v4594_v17 }
 0x3a4   : > { %v6112_v31 = vpop.xlane.xlu1 %2108  ;;  %2650 = vadd.xlane.f32.xlu2 %v6103_v60  ;;  %v2268_v14 = vadd.f32 %v4590_v56, %v2267_v40  ;;  %vm2301_vm11 = vmor %vm2299_vm10, %vm2300_vm8 }
 0x3a5   : > { %4599 = vrcp.f32 %v6112_v31  ;;  %v2577_v58 = vpop.xlane.xlu0 %2576  ;;  %v2296_v0 = vsub.f32 1.0, %v2295_v24  ;;  %v2287_v49 = vsel %vm2286_vm6, %v4588_v57, %v2283_v6  ;;  %v2320_v7 = vand.u32 2147483648, %v6112_v31 }
 0x3a6   : > { %v2594_v13 = vsub.f32 %v5715_v43, %v2577_v58  ;;  %v2292_v48 = vsel %vm6108_vm3, %v2291_v34, %v2287_v49  ;;  %v6453_v43 = vld [vmem:[#allocation6_spill] sm:$0xff]  ;;  %v2272_v1 = vsel %vm2271_vm7, %v4590_v56, %v2268_v14  ;;  %vm2314_vm14 = vweird.f32 %v6112_v31 }
 0x3a7   : > { %v6122_v26 = vpop.eup %4595  ;;  %v2297_v45 = vmul.f32 %v4594_v17, %v2296_v0  ;;  %v3123_v16 = vsub.f32 %v6453_v43, %v5703_v42  ;;  %v2293_v59 = vmul.f32 %v5670_v29, %v2292_v48  ;;  %v2277_v22 = vsel %vm2274_vm9, %v2276_v53, %v2272_v1 }
 0x3a8   : > { %v2624_v23 = vmul.f32 1.442695, %v2594_v13  ;;  %2652 = vadd.xlane.f32.xlu0 %v6122_v26  ;;  %v6135_v25 = vpop.eup %4597  ;;  %v2278_v15 = vmul.f32 %v5668_v12, %v2277_v22  ;;  %v2321_v27 = vor.u32 1.1754944e-38, %v2320_v7 }
 0x3a9   : > { %v2298_v51 = vadd.f32 %v4594_v17, %v2297_v45  ;;  %3944 = vst [vmem:[%s5464_s23 + $0xd8] sm:$0xff] %v2293_v59  ;;  %2654 = vadd.xlane.f32.xlu1 %v6135_v25  ;;  %v3152_v11 = vmul.f32 1.442695, %v3123_v16 }
 0x3aa   : > { %4601 = vpow2.f32 %v2624_v23  ;;  %3943 = vst [vmem:[%s5464_s23 + $0xd0] sm:$0xff] %v2278_v15 }
 0x3ab   : > { %v4600_v5 = vpop.eup %4599  ;;  %4603 = vpow2.f32 %v3156_v38  ;;  %v2302_v29 = vsel %vm2301_vm11, %v4594_v17, %v2298_v51  ;;  %v6143_v57 = vpop.xlane.xlu2 %2110  ;;  %v2318_v38 = vand.u32 2147483647, %v6112_v31 }
 0x3ac   : > { %v2310_v42 = vmul.f32 %v4600_v5, %v6112_v31  ;;  %v2307_v10 = vsel %vm2304_vm12, %v2306_v52, %v2302_v29  ;;  %4605 = vrcp.f32 %v6143_v57  ;;  %vm2315_vm13 = vweird.f32 %v4600_v5 }
 0x3ad   : > { %v6147_v54 = vpop.xlane.xlu0 %3180  ;;  %v2579_v12 = vpop.xlane.xlu1 %2578  ;;  %v2308_v63 = vmul.f32 %v5684_v41, %v2307_v10  ;;  %v6454_v41 = vld [vmem:[#allocation7_spill] sm:$0xff]  ;;  %vm2316_vm15 = vmor %vm2314_vm14, %vm2315_vm13  ;;  %vm2319_vm0 = vcmp.eq.f32.partialorder %v2318_v38, 8.507059e+37  ;;  %v2333_v0 = vand.u32 2147483647, %v6143_v57  ;;  %v2335_v13 = vand.u32 2147483648, %v6143_v57 }
 0x3ae   : > { %v2311_v8 = vsub.f32 1.0, %v2310_v42  ;;  %4607 = vrcp.f32 %v6147_v54  ;;  %v2595_v47 = vsub.f32 %v5739_v44, %v2579_v12  ;;  %v3124_v20 = vsub.f32 %v6454_v41, %v5723_v28 }
 0x3af   : > { %3945 = vst [vmem:[%s5464_s23 + $0xe0] sm:$0xff] %v2308_v63  ;;  %4609 = vpow2.f32 %v3152_v11  ;;  %v3364_v50 = vand.u32 2147483647, %v6147_v54  ;;  %v3366_v35 = vand.u32 2147483648, %v6147_v54  ;;  %vm2329_vm3 = vweird.f32 %v6143_v57  ;;  %v6455_v63 = vld [vmem:[#allocation14_spill] sm:$0xff] }
 0x3b0   : > { %v6152_v61 = vpop.eup %4601  ;;  %v2312_v56 = vmul.f32 %v4600_v5, %v2311_v8  ;;  %v2626_v36 = vmul.f32 1.442695, %v2595_v47  ;;  %v3154_v40 = vmul.f32 1.442695, %v3124_v20  ;;  %vm2334_vm5 = vcmp.eq.f32.partialorder %v2333_v0, 8.507059e+37 }
 0x3b1   : > { %2656 = vadd.xlane.f32.xlu2 %v6152_v61  ;;  %v6158_v21 = vpop.eup %4603  ;;  %v2336_v43 = vor.u32 1.1754944e-38, %v2335_v13  ;;  %vm3360_vm6 = vweird.f32 %v6147_v54  ;;  %vm3365_vm8 = vcmp.eq.f32.partialorder %v3364_v50, 8.507059e+37  ;;  %v3367_v1 = vor.u32 1.1754944e-38, %v3366_v35  ;;  %v6458_v13 = vld [vmem:[#allocation16_spill] sm:$0xff] }
 0x3b2   : > { %v2313_v39 = vadd.f32 %v4600_v5, %v2312_v56  ;;  %v4606_v17 = vpop.eup %4605  ;;  %3188 = vadd.xlane.f32.xlu1 %v6158_v21  ;;  %4611 = vpow2.f32 %v2626_v36 }
 0x3b3   : > { %v2325_v44 = vmul.f32 %v4606_v17, %v6143_v57  ;;  %v6165_v30 = vpop.xlane.xlu2 %3178  ;;  %vm2330_vm1 = vweird.f32 %v4606_v17 }
 0x3b4   : > { %v4608_v32 = vpop.eup %4607  ;;  %v2317_v4 = vsel %vm2316_vm15, %v4600_v5, %v2313_v39  ;;  %4613 = vrcp.f32 %v6165_v30  ;;  %vm2331_vm4 = vmor %vm2329_vm3, %vm2330_vm1  ;;  %vm3345_vm9 = vweird.f32 %v6165_v30  ;;  %v3349_v52 = vand.u32 2147483647, %v6165_v30 }
 0x3b5   : > { %v2322_v24 = vsel %vm2319_vm0, %v2321_v27, %v2317_v4  ;;  %v3356_v28 = vmul.f32 %v4608_v32, %v6147_v54  ;;  %v6169_v31 = vpop.xlane.xlu0 %2112  ;;  %v6171_v6 = vpop.xlane.xlu1 %3176  ;;  %v2326_v34 = vsub.f32 1.0, %v2325_v44  ;;  %vm3361_vm2 = vweird.f32 %v4608_v32 }
 0x3b6   : > { %v2323_v58 = vmul.f32 %v5706_v3, %v2322_v24  ;;  %v6174_v53 = vpop.eup %4609  ;;  %4615 = vrcp.f32 %v6169_v31  ;;  %vm3362_vm7 = vmor %vm3360_vm6, %vm3361_vm2  ;;  %v3351_v7 = vand.u32 2147483648, %v6165_v30  ;;  %vm2344_vm10 = vweird.f32 %v6169_v31 }
 0x3b7   : > { %v3357_v49 = vsub.f32 1.0, %v3356_v28  ;;  %v2327_v14 = vmul.f32 %v4606_v17, %v2326_v34  ;;  %4617 = vrcp.f32 %v6171_v6  ;;  %vm6208_vm12 = vcmp.eq.f32.partialorder %v3349_v52, 8.507059e+37  ;;  %v6460_v52 = vld [vmem:[#allocation15_spill] sm:$0xff] }
 0x3b8   : > { %3946 = vst [vmem:[%s5464_s23 + $0xe8] sm:$0xff] %v2323_v58  ;;  %v6184_v3 = vpop.eup %4611  ;;  %4619 = vpow2.f32 %v3154_v40  ;;  %v2348_v20 = vand.u32 2147483647, %v6169_v31  ;;  %v2350_v39 = vand.u32 2147483648, %v6169_v31  ;;  %v3352_v4 = vor.u32 1.1754944e-38, %v3351_v7 }
 0x3b9   : > { %v3358_v48 = vmul.f32 %v4608_v32, %v3357_v49  ;;  %3184 = vadd.xlane.f32.xlu2 %v6174_v53  ;;  %v2328_v45 = vadd.f32 %v4606_v17, %v2327_v14  ;;  %2658 = vadd.xlane.f32.xlu0 %v6184_v3  ;;  %v3334_v44 = vand.u32 2147483647, %v6171_v6  ;;  %v3336_v24 = vand.u32 2147483648, %v6171_v6 }
 0x3ba   : > { %v4614_v23 = vpop.eup %4613  ;;  %vm2349_vm1 = vcmp.eq.f32.partialorder %v2348_v20, 8.507059e+37  ;;  %vm3330_vm2 = vweird.f32 %v6171_v6 }
 0x3bb   : > { %v3359_v16 = vadd.f32 %v4608_v32, %v3358_v48  ;;  %v2332_v59 = vsel %vm2331_vm4, %v4606_v17, %v2328_v45  ;;  %v3341_v22 = vmul.f32 %v4614_v23, %v6165_v30  ;;  %vm3346_vm11 = vweird.f32 %v4614_v23 }
 0x3bc   : > { %v4616_v51 = vpop.eup %4615  ;;  %v2337_v5 = vsel %vm2334_vm5, %v2336_v43, %v2332_v59  ;;  %vm3347_vm14 = vmor %vm3345_vm9, %vm3346_vm11  ;;  %v2351_v30 = vor.u32 1.1754944e-38, %v2350_v39  ;;  %vm3335_vm4 = vcmp.eq.f32.partialorder %v3334_v44, 8.507059e+37 }
 0x3bd   : > { %v3363_v15 = vsel %vm3362_vm7, %v4608_v32, %v3359_v16  ;;  %v6193_v29 = vpop.xlane.xlu0 %2630  ;;  %v6195_v42 = vpop.xlane.xlu1 %3182  ;;  %v2338_v57 = vmul.f32 %v5730_v9, %v2337_v5  ;;  %v3342_v10 = vsub.f32 1.0, %v3341_v22  ;;  %v2340_v54 = vmul.f32 %v4616_v51, %v6169_v31  ;;  %v6459_v16 = vld [vmem:[#allocation17_spill] sm:$0xff] }
 0x3be   : > { %v3368_v11 = vsel %vm3365_vm8, %v3367_v1, %v3363_v15  ;;  %v4618_v12 = vpop.eup %4617  ;;  %4621 = vrcp.f32 %v6193_v29  ;;  %vm2345_vm13 = vweird.f32 %v4616_v51  ;;  %v3337_v31 = vor.u32 1.1754944e-38, %v3336_v24 }
 0x3bf   : > { %v3369_v8 = vmul.f32 %v6455_v63, %v3368_v11  ;;  %v6203_v56 = vpop.eup %4619  ;;  %3947 = vst [vmem:[%s5464_s23 + $0xf0] sm:$0xff] %v2338_v57  ;;  %v3343_v38 = vmul.f32 %v4614_v23, %v3342_v10  ;;  %v2341_v47 = vsub.f32 1.0, %v2340_v54  ;;  %v3326_v9 = vmul.f32 %v4618_v12, %v6171_v6  ;;  %vm2346_vm0 = vmor %vm2344_vm10, %vm2345_vm13 }
 0x3c0   : > { %4623 = vrcp.f32 %v6195_v42  ;;  %vm3331_vm15 = vweird.f32 %v4618_v12  ;;  %v2684_v43 = vand.u32 2147483647, %v6193_v29  ;;  %v2686_v15 = vand.u32 2147483648, %v6193_v29 }
 0x3c1   : > { %4040 = vst [vmem:[%s5464_s23 + $0x1d8] sm:$0xff] %v3369_v8  ;;  %v3344_v36 = vadd.f32 %v4614_v23, %v3343_v38  ;;  %v2342_v17 = vmul.f32 %v4616_v51, %v2341_v47  ;;  %v3327_v27 = vsub.f32 1.0, %v3326_v9  ;;  %3186 = vadd.xlane.f32.xlu0 %v6203_v56  ;;  %vm3332_vm3 = vmor %vm3330_vm2, %vm3331_vm15  ;;  %vm2680_vm6 = vweird.f32 %v6193_v29 }
 0x3c2   : > { %vm3375_vm7 = vweird.f32 %v6195_v42  ;;  %v3381_v63 = vand.u32 2147483648, %v6195_v42  ;;  %vm2685_vm10 = vcmp.eq.f32.partialorder %v2684_v43, 8.507059e+37  ;;  %v2687_v47 = vor.u32 1.1754944e-38, %v2686_v15 }
 0x3c3   : > { %v6215_v32 = vpop.xlane.xlu2 %2628  ;;  %v3348_v28 = vsel %vm3347_vm14, %v4614_v23, %v3344_v36  ;;  %v2343_v40 = vadd.f32 %v4616_v51, %v2342_v17  ;;  %v3328_v58 = vmul.f32 %v4618_v12, %v3327_v27 }
 0x3c4   : > { %4625 = vrcp.f32 %v6215_v32  ;;  %v4622_v34 = vpop.eup %4621  ;;  %v3353_v0 = vsel %vm6208_vm12, %v3352_v4, %v3348_v28  ;;  %v2669_v9 = vand.u32 2147483647, %v6215_v32  ;;  %v2671_v41 = vand.u32 2147483648, %v6215_v32  ;;  %v6461_v4 = vld [vmem:[#allocation18_spill] sm:$0xff] }
 0x3c5   : > { %v3354_v49 = vmul.f32 %v6458_v13, %v3353_v0  ;;  %v2347_v14 = vsel %vm2346_vm0, %v4616_v51, %v2343_v40  ;;  %v3329_v50 = vadd.f32 %v4618_v12, %v3328_v58  ;;  %v2676_v35 = vmul.f32 %v4622_v34, %v6193_v29  ;;  %v6231_v48 = vpop.xlane.xlu1 %2632  ;;  %v6462_v0 = vld [vmem:[#allocation19_spill] sm:$0xff] }
 0x3c6   : > { %v4624_v45 = vpop.eup %4623  ;;  %v2352_v23 = vsel %vm2349_vm1, %v2351_v30, %v2347_v14  ;;  %vm2681_vm5 = vweird.f32 %v4622_v34  ;;  %4627 = vrcp.f32 %v6231_v48  ;;  %v3382_v27 = vor.u32 1.1754944e-38, %v3381_v63  ;;  %v6463_v14 = vld [vmem:[#allocation8_spill] sm:$0xff] }
 0x3c7   : > { %4039 = vst [vmem:[%s5464_s23 + $0x1d0] sm:$0xff] %v3354_v49  ;;  %v2353_v59 = vmul.f32 %v6459_v16, %v2352_v23  ;;  %v3333_v6 = vsel %vm3332_vm3, %v4618_v12, %v3329_v50  ;;  %v2677_v1 = vsub.f32 1.0, %v2676_v35  ;;  %v3371_v22 = vmul.f32 %v4624_v45, %v6195_v42  ;;  %vm2682_vm9 = vmor %vm2680_vm6, %vm2681_vm5 }
 0x3c8   : > { %v3338_v5 = vsel %vm3335_vm4, %v3337_v31, %v3333_v6  ;;  %v3379_v12 = vand.u32 2147483647, %v6195_v42  ;;  %vm3376_vm8 = vweird.f32 %v4624_v45  ;;  %vm2665_vm14 = vweird.f32 %v6215_v32 }
 0x3c9   : > { %3948 = vst [vmem:[%s5464_s23 + $0xf8] sm:$0xff] %v2353_v59  ;;  %v3339_v57 = vmul.f32 %v6460_v52, %v3338_v5  ;;  %v2678_v11 = vmul.f32 %v4622_v34, %v2677_v1  ;;  %v3372_v10 = vsub.f32 1.0, %v3371_v22  ;;  %vm3377_vm12 = vmor %vm3375_vm7, %vm3376_vm8  ;;  %vm2670_vm0 = vcmp.eq.f32.partialorder %v2669_v9, 8.507059e+37  ;;  %v6464_v59 = vld [vmem:[#allocation20_spill] sm:$0xff] }
 0x3ca   : > { %v4626_v51 = vpop.eup %4625  ;;  %vm3380_vm13 = vcmp.eq.f32.partialorder %v3379_v12, 8.507059e+37  ;;  %vm2695_vm2 = vweird.f32 %v6231_v48 }
 0x3cb   : > { %v2661_v54 = vmul.f32 %v4626_v51, %v6215_v32  ;;  %4038 = vst [vmem:[%s5464_s23 + $0x1c8] sm:$0xff] %v3339_v57  ;;  %v2679_v8 = vadd.f32 %v4622_v34, %v2678_v11  ;;  %v3373_v7 = vmul.f32 %v4624_v45, %v3372_v10  ;;  %vm2666_vm11 = vweird.f32 %v4626_v51 }
 0x3cc   : > { %v4628_v36 = vpop.eup %4627  ;;  %vm2667_vm15 = vmor %vm2665_vm14, %vm2666_vm11  ;;  %v2701_v32 = vand.u32 2147483648, %v6231_v48 }
 0x3cd   : > { %v2662_v38 = vsub.f32 1.0, %v2661_v54  ;;  %v2683_v29 = vsel %vm2682_vm9, %v4622_v34, %v2679_v8  ;;  %v3374_v20 = vadd.f32 %v4624_v45, %v3373_v7  ;;  %v2691_v40 = vmul.f32 %v4628_v36, %v6231_v48 }
 0x3ce   : > { %v2688_v17 = vsel %vm2685_vm10, %v2687_v47, %v2683_v29  ;;  %v2672_v34 = vor.u32 1.1754944e-38, %v2671_v41  ;;  %vm2696_vm1 = vweird.f32 %v4628_v36  ;;  %v2702_v31 = vor.u32 1.1754944e-38, %v2701_v32 }
 0x3cf   : > { %v2663_v39 = vmul.f32 %v4626_v51, %v2662_v38  ;;  %v2689_v44 = vmul.f32 %v6461_v4, %v2688_v17  ;;  %v3378_v24 = vsel %vm3377_vm12, %v4624_v45, %v3374_v20  ;;  %v2692_v13 = vsub.f32 1.0, %v2691_v40  ;;  %vm2697_vm3 = vmor %vm2695_vm2, %vm2696_vm1 }
 0x3d0   : > { %v3383_v58 = vsel %vm3380_vm13, %v3382_v27, %v3378_v24  ;;  %v2699_v45 = vand.u32 2147483647, %v6231_v48 }
 0x3d1   : > { %v2664_v28 = vadd.f32 %v4626_v51, %v2663_v39  ;;  %3982 = vst [vmem:[%s5464_s23 + $0x108] sm:$0xff] %v2689_v44  ;;  %v3384_v30 = vmul.f32 %v6462_v0, %v3383_v58  ;;  %v2693_v35 = vmul.f32 %v4628_v36, %v2692_v13 }
 0x3d2   : > { %vm2700_vm4 = vcmp.eq.f32.partialorder %v2699_v45, 8.507059e+37 }
 0x3d3   : > { %v2668_v42 = vsel %vm2667_vm15, %v4626_v51, %v2664_v28  ;;  %4041 = vst [vmem:[%s5464_s23 + $0x1e0] sm:$0xff] %v3384_v30  ;;  %v2694_v23 = vadd.f32 %v4628_v36, %v2693_v35 }
 0x3d4   : > { %v2673_v49 = vsel %vm2670_vm0, %v2672_v34, %v2668_v42 }
 0x3d5   : > { %v2674_v50 = vmul.f32 %v6463_v14, %v2673_v49  ;;  %v2698_v43 = vsel %vm2697_vm3, %v4628_v36, %v2694_v23 }
 0x3d6   : > { %v2703_v16 = vsel %vm2700_vm4, %v2702_v31, %v2698_v43 }
 0x3d7   : > { %3981 = vst [vmem:[%s5464_s23 + $0x100] sm:$0xff] %v2674_v50  ;;  %v2704_v6 = vmul.f32 %v6464_v59, %v2703_v16 }
 0x3d9   : > { %3983 = vst [vmem:[%s5464_s23 + $0x110] sm:$0xff] %v2704_v6 }
 0x3dd   : > { %v2637_v1 = vpop.xlane.xlu0 %2636 }
 0x3de   : > { %4629 = vrcp.f32 %v2637_v1  ;;  %v2731_v11 = vand.u32 2147483648, %v2637_v1  ;;  %v2729_v54 = vand.u32 2147483647, %v2637_v1  ;;  %vm2725_vm6 = vweird.f32 %v2637_v1 }
 0x3e0   : > { %v2635_v22 = vpop.xlane.xlu2 %2634  ;;  %v2732_v7 = vor.u32 1.1754944e-38, %v2731_v11  ;;  %vm2730_vm9 = vcmp.eq.f32.partialorder %v2729_v54, 8.507059e+37 }
 0x3e1   : > { %4631 = vrcp.f32 %v2635_v22  ;;  %v2716_v8 = vand.u32 2147483648, %v2635_v22  ;;  %v2714_v47 = vand.u32 2147483647, %v2635_v22  ;;  %vm2710_vm10 = vweird.f32 %v2635_v22 }
 0x3e3   : > { %v2717_v36 = vor.u32 1.1754944e-38, %v2716_v8  ;;  %vm2715_vm12 = vcmp.eq.f32.partialorder %v2714_v47, 8.507059e+37 }
 0x3e4   : > { %v4630_v51 = vpop.eup %4629 }
 0x3e5   : > { %v2721_v5 = vmul.f32 %v4630_v51, %v2637_v1  ;;  %v2639_v57 = vpop.xlane.xlu1 %2638  ;;  %vm2726_vm5 = vweird.f32 %v4630_v51 }
 0x3e6   : > { %4633 = vrcp.f32 %v2639_v57  ;;  %vm2727_vm7 = vmor %vm2725_vm6, %vm2726_vm5  ;;  %v2746_v28 = vand.u32 2147483648, %v2639_v57  ;;  %v2744_v58 = vand.u32 2147483647, %v2639_v57  ;;  %vm2740_vm14 = vweird.f32 %v2639_v57 }
 0x3e7   : > { %v4632_v15 = vpop.eup %4631  ;;  %v2722_v52 = vsub.f32 1.0, %v2721_v5 }
 0x3e8   : > { %v2706_v10 = vmul.f32 %v4632_v15, %v2635_v22  ;;  %vm2711_vm8 = vweird.f32 %v4632_v15  ;;  %vm2745_vm0 = vcmp.eq.f32.partialorder %v2744_v58, 8.507059e+37 }
 0x3e9   : > { %v2723_v48 = vmul.f32 %v4630_v51, %v2722_v52  ;;  %vm2712_vm11 = vmor %vm2710_vm10, %vm2711_vm8 }
 0x3ea   : > { %v2707_v12 = vsub.f32 1.0, %v2706_v10 }
 0x3eb   : > { %v2724_v63 = vadd.f32 %v4630_v51, %v2723_v48 }
 0x3ec   : > { %v2708_v38 = vmul.f32 %v4632_v15, %v2707_v12  ;;  %v4634_v41 = vpop.eup %4633 }
 0x3ed   : > { %v2728_v9 = vsel %vm2727_vm7, %v4630_v51, %v2724_v63  ;;  %v2736_v17 = vmul.f32 %v4634_v41, %v2639_v57  ;;  %vm2741_vm13 = vweird.f32 %v4634_v41 }
 0x3ee   : > { %v2733_v29 = vsel %vm2730_vm9, %v2732_v7, %v2728_v9  ;;  %v2709_v20 = vadd.f32 %v4632_v15, %v2708_v38  ;;  %vm2742_vm15 = vmor %vm2740_vm14, %vm2741_vm13 }
 0x3ef   : > { %v2734_v39 = vmul.f32 %v5869_v18, %v2733_v29  ;;  %v2737_v44 = vsub.f32 1.0, %v2736_v17  ;;  %v2747_v18 = vor.u32 1.1754944e-38, %v2746_v28 }
 0x3f0   : > { %v2713_v27 = vsel %vm2712_vm11, %v4632_v15, %v2709_v20 }
 0x3f1   : > { %3985 = vst [vmem:[%s5464_s23 + $0x120] sm:$0xff] %v2734_v39  ;;  %v2718_v4 = vsel %vm2715_vm12, %v2717_v36, %v2713_v27  ;;  %v2738_v40 = vmul.f32 %v4634_v41, %v2737_v44 }
 0x3f2   : > { %v2719_v24 = vmul.f32 %v5877_v2, %v2718_v4 }
 0x3f3   : > { %v2739_v34 = vadd.f32 %v4634_v41, %v2738_v40 }
 0x3f4   : > { %3984 = vst [vmem:[%s5464_s23 + $0x118] sm:$0xff] %v2719_v24  ;;  %v2643_v0 = vpop.xlane.xlu0 %2642 }
 0x3f5   : > { %v2743_v30 = vsel %vm2742_vm15, %v4634_v41, %v2739_v34  ;;  %4635 = vrcp.f32 %v2643_v0  ;;  %v2776_v45 = vand.u32 2147483648, %v2643_v0  ;;  %v2774_v43 = vand.u32 2147483647, %v2643_v0 }
 0x3f6   : > { %v2748_v42 = vsel %vm2745_vm0, %v2747_v18, %v2743_v30  ;;  %vm2770_vm2 = vweird.f32 %v2643_v0 }
 0x3f7   : > { %v2749_v13 = vmul.f32 %v5910_v33, %v2748_v42  ;;  %v2777_v33 = vor.u32 1.1754944e-38, %v2776_v45  ;;  %vm2775_vm5 = vcmp.eq.f32.partialorder %v2774_v43, 8.507059e+37 }
 0x3f8   : > { %v2641_v49 = vpop.xlane.xlu2 %2640 }
 0x3f9   : > { %4637 = vrcp.f32 %v2641_v49  ;;  %3986 = vst [vmem:[%s5464_s23 + $0x128] sm:$0xff] %v2749_v13  ;;  %v2761_v6 = vand.u32 2147483648, %v2641_v49  ;;  %v2759_v22 = vand.u32 2147483647, %v2641_v49  ;;  %vm2755_vm6 = vweird.f32 %v2641_v49 }
 0x3fb   : > { %v4636_v2 = vpop.eup %4635  ;;  %v2762_v10 = vor.u32 1.1754944e-38, %v2761_v6  ;;  %vm2760_vm8 = vcmp.eq.f32.partialorder %v2759_v22, 8.507059e+37 }
 0x3fc   : > { %v2766_v32 = vmul.f32 %v4636_v2, %v2643_v0  ;;  %v2645_v14 = vpop.xlane.xlu1 %2644  ;;  %vm2771_vm1 = vweird.f32 %v4636_v2 }
 0x3fd   : > { %4639 = vrcp.f32 %v2645_v14  ;;  %vm2772_vm3 = vmor %vm2770_vm2, %vm2771_vm1  ;;  %v2791_v63 = vand.u32 2147483648, %v2645_v14  ;;  %v2789_v38 = vand.u32 2147483647, %v2645_v14  ;;  %vm2785_vm10 = vweird.f32 %v2645_v14 }
 0x3fe   : > { %v2767_v35 = vsub.f32 1.0, %v2766_v32 }
 0x3ff   : > { %v4638_v50 = vpop.eup %4637  ;;  %v2792_v9 = vor.u32 1.1754944e-38, %v2791_v63  ;;  %vm2790_vm12 = vcmp.eq.f32.partialorder %v2789_v38, 8.507059e+37 }
 0x400   : > { %v2751_v23 = vmul.f32 %v4638_v50, %v2641_v49  ;;  %v2768_v31 = vmul.f32 %v4636_v2, %v2767_v35  ;;  %vm2756_vm4 = vweird.f32 %v4638_v50 }
 0x401   : > { %vm2757_vm7 = vmor %vm2755_vm6, %vm2756_vm4 }
 0x402   : > { %v2752_v16 = vsub.f32 1.0, %v2751_v23  ;;  %v2769_v59 = vadd.f32 %v4636_v2, %v2768_v31 }
 0x403   : > { %v4640_v51 = vpop.eup %4639 }
 0x404   : > { %v2753_v1 = vmul.f32 %v4638_v50, %v2752_v16  ;;  %v2773_v5 = vsel %vm2772_vm3, %v4636_v2, %v2769_v59  ;;  %v2781_v57 = vmul.f32 %v4640_v51, %v2645_v14  ;;  %vm2786_vm9 = vweird.f32 %v4640_v51 }
 0x405   : > { %v2778_v15 = vsel %vm2775_vm5, %v2777_v33, %v2773_v5  ;;  %vm2787_vm11 = vmor %vm2785_vm10, %vm2786_vm9 }
 0x406   : > { %v2754_v52 = vadd.f32 %v4638_v50, %v2753_v1  ;;  %v2779_v11 = vmul.f32 %v5976_v37, %v2778_v15  ;;  %v2782_v54 = vsub.f32 1.0, %v2781_v57 }
 0x408   : > { %v2758_v48 = vsel %vm2757_vm7, %v4638_v50, %v2754_v52  ;;  %3988 = vst [vmem:[%s5464_s23 + $0x138] sm:$0xff] %v2779_v11  ;;  %v2783_v7 = vmul.f32 %v4640_v51, %v2782_v54 }
 0x409   : > { %v2763_v12 = vsel %vm2760_vm8, %v2762_v10, %v2758_v48 }
 0x40a   : > { %v2764_v8 = vmul.f32 %v5987_v62, %v2763_v12  ;;  %v2784_v47 = vadd.f32 %v4640_v51, %v2783_v7 }
 0x40c   : > { %3987 = vst [vmem:[%s5464_s23 + $0x130] sm:$0xff] %v2764_v8  ;;  %v2649_v37 = vpop.xlane.xlu0 %2648  ;;  %v2788_v41 = vsel %vm2787_vm11, %v4640_v51, %v2784_v47 }
 0x40d   : > { %4641 = vrcp.f32 %v2649_v37  ;;  %v2793_v29 = vsel %vm2790_vm12, %v2792_v9, %v2788_v41  ;;  %v2819_v4 = vand.u32 2147483647, %v2649_v37  ;;  %v2821_v44 = vand.u32 2147483648, %v2649_v37 }
 0x40e   : > { %v2794_v20 = vmul.f32 %v6011_v55, %v2793_v29  ;;  %vm2815_vm14 = vweird.f32 %v2649_v37 }
 0x40f   : > { %v2647_v39 = vpop.xlane.xlu2 %2646  ;;  %vm2820_vm0 = vcmp.eq.f32.partialorder %v2819_v4, 8.507059e+37  ;;  %v2822_v55 = vor.u32 1.1754944e-38, %v2821_v44 }
 0x410   : > { %3989 = vst [vmem:[%s5464_s23 + $0x140] sm:$0xff] %v2794_v20  ;;  %4643 = vrcp.f32 %v2647_v39  ;;  %v2806_v0 = vand.u32 2147483648, %v2647_v39  ;;  %v2804_v13 = vand.u32 2147483647, %v2647_v39  ;;  %vm2800_vm2 = vweird.f32 %v2647_v39 }
 0x412   : > { %v2807_v35 = vor.u32 1.1754944e-38, %v2806_v0  ;;  %vm2805_vm4 = vcmp.eq.f32.partialorder %v2804_v13, 8.507059e+37 }
 0x413   : > { %v4642_v62 = vpop.eup %4641 }
 0x414   : > { %v2811_v36 = vmul.f32 %v4642_v62, %v2649_v37  ;;  %vm2816_vm13 = vweird.f32 %v4642_v62 }
 0x415   : > { %vm2817_vm15 = vmor %vm2815_vm14, %vm2816_vm13 }
 0x416   : > { %v2812_v17 = vsub.f32 1.0, %v2811_v36  ;;  %v4644_v27 = vpop.eup %4643 }
 0x417   : > { %v2796_v28 = vmul.f32 %v4644_v27, %v2647_v39  ;;  %v2651_v40 = vpop.xlane.xlu2 %2650  ;;  %vm2801_vm1 = vweird.f32 %v4644_v27 }
 0x418   : > { %v2813_v24 = vmul.f32 %v4642_v62, %v2812_v17  ;;  %4645 = vrcp.f32 %v2651_v40  ;;  %vm2802_vm3 = vmor %vm2800_vm2, %vm2801_vm1  ;;  %v2834_v33 = vand.u32 2147483647, %v2651_v40  ;;  %vm2830_vm6 = vweird.f32 %v2651_v40 }
 0x419   : > { %v2797_v34 = vsub.f32 1.0, %v2796_v28 }
 0x41a   : > { %v2814_v58 = vadd.f32 %v4642_v62, %v2813_v24  ;;  %vm2835_vm9 = vcmp.eq.f32.partialorder %v2834_v33, 8.507059e+37 }
 0x41b   : > { %v2653_v18 = vpop.xlane.xlu0 %2652  ;;  %v2798_v42 = vmul.f32 %v4644_v27, %v2797_v34 }
 0x41c   : > { %4647 = vrcp.f32 %v2653_v18  ;;  %v2818_v30 = vsel %vm2817_vm15, %v4642_v62, %v2814_v58  ;;  %v6277_v2 = vpop.xlane.xlu1 %2654  ;;  %v2849_v1 = vand.u32 2147483647, %v2653_v18  ;;  %v2851_v52 = vand.u32 2147483648, %v2653_v18 }
 0x41d   : > { %v2823_v49 = vsel %vm2820_vm0, %v2822_v55, %v2818_v30  ;;  %v2799_v14 = vadd.f32 %v4644_v27, %v2798_v42  ;;  %4649 = vrcp.f32 %v6277_v2  ;;  %vm2845_vm10 = vweird.f32 %v2653_v18 }
 0x41e   : > { %v2824_v32 = vmul.f32 %v6077_v19, %v2823_v49  ;;  %v4646_v50 = vpop.eup %4645  ;;  %v2836_v19 = vand.u32 2147483648, %v2651_v40  ;;  %vm2850_vm11 = vcmp.eq.f32.partialorder %v2849_v1, 8.507059e+37  ;;  %v2852_v7 = vor.u32 1.1754944e-38, %v2851_v52 }
 0x41f   : > { %v2803_v45 = vsel %vm2802_vm3, %v4644_v27, %v2799_v14  ;;  %v2826_v23 = vmul.f32 %v4646_v50, %v2651_v40  ;;  %vm2831_vm5 = vweird.f32 %v4646_v50  ;;  %v2864_v38 = vand.u32 2147483647, %v6277_v2 }
 0x420   : > { %3991 = vst [vmem:[%s5464_s23 + $0x150] sm:$0xff] %v2824_v32  ;;  %v2808_v43 = vsel %vm2805_vm4, %v2807_v35, %v2803_v45  ;;  %vm2832_vm8 = vmor %vm2830_vm6, %vm2831_vm5  ;;  %v2837_v48 = vor.u32 1.1754944e-38, %v2836_v19  ;;  %v2866_v47 = vand.u32 2147483648, %v6277_v2  ;;  %vm2860_vm14 = vweird.f32 %v6277_v2 }
 0x421   : > { %v2809_v16 = vmul.f32 %v6091_v46, %v2808_v43  ;;  %v2827_v59 = vsub.f32 1.0, %v2826_v23  ;;  %vm2865_vm0 = vcmp.eq.f32.partialorder %v2864_v38, 8.507059e+37 }
 0x422   : > { %v4648_v31 = vpop.eup %4647 }
 0x423   : > { %v2841_v6 = vmul.f32 %v4648_v31, %v2653_v18  ;;  %3990 = vst [vmem:[%s5464_s23 + $0x148] sm:$0xff] %v2809_v16  ;;  %v2828_v51 = vmul.f32 %v4646_v50, %v2827_v59  ;;  %v4650_v15 = vpop.eup %4649  ;;  %vm2846_vm7 = vweird.f32 %v4648_v31 }
 0x424   : > { %v6283_v22 = vpop.xlane.xlu2 %2656  ;;  %v2856_v10 = vmul.f32 %v4650_v15, %v6277_v2  ;;  %vm2847_vm12 = vmor %vm2845_vm10, %vm2846_vm7  ;;  %vm2861_vm13 = vweird.f32 %v4650_v15 }
 0x425   : > { %v2842_v5 = vsub.f32 1.0, %v2841_v6  ;;  %4651 = vrcp.f32 %v6283_v22  ;;  %v6287_v57 = vpop.xlane.xlu1 %3188  ;;  %v2829_v11 = vadd.f32 %v4646_v50, %v2828_v51  ;;  %vm2862_vm15 = vmor %vm2860_vm14, %vm2861_vm13  ;;  %v2881_v28 = vand.u32 2147483648, %v6283_v22 }
 0x426   : > { %4653 = vrcp.f32 %v6287_v57  ;;  %v2857_v63 = vsub.f32 1.0, %v2856_v10  ;;  %v2879_v34 = vand.u32 2147483647, %v6283_v22  ;;  %v3424_v0 = vand.u32 2147483647, %v6287_v57 }
 0x427   : > { %v2843_v46 = vmul.f32 %v4648_v31, %v2842_v5  ;;  %v2833_v54 = vsel %vm2832_vm8, %v4646_v50, %v2829_v11  ;;  %vm2875_vm2 = vweird.f32 %v6283_v22  ;;  %v3426_v42 = vand.u32 2147483648, %v6287_v57 }
 0x428   : > { %v2838_v8 = vsel %vm2835_vm9, %v2837_v48, %v2833_v54  ;;  %v2858_v29 = vmul.f32 %v4650_v15, %v2857_v63  ;;  %v2882_v49 = vor.u32 1.1754944e-38, %v2881_v28  ;;  %vm2880_vm5 = vcmp.eq.f32.partialorder %v2879_v34, 8.507059e+37 }
 0x429   : > { %v2844_v12 = vadd.f32 %v4648_v31, %v2843_v46  ;;  %v2839_v37 = vmul.f32 %v6103_v60, %v2838_v8  ;;  %v2867_v60 = vor.u32 1.1754944e-38, %v2866_v47  ;;  %vm3420_vm6 = vweird.f32 %v6287_v57 }
 0x42a   : > { %v2859_v17 = vadd.f32 %v4650_v15, %v2858_v29  ;;  %vm3425_vm7 = vcmp.eq.f32.partialorder %v3424_v0, 8.507059e+37  ;;  %v3427_v23 = vor.u32 1.1754944e-38, %v3426_v42 }
 0x42b   : > { %v4652_v9 = vpop.eup %4651  ;;  %v2848_v41 = vsel %vm2847_vm12, %v4648_v31, %v2844_v12  ;;  %3992 = vst [vmem:[%s5464_s23 + $0x158] sm:$0xff] %v2839_v37 }
 0x42c   : > { %v2853_v20 = vsel %vm2850_vm11, %v2852_v7, %v2848_v41  ;;  %v2871_v39 = vmul.f32 %v4652_v9, %v6283_v22  ;;  %v6295_v62 = vpop.xlane.xlu2 %3184  ;;  %v4654_v27 = vpop.eup %4653  ;;  %v2863_v24 = vsel %vm2862_vm15, %v4650_v15, %v2859_v17  ;;  %vm2876_vm1 = vweird.f32 %v4652_v9 }
 0x42d   : > { %v2854_v36 = vmul.f32 %v6122_v26, %v2853_v20  ;;  %4655 = vrcp.f32 %v6295_v62  ;;  %v6301_v44 = vpop.xlane.xlu0 %2658  ;;  %v3416_v40 = vmul.f32 %v4654_v27, %v6287_v57  ;;  %v2868_v26 = vsel %vm2865_vm0, %v2867_v60, %v2863_v24  ;;  %vm2877_vm3 = vmor %vm2875_vm2, %vm2876_vm1 }
 0x42e   : > { %v2872_v4 = vsub.f32 1.0, %v2871_v39  ;;  %4657 = vrcp.f32 %v6301_v44  ;;  %v2869_v18 = vmul.f32 %v6135_v25, %v2868_v26  ;;  %vm3421_vm4 = vweird.f32 %v4654_v27 }
 0x42f   : > { %3993 = vst [vmem:[%s5464_s23 + $0x160] sm:$0xff] %v2854_v36  ;;  %v3417_v55 = vsub.f32 1.0, %v3416_v40  ;;  %vm3422_vm8 = vmor %vm3420_vm6, %vm3421_vm4  ;;  %v3394_v6 = vand.u32 2147483647, %v6295_v62  ;;  %v3396_v33 = vand.u32 2147483648, %v6295_v62  ;;  %vm3390_vm10 = vweird.f32 %v6295_v62 }
 0x430   : > { %v2873_v58 = vmul.f32 %v4652_v9, %v2872_v4  ;;  %3994 = vst [vmem:[%s5464_s23 + $0x168] sm:$0xff] %v2869_v18  ;;  %v2896_v51 = vand.u32 2147483648, %v6301_v44  ;;  %v2894_v52 = vand.u32 2147483647, %v6301_v44  ;;  %vm2890_vm14 = vweird.f32 %v6301_v44 }
 0x431   : > { %v3418_v2 = vmul.f32 %v4654_v27, %v3417_v55  ;;  %v3397_v57 = vor.u32 1.1754944e-38, %v3396_v33  ;;  %vm3395_vm13 = vcmp.eq.f32.partialorder %v3394_v6, 8.507059e+37 }
 0x432   : > { %v2874_v30 = vadd.f32 %v4652_v9, %v2873_v58  ;;  %v2897_v48 = vor.u32 1.1754944e-38, %v2896_v51  ;;  %vm2895_vm0 = vcmp.eq.f32.partialorder %v2894_v52, 8.507059e+37 }
 0x433   : > { %v4656_v13 = vpop.eup %4655  ;;  %v3419_v35 = vadd.f32 %v4654_v27, %v3418_v2 }
 0x434   : > { %v2878_v32 = vsel %vm2877_vm3, %v4652_v9, %v2874_v30  ;;  %v3386_v14 = vmul.f32 %v4656_v13, %v6295_v62  ;;  %v4658_v25 = vpop.eup %4657  ;;  %vm3391_vm9 = vweird.f32 %v4656_v13 }
 0x435   : > { %v2883_v50 = vsel %vm2880_vm5, %v2882_v49, %v2878_v32  ;;  %v2886_v43 = vmul.f32 %v4658_v25, %v6301_v44  ;;  %v3187_v16 = vpop.xlane.xlu0 %3186  ;;  %v3423_v59 = vsel %vm3422_vm8, %v4654_v27, %v3419_v35  ;;  %vm2891_vm11 = vweird.f32 %v4658_v25  ;;  %vm3392_vm12 = vmor %vm3390_vm10, %vm3391_vm9 }
 0x436   : > { %v2884_v45 = vmul.f32 %v6152_v61, %v2883_v50  ;;  %v3387_v31 = vsub.f32 1.0, %v3386_v14  ;;  %4659 = vrcp.f32 %v3187_v16  ;;  %v3428_v19 = vsel %vm3425_vm7, %v3427_v23, %v3423_v59  ;;  %vm2892_vm15 = vmor %vm2890_vm14, %vm2891_vm11 }
 0x437   : > { %v2887_v61 = vsub.f32 1.0, %v2886_v43  ;;  %v3429_v22 = vmul.f32 %v6158_v21, %v3428_v19  ;;  %v3411_v47 = vand.u32 2147483648, %v3187_v16  ;;  %v3409_v37 = vand.u32 2147483647, %v3187_v16 }
 0x438   : > { %3995 = vst [vmem:[%s5464_s23 + $0x170] sm:$0xff] %v2884_v45  ;;  %v3388_v1 = vmul.f32 %v4656_v13, %v3387_v31  ;;  %vm3405_vm2 = vweird.f32 %v3187_v16 }
 0x439   : > { %v2888_v15 = vmul.f32 %v4658_v25, %v2887_v61  ;;  %4044 = vst [vmem:[%s5464_s23 + $0x1f8] sm:$0xff] %v3429_v22  ;;  %v3412_v41 = vor.u32 1.1754944e-38, %v3411_v47  ;;  %vm3410_vm4 = vcmp.eq.f32.partialorder %v3409_v37, 8.507059e+37 }
 0x43a   : > { %v3389_v5 = vadd.f32 %v4656_v13, %v3388_v1 }
 0x43b   : > { %v2889_v46 = vadd.f32 %v4658_v25, %v2888_v15 }
 0x43c   : > { %v3393_v11 = vsel %vm3392_vm12, %v4656_v13, %v3389_v5  ;;  %v4660_v21 = vpop.eup %4659 }
 0x43d   : > { %v3398_v10 = vsel %vm3395_vm13, %v3397_v57, %v3393_v11  ;;  %v2893_v12 = vsel %vm2892_vm15, %v4658_v25, %v2889_v46  ;;  %v3401_v63 = vmul.f32 %v4660_v21, %v3187_v16  ;;  %vm3406_vm1 = vweird.f32 %v4660_v21 }
 0x43e   : > { %v3399_v54 = vmul.f32 %v6174_v53, %v3398_v10  ;;  %v2898_v8 = vsel %vm2895_vm0, %v2897_v48, %v2893_v12  ;;  %vm3407_vm3 = vmor %vm3405_vm2, %vm3406_vm1 }
 0x43f   : > { %v2899_v7 = vmul.f32 %v6184_v3, %v2898_v8  ;;  %v3402_v38 = vsub.f32 1.0, %v3401_v63 }
 0x440   : > { %4042 = vst [vmem:[%s5464_s23 + $0x1e8] sm:$0xff] %v3399_v54 }
 0x441   : > { %3996 = vst [vmem:[%s5464_s23 + $0x178] sm:$0xff] %v2899_v7  ;;  %v3403_v9 = vmul.f32 %v4660_v21, %v3402_v38 }
 0x443   : > { %v3404_v53 = vadd.f32 %v4660_v21, %v3403_v9 }
 0x445   : > { %v3408_v3 = vsel %vm3407_vm3, %v4660_v21, %v3404_v53 }
 0x446   : > { %v3413_v29 = vsel %vm3410_vm4, %v3412_v41, %v3408_v3 }
 0x447   : > { %v3414_v20 = vmul.f32 %v6203_v56, %v3413_v29 }
 0x449   : > { %4043 = vst [vmem:[%s5464_s23 + $0x1f0] sm:$0xff] %v3414_v20 }
 0x44a   : > { %4688 = shalt.err (!%p4685_p7)
}
 0x44b   : > { %s4757_s8 = smov 128   ;;  %s4758_s23 = smov 8  }
 0x44c   : > { %4332 = dma.vmem_to_hbm [thread:$0]  (%p4835_p3), %s3466_s10, 8192, %s3468_s9, %s3448_s11, %s4757_s8, %s4757_s8, %s4758_s23  }
 0x44d PF: > { %p4338_p9 = scmp.ge.s32.totalorder %s4755_s22, 2  ;;  %s3482_s19 = sand.u32 1, %s4727_s15  }
 0x44e   : > { %s3483_s5 = scalar_lea.sflag [#allocation4], %s3482_s19 }
 0x44f   : > { %p4335_p10 = pnand %p4338_p9, %p4844_p8 }
 0x451   : > { %p4336_p11 = pneg %p4335_p10 }
 0x453   : > { %4722 = dma.done.wait (%p4336_p11), %s3483_s5, 8192  }
 0x454   : > { %4724 = vsyncadd (%p4336_p11), %s3483_s5, 4294959104  ;;  %s17_s22 = sadd.s32 1, %s4755_s22   ;;  %s6465_s15 = smov %s4731_s16 }
 0x455   : > { %p14_p12 = scmp.ge.s32.totalorder %s17_s22, 6   ;;  %s6466_s16 = smov %s4735_s17 }
 0x456   : > { %s6467_s17 = smov %s4853_s7  ;;  %s6468_s18 = smov %s4747_s20 }
 0x457   : > { %s6469_s19 = smov %s4751_s21  ;;  %s6470_s20 = smov %s6473_s25 }
 0x458   : > { %s6471_s21 = smov %s6477_s26  ;;  %16 = sbr.rel (!%p14_p12) target bundleno = 5 (0x5), region = 87 }
 0x45d   :  { %3489 = vsyncpa [#allocation4], 1 }
 0x45e   :  { %3491 = vsyncpa [#allocation4 + $0x1], 1 }

</bundles_post_ra>
